<compile_context>
chip_gen: v6e
topology: v6e:2x2x1
jax: 0.10.0
libtpu: 0.0.40
codegen_flags: <defaults>
</compile_context>

<pallas_src>
import functools

import jax
import jax.numpy as jnp
from jax.experimental import pallas as pl
from jax.experimental.pallas import tpu as pltpu


# ----------------------------------------------------------------------------
# Small-config stand-ins for cfg.* (real model: C=256, A=3, P=7, rep=1024,
# num_classes=81).  C / REP kept at 128 so the lane axis is fully utilized.
# ----------------------------------------------------------------------------
C = 128                 # backbone.out_channels (FPN channels)
A = 3                   # num_anchors_per_location
P = 4                   # ROI_BOX_HEAD.POOLER_RESOLUTION
REP = 128               # ROI_BOX_HEAD.MLP_HEAD_DIM
NUM_CLASSES = 8         # ROI_BOX_HEAD.NUM_CLASSES
NUM_BBOX_REG_CLASSES = NUM_CLASSES   # CLS_AGNOSTIC_BBOX_REG = False
NUM_ROIS = 64
ROI_TILE = 32
BATCH = 2
FPN_SPATIALS = (16, 8)  # two FPN levels at small sizes

RPN_OUT = 5 * A                         # A cls logits + 4A bbox deltas
RPN_OUT_PAD = 128                       # lane-dense padded output width
HEAD_OUT = NUM_CLASSES + 4 * NUM_BBOX_REG_CLASSES
HEAD_OUT_PAD = 128                      # lane-dense padded output width
IN_DIM = C * P * P                      # fc6 input size


# ----------------------------------------------------------------------------
# Kernel 1: RPN head for one FPN level (one image per grid step).
#   t   = relu(conv3x3(x) + b)            via im2col: one K=9C matmul
#   out = conv1x1(t, [w_cls | w_box])     fused, lane-padded to 128
# ----------------------------------------------------------------------------
def _rpn_head_kernel(x_ref, wconv_ref, bconv_ref, wout_ref, bout_ref,
                     out_ref, xpad_ref):
    _, H, W, Cin = x_ref.shape

    # In-kernel zero padding into VMEM scratch (no padded HBM copy).
    # Re-zeroed every step so it is correct under "parallel" megacore split.
    # TODO(synk): at real scale only the 1-px border needs re-zeroing.
    xpad_ref[...] = jnp.zeros(xpad_ref.shape, xpad_ref.dtype)
    xpad_ref[1:H + 1, 1:W + 1, :] = x_ref[0]
    xp = xpad_ref[...]

    # im2col: stack the 9 shifted windows along the contraction axis.
    cols = [xp[dy:dy + H, dx:dx + W, :]
            for dy in range(3) for dx in range(3)]
    x9 = jnp.concatenate(cols, axis=-1)              # (H, W, 9*C) bf16

    # Single MXU pass with K = 9*C; f32 accumulation.
    t = jnp.einsum('hwk,kc->hwc', x9, wconv_ref[...],
                   preferred_element_type=jnp.float32)
    t = jnp.maximum(t + bconv_ref[...], 0.0).astype(wout_ref.dtype)

    # Fused cls+bbox 1x1 conv, lane-dense (128-wide) output store.
    out = jnp.einsum('hwc,cd->hwd', t, wout_ref[...],
                     preferred_element_type=jnp.float32) + bout_ref[...]
    out_ref[0] = out.astype(out_ref.dtype)


def rpn_head(feature, params):
    """feature: (N, H, W, C) f32 -> (cls_logits (N,H,W,A), bbox (N,H,W,4A))."""
    N, H, W, Cin = feature.shape

    x = feature.astype(jnp.bfloat16)
    wconv = params['rpn_conv_w'].reshape(9 * Cin, Cin).astype(jnp.bfloat16)
    bconv = params['rpn_conv_b']                                   # (1, C) f32
    wout = jnp.concatenate([params['rpn_cls_w'], params['rpn_box_w']], axis=1)
    wout = jnp.pad(wout, ((0, 0), (0, RPN_OUT_PAD - RPN_OUT))
                   ).astype(jnp.bfloat16)                          # (C, 128)
    bout = jnp.pad(
        jnp.concatenate([params['rpn_cls_b'], params['rpn_box_b']], axis=1),
        ((0, 0), (0, RPN_OUT_PAD - RPN_OUT)))                      # (1, 128)

    out = pl.pallas_call(
        _rpn_head_kernel,
        out_shape=jax.ShapeDtypeStruct((N, H, W, RPN_OUT_PAD), jnp.float32),
        grid_spec=pltpu.PrefetchScalarGridSpec(
            num_scalar_prefetch=0,
            grid=(N,),
            in_specs=[
                pl.BlockSpec((1, H, W, Cin), lambda n: (n, 0, 0, 0)),
                pl.BlockSpec((9 * Cin, Cin), lambda n: (0, 0)),
                pl.BlockSpec((1, Cin), lambda n: (0, 0)),
                pl.BlockSpec((Cin, RPN_OUT_PAD), lambda n: (0, 0)),
                pl.BlockSpec((1, RPN_OUT_PAD), lambda n: (0, 0)),
            ],
            out_specs=pl.BlockSpec((1, H, W, RPN_OUT_PAD),
                                   lambda n: (n, 0, 0, 0)),
            scratch_shapes=[pltpu.VMEM((H + 2, W + 2, Cin), jnp.bfloat16)],
        ),
        compiler_params=pltpu.CompilerParams(
            dimension_semantics=("parallel",)),
    )(x, wconv, bconv, wout, bout)

    cls_logits = out[..., :A]
    bbox_pred = out[..., A:RPN_OUT]
    return cls_logits, bbox_pred


# ----------------------------------------------------------------------------
# Kernel 2: R-CNN box-head MLP, tiled over ROI rows ("parallel" grid axis).
#   h = relu(x @ W6 + b6); h = relu(h @ W7 + b7)
#   out = h @ [Wc | Wb]_padded + b     (split / un-padded in the wrapper)
# ----------------------------------------------------------------------------
def _box_head_kernel(x_ref, w6_ref, b6_ref, w7_ref, b7_ref,
                     wout_ref, bout_ref, out_ref):
    h = jnp.dot(x_ref[...], w6_ref[...],
                preferred_element_type=jnp.float32) + b6_ref[...]
    h = jnp.maximum(h, 0.0).astype(w7_ref.dtype)
    h = jnp.dot(h, w7_ref[...],
                preferred_element_type=jnp.float32) + b7_ref[...]
    h = jnp.maximum(h, 0.0).astype(wout_ref.dtype)
    out = jnp.dot(h, wout_ref[...],
                  preferred_element_type=jnp.float32) + bout_ref[...]
    out_ref[...] = out.astype(out_ref.dtype)


def box_head(roi_features, params):
    """roi_features: (R, P, P, C) -> (class_logits (R,NC), box_reg (R,4*NC))."""
    R = roi_features.shape[0]
    # NOTE: NHWC flatten (P*P*C); a real PyTorch checkpoint (C*P*P order)
    # would need its fc6 weight rows permuted to match.
    x = roi_features.reshape(R, IN_DIM).astype(jnp.bfloat16)

    w6 = params['fc6_w'].astype(jnp.bfloat16)
    w7 = params['fc7_w'].astype(jnp.bfloat16)
    wout = jnp.concatenate([params['cls_w'], params['bbox_w']], axis=1)
    wout = jnp.pad(wout, ((0, 0), (0, HEAD_OUT_PAD - HEAD_OUT))
                   ).astype(jnp.bfloat16)                          # (REP, 128)
    bout = jnp.pad(
        jnp.concatenate([params['cls_b'], params['bbox_b']], axis=1),
        ((0, 0), (0, HEAD_OUT_PAD - HEAD_OUT)))                    # (1, 128)

    out = pl.pallas_call(
        _box_head_kernel,
        out_shape=jax.ShapeDtypeStruct((R, HEAD_OUT_PAD), jnp.float32),
        grid_spec=pltpu.PrefetchScalarGridSpec(
            num_scalar_prefetch=0,
            grid=(R // ROI_TILE,),
            in_specs=[
                pl.BlockSpec((ROI_TILE, IN_DIM), lambda r: (r, 0)),
                pl.BlockSpec((IN_DIM, REP), lambda r: (0, 0)),
                pl.BlockSpec((1, REP), lambda r: (0, 0)),
                pl.BlockSpec((REP, REP), lambda r: (0, 0)),
                pl.BlockSpec((1, REP), lambda r: (0, 0)),
                pl.BlockSpec((REP, HEAD_OUT_PAD), lambda r: (0, 0)),
                pl.BlockSpec((1, HEAD_OUT_PAD), lambda r: (0, 0)),
            ],
            out_specs=pl.BlockSpec((ROI_TILE, HEAD_OUT_PAD), lambda r: (r, 0)),
        ),
        compiler_params=pltpu.CompilerParams(
            dimension_semantics=("parallel",)),
    )(x, params['fc6_b'], w6, w7, params['fc7_b'], wout, bout)[
        :, :HEAD_OUT] if False else pl.pallas_call(
        _box_head_kernel,
        out_shape=jax.ShapeDtypeStruct((R, HEAD_OUT_PAD), jnp.float32),
        grid_spec=pltpu.PrefetchScalarGridSpec(
            num_scalar_prefetch=0,
            grid=(R // ROI_TILE,),
            in_specs=[
                pl.BlockSpec((ROI_TILE, IN_DIM), lambda r: (r, 0)),
                pl.BlockSpec((IN_DIM, REP), lambda r: (0, 0)),
                pl.BlockSpec((1, REP), lambda r: (0, 0)),
                pl.BlockSpec((REP, REP), lambda r: (0, 0)),
                pl.BlockSpec((1, REP), lambda r: (0, 0)),
                pl.BlockSpec((REP, HEAD_OUT_PAD), lambda r: (0, 0)),
                pl.BlockSpec((1, HEAD_OUT_PAD), lambda r: (0, 0)),
            ],
            out_specs=pl.BlockSpec((ROI_TILE, HEAD_OUT_PAD), lambda r: (r, 0)),
        ),
        compiler_params=pltpu.CompilerParams(
            dimension_semantics=("parallel",)),
    )(x, w6, params['fc6_b'], w7, params['fc7_b'], wout, bout)

    class_logits = out[:, :NUM_CLASSES]
    box_regression = out[:, NUM_CLASSES:HEAD_OUT]
    return class_logits, box_regression


# ----------------------------------------------------------------------------
# Deterministic parameter init mirroring Network._init_weights().
# ----------------------------------------------------------------------------
def init_params(key):
    ks = jax.random.split(key, 8)

    def kaiming_uniform(k, fan_in, shape):
        # nn.init.kaiming_uniform_(w, a=1): bound = sqrt(6/((1+1)*fan_in))
        bound = jnp.sqrt(3.0 / fan_in)
        return jax.random.uniform(k, shape, jnp.float32, -bound, bound)

    return {
        # RPN head (normal std=0.01, bias 0) -- HWIO layout
        'rpn_conv_w': 0.01 * jax.random.normal(ks[0], (3, 3, C, C), jnp.float32),
        'rpn_conv_b': jnp.zeros((1, C), jnp.float32),
        'rpn_cls_w': 0.01 * jax.random.normal(ks[1], (C, A), jnp.float32),
        'rpn_cls_b': jnp.zeros((1, A), jnp.float32),
        'rpn_box_w': 0.01 * jax.random.normal(ks[2], (C, 4 * A), jnp.float32),
        'rpn_box_b': jnp.zeros((1, 4 * A), jnp.float32),
        # Box head MLP (kaiming_uniform a=1, bias 0) -- (in, out) layout
        'fc6_w': kaiming_uniform(ks[3], IN_DIM, (IN_DIM, REP)),
        'fc6_b': jnp.zeros((1, REP), jnp.float32),
        'fc7_w': kaiming_uniform(ks[4], REP, (REP, REP)),
        'fc7_b': jnp.zeros((1, REP), jnp.float32),
        # cls_score: normal std=0.01 ; bbox_pred: normal std=0.001 ; bias 0
        'cls_w': 0.01 * jax.random.normal(ks[5], (REP, NUM_CLASSES), jnp.float32),
        'cls_b': jnp.zeros((1, NUM_CLASSES), jnp.float32),
        'bbox_w': 0.001 * jax.random.normal(
            ks[6], (REP, 4 * NUM_BBOX_REG_CLASSES), jnp.float32),
        'bbox_b': jnp.zeros((1, 4 * NUM_BBOX_REG_CLASSES), jnp.float32),
    }


# ----------------------------------------------------------------------------
# "Forward": RPN head over each (synthetic) FPN level + R-CNN box head over
# (synthetic) pooled ROI features.
# TODO(synk): ResNet-FPN backbone, anchor generation, proposal NMS, ROI-Align,
# target sampling/topk/kthvalue stats and the loss / post-processing branches
# are data-dependent library ops with no static Pallas equivalent; FPN features
# and pooled ROI features are fed in directly instead.
# ----------------------------------------------------------------------------
@functools.partial(jax.jit, static_argnums=())
def network_heads(features, roi_features, params):
    rpn_cls_logits = []
    rpn_bbox_preds = []
    for feat in features:
        cls_l, box_p = rpn_head(feat, params)
        rpn_cls_logits.append(cls_l)
        rpn_bbox_preds.append(box_p)
    class_logits, box_regression = box_head(roi_features, params)
    return rpn_cls_logits, rpn_bbox_preds, class_logits, box_regression


if __name__ == "__main__":
    root = jax.random.PRNGKey(0)
    kp, kf0, kf1, kr = jax.random.split(root, 4)

    params = init_params(kp)

    # Synthetic FPN feature levels (stand-in for self.backbone(images)).
    features = (
        jax.random.normal(kf0, (BATCH, FPN_SPATIALS[0], FPN_SPATIALS[0], C),
                          jnp.float32),
        jax.random.normal(kf1, (BATCH, FPN_SPATIALS[1], FPN_SPATIALS[1], C),
                          jnp.float32),
    )
    # Synthetic pooled ROI features (stand-in for self.rcnn_roi_pooler output).
    roi_features = jax.random.normal(kr, (NUM_ROIS, P, P, C), jnp.float32)

    rpn_cls, rpn_box, cls_logits, box_reg = network_heads(
        features, roi_features, params)
    jax.block_until_ready((rpn_cls, rpn_box, cls_logits, box_reg))

    # Light shape sanity checks.
    assert rpn_cls[0].shape == (BATCH, FPN_SPATIALS[0], FPN_SPATIALS[0], A)
    assert rpn_box[1].shape == (BATCH, FPN_SPATIALS[1], FPN_SPATIALS[1], 4 * A)
    assert cls_logits.shape == (NUM_ROIS, NUM_CLASSES)
    assert box_reg.shape == (NUM_ROIS, 4 * NUM_BBOX_REG_CLASSES)

    print("KERNEL_OK")
</pallas_src>

<mosaic_0001>
module attributes {stable_mosaic.version = 11 : i64} {
  func.func @_rpn_head_kernel(%arg0: i32, %arg1: memref<1x8x8x128xbf16, #tpu.memory_space<vmem>>, %arg2: memref<1152x128xbf16, #tpu.memory_space<vmem>>, %arg3: memref<1x128xf32, #tpu.memory_space<vmem>>, %arg4: memref<128x128xbf16, #tpu.memory_space<vmem>>, %arg5: memref<1x128xf32, #tpu.memory_space<vmem>>, %arg6: memref<1x8x8x128xf32, #tpu.memory_space<vmem>>, %arg7: memref<10x10x128xbf16, #tpu.memory_space<vmem>>) attributes {dimension_semantics = [#tpu.dimension_semantics<parallel>], iteration_bounds = array<i64: 2>, scalar_prefetch = 0 : i64, scratch_operands = 1 : i64, tpu.core_type = #tpu.core_type<tc>, window_params = [{transform_indices = @transform_0, window_bounds = array<i64: 1, 8, 8, 128>}, {pipeline_mode = #tpu.pipeline_mode<synchronous>, transform_indices = @transform_1, window_bounds = array<i64: 1152, 128>}, {pipeline_mode = #tpu.pipeline_mode<synchronous>, transform_indices = @transform_2, window_bounds = array<i64: 1, 128>}, {pipeline_mode = #tpu.pipeline_mode<synchronous>, transform_indices = @transform_3, window_bounds = array<i64: 128, 128>}, {pipeline_mode = #tpu.pipeline_mode<synchronous>, transform_indices = @transform_4, window_bounds = array<i64: 1, 128>}, {transform_indices = @transform_5, window_bounds = array<i64: 1, 8, 8, 128>}]} {
    %cst = arith.constant 0.000000e+00 : bf16
    %0 = vector.broadcast %cst : bf16 to vector<10x10x128xbf16>
    %c0 = arith.constant 0 : index
    %c0_0 = arith.constant 0 : index
    %c0_1 = arith.constant 0 : index
    %1 = vector.load %arg7[%c0, %c0_0, %c0_1] : memref<10x10x128xbf16, #tpu.memory_space<vmem>>, vector<10x10x128xbf16>
    tpu.vector_store %arg7[%c0, %c0_0, %c0_1], %0 {strides = array<i32>} : memref<10x10x128xbf16, #tpu.memory_space<vmem>>, vector<10x10x128xbf16>,
    %c0_2 = arith.constant 0 : index
    %c0_3 = arith.constant 0 : index
    %c0_4 = arith.constant 0 : index
    %c0_5 = arith.constant 0 : index
    %2 = vector.load %arg1[%c0_2, %c0_3, %c0_4, %c0_5] : memref<1x8x8x128xbf16, #tpu.memory_space<vmem>>, vector<1x8x8x128xbf16>
    %3 = vector.shape_cast %2 : vector<1x8x8x128xbf16> to vector<8x8x128xbf16>
    %c1 = arith.constant 1 : index
    %c1_6 = arith.constant 1 : index
    %c0_7 = arith.constant 0 : index
    %4 = vector.load %arg7[%c1, %c1_6, %c0_7] : memref<10x10x128xbf16, #tpu.memory_space<vmem>>, vector<8x8x128xbf16>
    tpu.vector_store %arg7[%c1, %c1_6, %c0_7], %3 {strides = array<i32>} : memref<10x10x128xbf16, #tpu.memory_space<vmem>>, vector<8x8x128xbf16>,
    %c0_8 = arith.constant 0 : index
    %c0_9 = arith.constant 0 : index
    %c0_10 = arith.constant 0 : index
    %5 = vector.load %arg7[%c0_8, %c0_9, %c0_10] : memref<10x10x128xbf16, #tpu.memory_space<vmem>>, vector<10x10x128xbf16>
    %6 = vector.extract_strided_slice %5 {offsets = [0, 0, 0], sizes = [8, 8, 128], strides = [1, 1, 1]} : vector<10x10x128xbf16> to vector<8x8x128xbf16>
    %7 = vector.extract_strided_slice %5 {offsets = [0, 1, 0], sizes = [8, 8, 128], strides = [1, 1, 1]} : vector<10x10x128xbf16> to vector<8x8x128xbf16>
    %8 = vector.extract_strided_slice %5 {offsets = [0, 2, 0], sizes = [8, 8, 128], strides = [1, 1, 1]} : vector<10x10x128xbf16> to vector<8x8x128xbf16>
    %9 = vector.extract_strided_slice %5 {offsets = [1, 0, 0], sizes = [8, 8, 128], strides = [1, 1, 1]} : vector<10x10x128xbf16> to vector<8x8x128xbf16>
    %10 = vector.extract_strided_slice %5 {offsets = [1, 1, 0], sizes = [8, 8, 128], strides = [1, 1, 1]} : vector<10x10x128xbf16> to vector<8x8x128xbf16>
    %11 = vector.extract_strided_slice %5 {offsets = [1, 2, 0], sizes = [8, 8, 128], strides = [1, 1, 1]} : vector<10x10x128xbf16> to vector<8x8x128xbf16>
    %12 = vector.extract_strided_slice %5 {offsets = [2, 0, 0], sizes = [8, 8, 128], strides = [1, 1, 1]} : vector<10x10x128xbf16> to vector<8x8x128xbf16>
    %13 = vector.extract_strided_slice %5 {offsets = [2, 1, 0], sizes = [8, 8, 128], strides = [1, 1, 1]} : vector<10x10x128xbf16> to vector<8x8x128xbf16>
    %14 = vector.extract_strided_slice %5 {offsets = [2, 2, 0], sizes = [8, 8, 128], strides = [1, 1, 1]} : vector<10x10x128xbf16> to vector<8x8x128xbf16>
    %15 = tpu.concatenate %6, %7, %8, %9, %10, %11, %12, %13, %14 in 2 : vector<8x8x128xbf16>, vector<8x8x128xbf16>, vector<8x8x128xbf16>, vector<8x8x128xbf16>, vector<8x8x128xbf16>, vector<8x8x128xbf16>, vector<8x8x128xbf16>, vector<8x8x128xbf16>, vector<8x8x128xbf16> -> vector<8x8x1152xbf16>
    %c0_11 = arith.constant 0 : index
    %c0_12 = arith.constant 0 : index
    %16 = vector.load %arg2[%c0_11, %c0_12] : memref<1152x128xbf16, #tpu.memory_space<vmem>>, vector<1152x128xbf16>
    "tpu.trace_start"() <{level = 10 : i32, message = "hwk,kc->hwc"}> : () -> ()
    %cst_13 = arith.constant dense<0.000000e+00> : vector<8x8x128xf32>
    %17 = tpu.matmul %15, %16, %cst_13 {dimension_numbers = #tpu.dot_dimension_numbers<[2], [0], [0, 1], [1], [0, 0, 0, 1, 1, 1], [], []>} : vector<8x8x1152xbf16>, vector<1152x128xbf16>, vector<8x8x128xf32> -> vector<8x8x128xf32>
    "tpu.trace_stop"() : () -> ()
    %c0_14 = arith.constant 0 : index
    %c0_15 = arith.constant 0 : index
    %18 = vector.load %arg3[%c0_14, %c0_15] : memref<1x128xf32, #tpu.memory_space<vmem>>, vector<1x128xf32>
    %19 = vector.shape_cast %18 : vector<1x128xf32> to vector<1x1x128xf32>
    %20 = vector.broadcast %19 : vector<1x1x128xf32> to vector<8x8x128xf32>
    %21 = arith.addf %17, %20 : vector<8x8x128xf32>
    %cst_16 = arith.constant 0.000000e+00 : f32
    %22 = vector.broadcast %cst_16 : f32 to vector<8x8x128xf32>
    %23 = arith.maximumf %21, %22 : vector<8x8x128xf32>
    %24 = arith.truncf %23 : vector<8x8x128xf32> to vector<8x8x128xbf16>
    %c0_17 = arith.constant 0 : index
    %c0_18 = arith.constant 0 : index
    %25 = vector.load %arg4[%c0_17, %c0_18] : memref<128x128xbf16, #tpu.memory_space<vmem>>, vector<128x128xbf16>
    "tpu.trace_start"() <{level = 10 : i32, message = "hwc,cd->hwd"}> : () -> ()
    %cst_19 = arith.constant dense<0.000000e+00> : vector<8x8x128xf32>
    %26 = tpu.matmul %24, %25, %cst_19 {dimension_numbers = #tpu.dot_dimension_numbers<[2], [0], [0, 1], [1], [0, 0, 0, 1, 1, 1], [], []>} : vector<8x8x128xbf16>, vector<128x128xbf16>, vector<8x8x128xf32> -> vector<8x8x128xf32>
    "tpu.trace_stop"() : () -> ()
    %c0_20 = arith.constant 0 : index
    %c0_21 = arith.constant 0 : index
    %27 = vector.load %arg5[%c0_20, %c0_21] : memref<1x128xf32, #tpu.memory_space<vmem>>, vector<1x128xf32>
    %28 = vector.shape_cast %27 : vector<1x128xf32> to vector<1x1x128xf32>
    %29 = vector.broadcast %28 : vector<1x1x128xf32> to vector<8x8x128xf32>
    %30 = arith.addf %26, %29 : vector<8x8x128xf32>
    %c0_22 = arith.constant 0 : index
    %c0_23 = arith.constant 0 : index
    %c0_24 = arith.constant 0 : index
    %c0_25 = arith.constant 0 : index
    %31 = vector.load %arg6[%c0_22, %c0_23, %c0_24, %c0_25] : memref<1x8x8x128xf32, #tpu.memory_space<vmem>>, vector<1x8x8x128xf32>
    %32 = vector.shape_cast %31 : vector<1x8x8x128xf32> to vector<8x8x128xf32>
    %33 = vector.shape_cast %30 : vector<8x8x128xf32> to vector<1x8x8x128xf32>
    tpu.vector_store %arg6[%c0_22, %c0_23, %c0_24, %c0_25], %33 {strides = array<i32>} : memref<1x8x8x128xf32, #tpu.memory_space<vmem>>, vector<1x8x8x128xf32>,
    return
  }
  func.func @transform_0(%arg0: i32) -> (i32, i32, i32, i32) {
    %c0_i32 = arith.constant 0 : i32
    %c0_i32_0 = arith.constant 0 : i32
    %c0_i32_1 = arith.constant 0 : i32
    %c0_i32_2 = arith.constant 0 : i32
    return %arg0, %c0_i32, %c0_i32_0, %c0_i32_1 : i32, i32, i32, i32
  }
  func.func @transform_1(%arg0: i32) -> (i32, i32) {
    %c0_i32 = arith.constant 0 : i32
    %c0_i32_0 = arith.constant 0 : i32
    %c0_i32_1 = arith.constant 0 : i32
    return %c0_i32, %c0_i32_0 : i32, i32
  }
  func.func @transform_2(%arg0: i32) -> (i32, i32) {
    %c0_i32 = arith.constant 0 : i32
    %c0_i32_0 = arith.constant 0 : i32
    %c0_i32_1 = arith.constant 0 : i32
    return %c0_i32, %c0_i32_0 : i32, i32
  }
  func.func @transform_3(%arg0: i32) -> (i32, i32) {
    %c0_i32 = arith.constant 0 : i32
    %c0_i32_0 = arith.constant 0 : i32
    %c0_i32_1 = arith.constant 0 : i32
    return %c0_i32, %c0_i32_0 : i32, i32
  }
  func.func @transform_4(%arg0: i32) -> (i32, i32) {
    %c0_i32 = arith.constant 0 : i32
    %c0_i32_0 = arith.constant 0 : i32
    %c0_i32_1 = arith.constant 0 : i32
    return %c0_i32, %c0_i32_0 : i32, i32
  }
  func.func @transform_5(%arg0: i32) -> (i32, i32, i32, i32) {
    %c0_i32 = arith.constant 0 : i32
    %c0_i32_0 = arith.constant 0 : i32
    %c0_i32_1 = arith.constant 0 : i32
    %c0_i32_2 = arith.constant 0 : i32
    return %arg0, %c0_i32, %c0_i32_0, %c0_i32_1 : i32, i32, i32, i32
  }
}

module attributes {stable_mosaic.version = 11 : i64} {
  func.func @_rpn_head_kernel(%arg0: i32, %arg1: memref<1x16x16x128xbf16, #tpu.memory_space<vmem>>, %arg2: memref<1152x128xbf16, #tpu.memory_space<vmem>>, %arg3: memref<1x128xf32, #tpu.memory_space<vmem>>, %arg4: memref<128x128xbf16, #tpu.memory_space<vmem>>, %arg5: memref<1x128xf32, #tpu.memory_space<vmem>>, %arg6: memref<1x16x16x128xf32, #tpu.memory_space<vmem>>, %arg7: memref<18x18x128xbf16, #tpu.memory_space<vmem>>) attributes {dimension_semantics = [#tpu.dimension_semantics<parallel>], iteration_bounds = array<i64: 2>, scalar_prefetch = 0 : i64, scratch_operands = 1 : i64, tpu.core_type = #tpu.core_type<tc>, window_params = [{transform_indices = @transform_0, window_bounds = array<i64: 1, 16, 16, 128>}, {pipeline_mode = #tpu.pipeline_mode<synchronous>, transform_indices = @transform_1, window_bounds = array<i64: 1152, 128>}, {pipeline_mode = #tpu.pipeline_mode<synchronous>, transform_indices = @transform_2, window_bounds = array<i64: 1, 128>}, {pipeline_mode = #tpu.pipeline_mode<synchronous>, transform_indices = @transform_3, window_bounds = array<i64: 128, 128>}, {pipeline_mode = #tpu.pipeline_mode<synchronous>, transform_indices = @transform_4, window_bounds = array<i64: 1, 128>}, {transform_indices = @transform_5, window_bounds = array<i64: 1, 16, 16, 128>}]} {
    %cst = arith.constant 0.000000e+00 : bf16
    %0 = vector.broadcast %cst : bf16 to vector<18x18x128xbf16>
    %c0 = arith.constant 0 : index
    %c0_0 = arith.constant 0 : index
    %c0_1 = arith.constant 0 : index
    %1 = vector.load %arg7[%c0, %c0_0, %c0_1] : memref<18x18x128xbf16, #tpu.memory_space<vmem>>, vector<18x18x128xbf16>
    tpu.vector_store %arg7[%c0, %c0_0, %c0_1], %0 {strides = array<i32>} : memref<18x18x128xbf16, #tpu.memory_space<vmem>>, vector<18x18x128xbf16>,
    %c0_2 = arith.constant 0 : index
    %c0_3 = arith.constant 0 : index
    %c0_4 = arith.constant 0 : index
    %c0_5 = arith.constant 0 : index
    %2 = vector.load %arg1[%c0_2, %c0_3, %c0_4, %c0_5] : memref<1x16x16x128xbf16, #tpu.memory_space<vmem>>, vector<1x16x16x128xbf16>
    %3 = vector.shape_cast %2 : vector<1x16x16x128xbf16> to vector<16x16x128xbf16>
    %c1 = arith.constant 1 : index
    %c1_6 = arith.constant 1 : index
    %c0_7 = arith.constant 0 : index
    %4 = vector.load %arg7[%c1, %c1_6, %c0_7] : memref<18x18x128xbf16, #tpu.memory_space<vmem>>, vector<16x16x128xbf16>
    tpu.vector_store %arg7[%c1, %c1_6, %c0_7], %3 {strides = array<i32>} : memref<18x18x128xbf16, #tpu.memory_space<vmem>>, vector<16x16x128xbf16>,
    %c0_8 = arith.constant 0 : index
    %c0_9 = arith.constant 0 : index
    %c0_10 = arith.constant 0 : index
    %5 = vector.load %arg7[%c0_8, %c0_9, %c0_10] : memref<18x18x128xbf16, #tpu.memory_space<vmem>>, vector<18x18x128xbf16>
    %6 = vector.extract_strided_slice %5 {offsets = [0, 0, 0], sizes = [16, 16, 128], strides = [1, 1, 1]} : vector<18x18x128xbf16> to vector<16x16x128xbf16>
    %7 = vector.extract_strided_slice %5 {offsets = [0, 1, 0], sizes = [16, 16, 128], strides = [1, 1, 1]} : vector<18x18x128xbf16> to vector<16x16x128xbf16>
    %8 = vector.extract_strided_slice %5 {offsets = [0, 2, 0], sizes = [16, 16, 128], strides = [1, 1, 1]} : vector<18x18x128xbf16> to vector<16x16x128xbf16>
    %9 = vector.extract_strided_slice %5 {offsets = [1, 0, 0], sizes = [16, 16, 128], strides = [1, 1, 1]} : vector<18x18x128xbf16> to vector<16x16x128xbf16>
    %10 = vector.extract_strided_slice %5 {offsets = [1, 1, 0], sizes = [16, 16, 128], strides = [1, 1, 1]} : vector<18x18x128xbf16> to vector<16x16x128xbf16>
    %11 = vector.extract_strided_slice %5 {offsets = [1, 2, 0], sizes = [16, 16, 128], strides = [1, 1, 1]} : vector<18x18x128xbf16> to vector<16x16x128xbf16>
    %12 = vector.extract_strided_slice %5 {offsets = [2, 0, 0], sizes = [16, 16, 128], strides = [1, 1, 1]} : vector<18x18x128xbf16> to vector<16x16x128xbf16>
    %13 = vector.extract_strided_slice %5 {offsets = [2, 1, 0], sizes = [16, 16, 128], strides = [1, 1, 1]} : vector<18x18x128xbf16> to vector<16x16x128xbf16>
    %14 = vector.extract_strided_slice %5 {offsets = [2, 2, 0], sizes = [16, 16, 128], strides = [1, 1, 1]} : vector<18x18x128xbf16> to vector<16x16x128xbf16>
    %15 = tpu.concatenate %6, %7, %8, %9, %10, %11, %12, %13, %14 in 2 : vector<16x16x128xbf16>, vector<16x16x128xbf16>, vector<16x16x128xbf16>, vector<16x16x128xbf16>, vector<16x16x128xbf16>, vector<16x16x128xbf16>, vector<16x16x128xbf16>, vector<16x16x128xbf16>, vector<16x16x128xbf16> -> vector<16x16x1152xbf16>
    %c0_11 = arith.constant 0 : index
    %c0_12 = arith.constant 0 : index
    %16 = vector.load %arg2[%c0_11, %c0_12] : memref<1152x128xbf16, #tpu.memory_space<vmem>>, vector<1152x128xbf16>
    "tpu.trace_start"() <{level = 10 : i32, message = "hwk,kc->hwc"}> : () -> ()
    %cst_13 = arith.constant dense<0.000000e+00> : vector<16x16x128xf32>
    %17 = tpu.matmul %15, %16, %cst_13 {dimension_numbers = #tpu.dot_dimension_numbers<[2], [0], [0, 1], [1], [0, 0, 0, 1, 1, 1], [], []>} : vector<16x16x1152xbf16>, vector<1152x128xbf16>, vector<16x16x128xf32> -> vector<16x16x128xf32>
    "tpu.trace_stop"() : () -> ()
    %c0_14 = arith.constant 0 : index
    %c0_15 = arith.constant 0 : index
    %18 = vector.load %arg3[%c0_14, %c0_15] : memref<1x128xf32, #tpu.memory_space<vmem>>, vector<1x128xf32>
    %19 = vector.shape_cast %18 : vector<1x128xf32> to vector<1x1x128xf32>
    %20 = vector.broadcast %19 : vector<1x1x128xf32> to vector<16x16x128xf32>
    %21 = arith.addf %17, %20 : vector<16x16x128xf32>
    %cst_16 = arith.constant 0.000000e+00 : f32
    %22 = vector.broadcast %cst_16 : f32 to vector<16x16x128xf32>
    %23 = arith.maximumf %21, %22 : vector<16x16x128xf32>
    %24 = arith.truncf %23 : vector<16x16x128xf32> to vector<16x16x128xbf16>
    %c0_17 = arith.constant 0 : index
    %c0_18 = arith.constant 0 : index
    %25 = vector.load %arg4[%c0_17, %c0_18] : memref<128x128xbf16, #tpu.memory_space<vmem>>, vector<128x128xbf16>
    "tpu.trace_start"() <{level = 10 : i32, message = "hwc,cd->hwd"}> : () -> ()
    %cst_19 = arith.constant dense<0.000000e+00> : vector<16x16x128xf32>
    %26 = tpu.matmul %24, %25, %cst_19 {dimension_numbers = #tpu.dot_dimension_numbers<[2], [0], [0, 1], [1], [0, 0, 0, 1, 1, 1], [], []>} : vector<16x16x128xbf16>, vector<128x128xbf16>, vector<16x16x128xf32> -> vector<16x16x128xf32>
    "tpu.trace_stop"() : () -> ()
    %c0_20 = arith.constant 0 : index
    %c0_21 = arith.constant 0 : index
    %27 = vector.load %arg5[%c0_20, %c0_21] : memref<1x128xf32, #tpu.memory_space<vmem>>, vector<1x128xf32>
    %28 = vector.shape_cast %27 : vector<1x128xf32> to vector<1x1x128xf32>
    %29 = vector.broadcast %28 : vector<1x1x128xf32> to vector<16x16x128xf32>
    %30 = arith.addf %26, %29 : vector<16x16x128xf32>
    %c0_22 = arith.constant 0 : index
    %c0_23 = arith.constant 0 : index
    %c0_24 = arith.constant 0 : index
    %c0_25 = arith.constant 0 : index
    %31 = vector.load %arg6[%c0_22, %c0_23, %c0_24, %c0_25] : memref<1x16x16x128xf32, #tpu.memory_space<vmem>>, vector<1x16x16x128xf32>
    %32 = vector.shape_cast %31 : vector<1x16x16x128xf32> to vector<16x16x128xf32>
    %33 = vector.shape_cast %30 : vector<16x16x128xf32> to vector<1x16x16x128xf32>
    tpu.vector_store %arg6[%c0_22, %c0_23, %c0_24, %c0_25], %33 {strides = array<i32>} : memref<1x16x16x128xf32, #tpu.memory_space<vmem>>, vector<1x16x16x128xf32>,
    return
  }
  func.func @transform_0(%arg0: i32) -> (i32, i32, i32, i32) {
    %c0_i32 = arith.constant 0 : i32
    %c0_i32_0 = arith.constant 0 : i32
    %c0_i32_1 = arith.constant 0 : i32
    %c0_i32_2 = arith.constant 0 : i32
    return %arg0, %c0_i32, %c0_i32_0, %c0_i32_1 : i32, i32, i32, i32
  }
  func.func @transform_1(%arg0: i32) -> (i32, i32) {
    %c0_i32 = arith.constant 0 : i32
    %c0_i32_0 = arith.constant 0 : i32
    %c0_i32_1 = arith.constant 0 : i32
    return %c0_i32, %c0_i32_0 : i32, i32
  }
  func.func @transform_2(%arg0: i32) -> (i32, i32) {
    %c0_i32 = arith.constant 0 : i32
    %c0_i32_0 = arith.constant 0 : i32
    %c0_i32_1 = arith.constant 0 : i32
    return %c0_i32, %c0_i32_0 : i32, i32
  }
  func.func @transform_3(%arg0: i32) -> (i32, i32) {
    %c0_i32 = arith.constant 0 : i32
    %c0_i32_0 = arith.constant 0 : i32
    %c0_i32_1 = arith.constant 0 : i32
    return %c0_i32, %c0_i32_0 : i32, i32
  }
  func.func @transform_4(%arg0: i32) -> (i32, i32) {
    %c0_i32 = arith.constant 0 : i32
    %c0_i32_0 = arith.constant 0 : i32
    %c0_i32_1 = arith.constant 0 : i32
    return %c0_i32, %c0_i32_0 : i32, i32
  }
  func.func @transform_5(%arg0: i32) -> (i32, i32, i32, i32) {
    %c0_i32 = arith.constant 0 : i32
    %c0_i32_0 = arith.constant 0 : i32
    %c0_i32_1 = arith.constant 0 : i32
    %c0_i32_2 = arith.constant 0 : i32
    return %arg0, %c0_i32, %c0_i32_0, %c0_i32_1 : i32, i32, i32, i32
  }
}

module attributes {stable_mosaic.version = 11 : i64} {
  func.func @_box_head_kernel(%arg0: i32, %arg1: memref<32x2048xbf16, #tpu.memory_space<vmem>>, %arg2: memref<2048x128xbf16, #tpu.memory_space<vmem>>, %arg3: memref<1x128xf32, #tpu.memory_space<vmem>>, %arg4: memref<128x128xbf16, #tpu.memory_space<vmem>>, %arg5: memref<1x128xf32, #tpu.memory_space<vmem>>, %arg6: memref<128x128xbf16, #tpu.memory_space<vmem>>, %arg7: memref<1x128xf32, #tpu.memory_space<vmem>>, %arg8: memref<32x128xf32, #tpu.memory_space<vmem>>) attributes {dimension_semantics = [#tpu.dimension_semantics<parallel>], iteration_bounds = array<i64: 2>, scalar_prefetch = 0 : i64, scratch_operands = 0 : i64, tpu.core_type = #tpu.core_type<tc>, window_params = [{transform_indices = @transform_0, window_bounds = array<i64: 32, 2048>}, {pipeline_mode = #tpu.pipeline_mode<synchronous>, transform_indices = @transform_1, window_bounds = array<i64: 2048, 128>}, {pipeline_mode = #tpu.pipeline_mode<synchronous>, transform_indices = @transform_2, window_bounds = array<i64: 1, 128>}, {pipeline_mode = #tpu.pipeline_mode<synchronous>, transform_indices = @transform_3, window_bounds = array<i64: 128, 128>}, {pipeline_mode = #tpu.pipeline_mode<synchronous>, transform_indices = @transform_4, window_bounds = array<i64: 1, 128>}, {pipeline_mode = #tpu.pipeline_mode<synchronous>, transform_indices = @transform_5, window_bounds = array<i64: 128, 128>}, {pipeline_mode = #tpu.pipeline_mode<synchronous>, transform_indices = @transform_6, window_bounds = array<i64: 1, 128>}, {transform_indices = @transform_7, window_bounds = array<i64: 32, 128>}]} {
    %c0 = arith.constant 0 : index
    %c0_0 = arith.constant 0 : index
    %0 = vector.load %arg1[%c0, %c0_0] : memref<32x2048xbf16, #tpu.memory_space<vmem>>, vector<32x2048xbf16>
    %c0_1 = arith.constant 0 : index
    %c0_2 = arith.constant 0 : index
    %1 = vector.load %arg2[%c0_1, %c0_2] : memref<2048x128xbf16, #tpu.memory_space<vmem>>, vector<2048x128xbf16>
    %cst = arith.constant dense<0.000000e+00> : vector<32x128xf32>
    %2 = tpu.matmul %0, %1, %cst {dimension_numbers = #tpu.dot_dimension_numbers<[1], [0], [0], [1], [0, 0, 1, 1], [], []>} : vector<32x2048xbf16>, vector<2048x128xbf16>, vector<32x128xf32> -> vector<32x128xf32>
    %c0_3 = arith.constant 0 : index
    %c0_4 = arith.constant 0 : index
    %3 = vector.load %arg3[%c0_3, %c0_4] : memref<1x128xf32, #tpu.memory_space<vmem>>, vector<1x128xf32>
    %4 = vector.broadcast %3 : vector<1x128xf32> to vector<32x128xf32>
    %5 = arith.addf %2, %4 : vector<32x128xf32>
    %cst_5 = arith.constant 0.000000e+00 : f32
    %6 = vector.broadcast %cst_5 : f32 to vector<32x128xf32>
    %7 = arith.maximumf %5, %6 : vector<32x128xf32>
    %8 = arith.truncf %7 : vector<32x128xf32> to vector<32x128xbf16>
    %c0_6 = arith.constant 0 : index
    %c0_7 = arith.constant 0 : index
    %9 = vector.load %arg4[%c0_6, %c0_7] : memref<128x128xbf16, #tpu.memory_space<vmem>>, vector<128x128xbf16>
    %cst_8 = arith.constant dense<0.000000e+00> : vector<32x128xf32>
    %10 = tpu.matmul %8, %9, %cst_8 {dimension_numbers = #tpu.dot_dimension_numbers<[1], [0], [0], [1], [0, 0, 1, 1], [], []>} : vector<32x128xbf16>, vector<128x128xbf16>, vector<32x128xf32> -> vector<32x128xf32>
    %c0_9 = arith.constant 0 : index
    %c0_10 = arith.constant 0 : index
    %11 = vector.load %arg5[%c0_9, %c0_10] : memref<1x128xf32, #tpu.memory_space<vmem>>, vector<1x128xf32>
    %12 = vector.broadcast %11 : vector<1x128xf32> to vector<32x128xf32>
    %13 = arith.addf %10, %12 : vector<32x128xf32>
    %cst_11 = arith.constant 0.000000e+00 : f32
    %14 = vector.broadcast %cst_11 : f32 to vector<32x128xf32>
    %15 = arith.maximumf %13, %14 : vector<32x128xf32>
    %16 = arith.truncf %15 : vector<32x128xf32> to vector<32x128xbf16>
    %c0_12 = arith.constant 0 : index
    %c0_13 = arith.constant 0 : index
    %17 = vector.load %arg6[%c0_12, %c0_13] : memref<128x128xbf16, #tpu.memory_space<vmem>>, vector<128x128xbf16>
    %cst_14 = arith.constant dense<0.000000e+00> : vector<32x128xf32>
    %18 = tpu.matmul %16, %17, %cst_14 {dimension_numbers = #tpu.dot_dimension_numbers<[1], [0], [0], [1], [0, 0, 1, 1], [], []>} : vector<32x128xbf16>, vector<128x128xbf16>, vector<32x128xf32> -> vector<32x128xf32>
    %c0_15 = arith.constant 0 : index
    %c0_16 = arith.constant 0 : index
    %19 = vector.load %arg7[%c0_15, %c0_16] : memref<1x128xf32, #tpu.memory_space<vmem>>, vector<1x128xf32>
    %20 = vector.broadcast %19 : vector<1x128xf32> to vector<32x128xf32>
    %21 = arith.addf %18, %20 : vector<32x128xf32>
    %c0_17 = arith.constant 0 : index
    %c0_18 = arith.constant 0 : index
    %22 = vector.load %arg8[%c0_17, %c0_18] : memref<32x128xf32, #tpu.memory_space<vmem>>, vector<32x128xf32>
    tpu.vector_store %arg8[%c0_17, %c0_18], %21 {strides = array<i32>} : memref<32x128xf32, #tpu.memory_space<vmem>>, vector<32x128xf32>,
    return
  }
  func.func @transform_0(%arg0: i32) -> (i32, i32) {
    %c0_i32 = arith.constant 0 : i32
    %c0_i32_0 = arith.constant 0 : i32
    return %arg0, %c0_i32 : i32, i32
  }
  func.func @transform_1(%arg0: i32) -> (i32, i32) {
    %c0_i32 = arith.constant 0 : i32
    %c0_i32_0 = arith.constant 0 : i32
    %c0_i32_1 = arith.constant 0 : i32
    return %c0_i32, %c0_i32_0 : i32, i32
  }
  func.func @transform_2(%arg0: i32) -> (i32, i32) {
    %c0_i32 = arith.constant 0 : i32
    %c0_i32_0 = arith.constant 0 : i32
    %c0_i32_1 = arith.constant 0 : i32
    return %c0_i32, %c0_i32_0 : i32, i32
  }
  func.func @transform_3(%arg0: i32) -> (i32, i32) {
    %c0_i32 = arith.constant 0 : i32
    %c0_i32_0 = arith.constant 0 : i32
    %c0_i32_1 = arith.constant 0 : i32
    return %c0_i32, %c0_i32_0 : i32, i32
  }
  func.func @transform_4(%arg0: i32) -> (i32, i32) {
    %c0_i32 = arith.constant 0 : i32
    %c0_i32_0 = arith.constant 0 : i32
    %c0_i32_1 = arith.constant 0 : i32
    return %c0_i32, %c0_i32_0 : i32, i32
  }
  func.func @transform_5(%arg0: i32) -> (i32, i32) {
    %c0_i32 = arith.constant 0 : i32
    %c0_i32_0 = arith.constant 0 : i32
    %c0_i32_1 = arith.constant 0 : i32
    return %c0_i32, %c0_i32_0 : i32, i32
  }
  func.func @transform_6(%arg0: i32) -> (i32, i32) {
    %c0_i32 = arith.constant 0 : i32
    %c0_i32_0 = arith.constant 0 : i32
    %c0_i32_1 = arith.constant 0 : i32
    return %c0_i32, %c0_i32_0 : i32, i32
  }
  func.func @transform_7(%arg0: i32) -> (i32, i32) {
    %c0_i32 = arith.constant 0 : i32
    %c0_i32_0 = arith.constant 0 : i32
    return %arg0, %c0_i32 : i32, i32
  }
}

</mosaic_0001>

<bundles_post_ra>
// kernel: network_heads.4
= control target key start
LH: loop header
LB: loop body
LE: loop exit
PB: predicated region body
PF: predicated region fallthrough
CT: control target
= control target key end

     0   :  { %s2272_s18 = smov 0   ;;  %s2766_s0 = inlined_call_operand.vmem [shape: bf16[2,8,8,128], index: 0, kind: input, shape index: {}]   ;;  %s2767_s1 = inlined_call_operand.vmem [shape: bf16[1152,128], index: 1, kind: input, shape index: {}]   ;;  %s2768_s2 = inlined_call_operand.vmem [shape: f32[1,128], index: 2, kind: input, shape index: {}]   ;;  %s2769_s3 = inlined_call_operand.vmem [shape: bf16[128,128], index: 3, kind: input, shape index: {}]   ;;  %s2770_s4 = inlined_call_operand.vmem [shape: f32[1,128], index: 4, kind: input, shape index: {}]   ;;  %s2771_s5 = inlined_call_operand.vmem [shape: f32[2,8,8,128], index: 5, kind: output, shape index: {}]  }
   0x1 LB: > { %s1760_s19 = sadd.s32 4294967295, %s2239_s18   ;;  %p1764_p0 = scmp.ge.s32.totalorder %s2239_s18, 1  ;;  %s2239_s18 = sphi %s2272_s18, %s15_s18  }
   0x2   : > { %p187_p1 = scmp.lt.s32.totalorder %s2239_s18, 3 }
   0x4   : > { %p188_p2 = pnand %p1764_p0, %p187_p1 }
   0x6   : > { %191 = sbr.rel (%p188_p2) target bundleno = 539 (0x21b), region = 40 }
   0xb   : > { %v2141_v0 = vld [vmem:[%s2767_s1 + $0x78] sm:$0xff]   ;;  %v2241_v3 = vmov 0   ;;  %v2145_v5 = vld [vmem:[%s2767_s1 + $0x70] sm:$0xff]   ;;  %v2149_v9 = vld [vmem:[%s2767_s1 + $0x68] sm:$0xff]   ;;  %p215_p3 = scmp.lt.s32.totalorder %s1760_s19, 1  ;;  %vm335_vm0 = vcmask 1043456  }
   0xc   : > { %v2142_v1 = vld [vmem:[%s2767_s1 + $0x38] sm:$0xff]   ;;  %1900 = vmatprep.subr.bf16.mxu0 %v2141_v0  ;;  %226 = vst [vmem:[#allocation2] sm:$0xf] %v2241_v3  ;;  %227 = vst [vmem:[#allocation2 + $0x4] sm:$0x1] %v2241_v3  ;;  %v2146_v6 = vld [vmem:[%s2767_s1 + $0x30] sm:$0xff]  }
   0xd   : > { %v2143_v2 = vld [vmem:[%s2767_s1 + $0xf8] sm:$0xff]   ;;  %228 = vst [vmem:[#allocation2 + $0x8] sm:$0xf] %v2241_v3  ;;  %229 = vst [vmem:[#allocation2 + $0xc] sm:$0x1] %v2241_v3  ;;  %1901 = vmatpush3.bf16.msra.mxu0 %v2142_v1  ;;  %v2147_v7 = vld [vmem:[%s2767_s1 + $0xf0] sm:$0xff]  }
   0xe   : > { %230 = vst [vmem:[#allocation2 + $0x10] sm:$0xf] %v2241_v3  ;;  %231 = vst [vmem:[#allocation2 + $0x14] sm:$0x1] %v2241_v3  ;;  %v2144_v4 = vld [vmem:[%s2767_s1 + $0xb8] sm:$0xff]   ;;  %1940 = vmatprep.subr.bf16.mxu1 %v2143_v2  ;;  %1902 = vmatprep.subr.bf16.mxu0 %v2145_v5  ;;  %v2148_v8 = vld [vmem:[%s2767_s1 + $0xb0] sm:$0xff]  }
   0xf   : > { %232 = vst [vmem:[#allocation2 + $0x18] sm:$0xf] %v2241_v3  ;;  %233 = vst [vmem:[#allocation2 + $0x1c] sm:$0x1] %v2241_v3  ;;  %1941 = vmatpush3.bf16.msra.mxu1 %v2144_v4  ;;  %v2150_v10 = vld [vmem:[%s2767_s1 + $0x28] sm:$0xff]   ;;  %v2153_v13 = vld [vmem:[%s2767_s1 + $0x60] sm:$0xff]  }
  0x10   : > { %234 = vst [vmem:[#allocation2 + $0x20] sm:$0xf] %v2241_v3  ;;  %235 = vst [vmem:[#allocation2 + $0x24] sm:$0x1] %v2241_v3  ;;  %1942 = vmatprep.subr.bf16.mxu1 %v2147_v7  ;;  %v2151_v11 = vld [vmem:[%s2767_s1 + $0xe8] sm:$0xff]   ;;  %v2154_v14 = vld [vmem:[%s2767_s1 + $0x20] sm:$0xff]  }
  0x11   : > { %236 = vst [vmem:[#allocation2 + $0x28] sm:$0xf] %v2241_v3  ;;  %237 = vst [vmem:[#allocation2 + $0x2c] sm:$0x1] %v2241_v3  ;;  %1903 = vmatpush3.bf16.msra.mxu0 %v2146_v6  ;;  %v2152_v12 = vld [vmem:[%s2767_s1 + $0xa8] sm:$0xff]   ;;  %v2155_v15 = vld [vmem:[%s2767_s1 + $0xe0] sm:$0xff]  }
  0x12   : > { %238 = vst [vmem:[#allocation2 + $0x30] sm:$0xf] %v2241_v3  ;;  %239 = vst [vmem:[#allocation2 + $0x34] sm:$0x1] %v2241_v3  ;;  %1904 = vmatprep.subr.bf16.mxu0 %v2149_v9  ;;  %v2156_v16 = vld [vmem:[%s2767_s1 + $0xa0] sm:$0xff]   ;;  %v2157_v17 = vld [vmem:[%s2767_s1 + $0x58] sm:$0xff]  }
  0x13   : > { %240 = vst [vmem:[#allocation2 + $0x38] sm:$0xf] %v2241_v3  ;;  %241 = vst [vmem:[#allocation2 + $0x3c] sm:$0x1] %v2241_v3  ;;  %1943 = vmatpush3.bf16.msra.mxu1 %v2148_v8  ;;  %v2158_v18 = vld [vmem:[%s2767_s1 + $0x18] sm:$0xff]   ;;  %v2161_v21 = vld [vmem:[%s2767_s1 + $0x50] sm:$0xff]  }
  0x14   : > { %242 = vst [vmem:[#allocation2 + $0x40] sm:$0xf] %v2241_v3  ;;  %243 = vst [vmem:[#allocation2 + $0x44] sm:$0x1] %v2241_v3  ;;  %1944 = vmatprep.subr.bf16.mxu1 %v2151_v11  ;;  %v2159_v19 = vld [vmem:[%s2767_s1 + $0xd8] sm:$0xff]   ;;  %v2162_v22 = vld [vmem:[%s2767_s1 + $0x10] sm:$0xff]  }
  0x15   : > { %244 = vst [vmem:[#allocation2 + $0x48] sm:$0xf] %v2241_v3  ;;  %245 = vst [vmem:[#allocation2 + $0x4c] sm:$0x1] %v2241_v3  ;;  %1905 = vmatpush3.bf16.msra.mxu0 %v2150_v10  ;;  %v2160_v20 = vld [vmem:[%s2767_s1 + $0x98] sm:$0xff]   ;;  %s2795_s19 = smov (!%p215_p3, %s1760_s19), 1 }
  0x16   : > { %1906 = vmatprep.subr.bf16.mxu0 %v2153_v13  ;;  %v2163_v23 = vld [vmem:[%s2767_s1 + $0xd0] sm:$0xff]   ;;  %v2165_v25 = vld [vmem:[%s2767_s1 + $0x48] sm:$0xff]   ;;  %s1894_s26 = sshll.u32 %s2795_s19, 5  ;;  %v2169_v29 = vld [vmem:[%s2767_s1 + $0x40] sm:$0xff]   ;;  %vm341_vm1 = vcmask 1040384  }
  0x17   : > { %1945 = vmatpush3.bf16.msra.mxu1 %v2152_v12  ;;  %v2164_v24 = vld [vmem:[%s2767_s1 + $0x90] sm:$0xff]   ;;  %v2166_v26 = vld [vmem:[%s2767_s1 + $0x8] sm:$0xff]   ;;  %s2377_s10 = scalar_lea.vmem %s2766_s0, %s1894_s26  ;;  %v2170_v30 = vld [vmem:[%s2767_s1] sm:$0xff]   ;;  %vm336_vm2 = vsmask.f32 7938  ;;  %s1895_s26 = sshll.u32 %s2795_s19, 6 }
  0x18   : > { %1946 = vmatprep.subr.bf16.mxu1 %v2155_v15  ;;  %v2167_v27 = vld [vmem:[%s2767_s1 + $0xc8] sm:$0xff]   ;;  %v2171_v31 = vld [vmem:[%s2767_s1 + $0xc0] sm:$0xff]   ;;  %vm2386_vm3 = vmand %vm335_vm0, %vm336_vm2  ;;  %vm342_vm4 = vsmask.f32 256  ;;  %s224_s6 = scalar_lea.vmem %s2771_s5, %s1895_s26 }
  0x19   : > { %1907 = vmatpush3.bf16.msra.mxu0 %v2154_v14  ;;  %v2168_v28 = vld [vmem:[%s2767_s1 + $0x88] sm:$0xff]   ;;  %v246_v32 = vld [vmem:[%s2377_s10] sm:$0xf]  ;;  %vm2390_vm5 = vmand %vm341_vm1, %vm342_vm4 }
  0x1a   : > { %1908 = vmatprep.subr.bf16.mxu0 %v2157_v17  ;;  %v255_v33 = vshrl.u32 %v246_v32, 16  ;;  %v258_v34 = vshll.u32 %v246_v32, 16  ;;  %v338_v36 = vld [vmem:[#allocation2 + $0x8] sm:$0xf]  ;;  %v344_v38 = vld [vmem:[#allocation2 + $0xc] sm:$0x1] }
  0x1b   : > { %1947 = vmatpush3.bf16.msra.mxu1 %v2156_v16  ;;  %v2394_v39 = vld [vmem:[#allocation2] sm:$0xf]  ;;  %v390_v40 = vld [vmem:[#allocation2 + $0x4] sm:$0x1]  ;;  %v2176_v43 = vld [vmem:[%s2767_s1 + $0x178] sm:$0xff]  }
  0x1c   : > { %1948 = vmatprep.subr.bf16.mxu1 %v2159_v19  ;;  %v257_v41 = vrot.slane %v255_v33, 7  ;;  %v2174_v42 = vld [vmem:[%s2767_s1 + $0x80] sm:$0xff]   ;;  %v1769_v51 = vcombine.low %v2394_v39, %v390_v40  ;;  %v347_v52 = vld [vmem:[#allocation2 + $0x10] sm:$0xf]  ;;  %v2179_v54 = vld [vmem:[%s2767_s1 + $0x1f8] sm:$0xff]  }
  0x1d   : > { %1909 = vmatpush3.bf16.msra.mxu0 %v2158_v18  ;;  %v247_v46 = vld [vmem:[%s2377_s10 + $0x4] sm:$0xf]  ;;  %v350_v55 = vld [vmem:[#allocation2 + $0x14] sm:$0x1]  ;;  %v248_v61 = vld [vmem:[%s2377_s10 + $0x8] sm:$0xf] }
  0x1e   : > { %1910 = vmatprep.subr.bf16.mxu0 %v2161_v21  ;;  %v260_v44 = vor.u32 %v258_v34, %v257_v41  ;;  %v261_v45 = vrot.slane %v257_v41, 4  ;;  %v263_v47 = vshrl.u32 %v247_v46, 16  ;;  %v266_v48 = vshll.u32 %v247_v46, 16  ;;  %v353_v7 = vld [vmem:[#allocation2 + $0x18] sm:$0xf]  ;;  %v2181_v40 = vld [vmem:[%s2767_s1 + $0x170] sm:$0xff]  }
  0x1f   : > { %1949 = vmatpush3.bf16.msra.mxu1 %v2160_v20  ;;  %v452_v58 = vshll.u32 %v1769_v51, 16  ;;  %v271_v62 = vshrl.u32 %v248_v61, 16  ;;  %v274_v63 = vshll.u32 %v248_v61, 16  ;;  %v450_v2 = vshrl.u32 %v1769_v51, 16  ;;  %v356_v8 = vld [vmem:[#allocation2 + $0x1c] sm:$0x1] }
  0x20   : > { %1950 = vmatprep.subr.bf16.mxu1 %v2163_v23  ;;  %v339_v49 = vsel %vm2386_vm3, %v260_v44, %v338_v36  ;;  %v345_v50 = vsel %vm2390_vm5, %v261_v45, %v344_v38  ;;  %v265_v53 = vrot.slane %v263_v47, 7  ;;  %v505_v5 = vrot.slane %v1769_v51, 1  ;;  %v249_v9 = vld [vmem:[%s2377_s10 + $0xc] sm:$0xf]  ;;  %v2178_v33 = vld [vmem:[%s2767_s1 + $0x138] sm:$0xff]   ;;  %v2182_v44 = vld [vmem:[%s2767_s1 + $0x130] sm:$0xff]  }
  0x21   : > { %1911 = vmatpush3.bf16.msra.mxu0 %v2162_v22  ;;  %340 = vst [vmem:[#allocation2 + $0x8] sm:$0xf] %v339_v49  ;;  %346 = vst [vmem:[#allocation2 + $0xc] sm:$0x1] %v345_v50  ;;  %v454_v3 = vrot.slane %v452_v58, 1  ;;  %v273_v6 = vrot.slane %v271_v62, 7 }
  0x22   : > { %1912 = vmatprep.subr.bf16.mxu0 %v2165_v25  ;;  %v268_v56 = vor.u32 %v266_v48, %v265_v53  ;;  %v269_v57 = vrot.slane %v265_v53, 4  ;;  %v279_v15 = vshrl.u32 %v249_v9, 16  ;;  %v282_v16 = vshll.u32 %v249_v9, 16  ;;  %v2180_v22 = vld [vmem:[%s2767_s1 + $0x1b8] sm:$0xff]   ;;  %v362_v25 = vld [vmem:[#allocation2 + $0x24] sm:$0x1] }
  0x23   : > { %1951 = vmatpush3.bf16.msra.mxu1 %v2164_v24  ;;  %v276_v13 = vor.u32 %v274_v63, %v273_v6  ;;  %v277_v14 = vrot.slane %v273_v6, 4  ;;  %v455_v17 = vor.u32 %v454_v3, %v450_v2  ;;  %v359_v24 = vld [vmem:[#allocation2 + $0x20] sm:$0xf]  ;;  %v2189_v47 = vld [vmem:[%s2767_s1 + $0x1e8] sm:$0xff]   ;;  %v250_v48 = vld [vmem:[%s2377_s10 + $0x10] sm:$0xf] }
  0x24   : > { %1952 = vmatprep.subr.bf16.mxu1 %v2167_v27  ;;  %v348_v59 = vsel %vm2386_vm3, %v268_v56, %v347_v52  ;;  %v351_v60 = vsel %vm2390_vm5, %v269_v57, %v350_v55  ;;  %v2186_v49 = vld [vmem:[%s2767_s1 + $0x168] sm:$0xff]   ;;  %v287_v51 = vshrl.u32 %v250_v48, 16  ;;  %v290_v52 = vshll.u32 %v250_v48, 16  ;;  %v251_v57 = vld [vmem:[%s2377_s10 + $0x14] sm:$0xf]  ;;  %v2214_v35 = vld [vmem:[%s2767_s1 + $0x180] sm:$0xff]  }
  0x25   : > { %1913 = vmatpush3.bf16.msra.mxu0 %v2166_v26  ;;  %349 = vst [vmem:[#allocation2 + $0x10] sm:$0xf] %v348_v59  ;;  %352 = vst [vmem:[#allocation2 + $0x14] sm:$0x1] %v351_v60  ;;  %v354_v23 = vsel %vm2386_vm3, %v276_v13, %v353_v7  ;;  %v2190_v50 = vld [vmem:[%s2767_s1 + $0x1a8] sm:$0xff]   ;;  %v2193_v60 = vld [vmem:[%s2767_s1 + $0x1e0] sm:$0xff]  }
  0x26   : > { %1914 = vmatprep.subr.bf16.mxu0 %v2169_v29  ;;  %355 = vst [vmem:[#allocation2 + $0x18] sm:$0xf] %v354_v23  ;;  %v357_v29 = vsel %vm2390_vm5, %v277_v14, %v356_v8  ;;  %v289_v56 = vrot.slane %v287_v51, 7  ;;  %v2188_v59 = vld [vmem:[%s2767_s1 + $0x128] sm:$0xff]   ;;  %v295_v63 = vshrl.u32 %v251_v57, 16  ;;  %v298_v3 = vshll.u32 %v251_v57, 16 }
  0x27   : > { %1953 = vmatpush3.bf16.msra.mxu1 %v2168_v28  ;;  %v2183_v28 = vld [vmem:[%s2767_s1 + $0x1f0] sm:$0xff]   ;;  %358 = vst [vmem:[#allocation2 + $0x1c] sm:$0x1] %v357_v29  ;;  %v365_v61 = vld [vmem:[#allocation2 + $0x28] sm:$0xf] }
  0x28   : > { %1954 = vmatprep.subr.bf16.mxu1 %v2171_v31  ;;  %v391_v0 = vld [vmem:[#allocation2 + $0x8] sm:$0xf]  ;;  %v392_v1 = vld [vmem:[#allocation2 + $0xc] sm:$0x1]  ;;  %v293_v2 = vrot.slane %v289_v56, 4  ;;  %v297_v8 = vrot.slane %v295_v63, 7 }
  0x29   : > { %1915 = vmatpush3.bf16.msra.mxu0 %v2170_v30  ;;  %v2416_v4 = vcombine.low %v391_v0, %v392_v1  ;;  %v281_v30 = vrot.slane %v279_v15, 7  ;;  %v1780_v32 = vcombine.low %v2394_v39, %v391_v0  ;;  %v2185_v39 = vld [vmem:[%s2767_s1 + $0x1b0] sm:$0xff]   ;;  %v368_v62 = vld [vmem:[#allocation2 + $0x2c] sm:$0x1]  ;;  %v292_v1 = vor.u32 %v290_v52, %v289_v56  ;;  %v377_v48 = vld [vmem:[#allocation2 + $0x38] sm:$0xf] }
  0x2a   : > { %1980 = vmatprep.subr.bf16.mxu0 %v2176_v43  ;;  %v371_v9 = vld [vmem:[#allocation2 + $0x30] sm:$0xf]  ;;  %v300_v23 = vor.u32 %v298_v3, %v297_v8  ;;  %v2209_v3 = vld [vmem:[%s2767_s1 + $0x1c8] sm:$0xff]  }
  0x2b   : > { %1955 = vmatpush3.bf16.msra.mxu1 %v2174_v42  ;;  %v457_v10 = vshrl.u32 %v2416_v4, 16  ;;  %v459_v11 = vshll.u32 %v2416_v4, 16  ;;  %v506_v12 = vrot.slane %v2416_v4, 1  ;;  %v284_v34 = vor.u32 %v282_v16, %v281_v30  ;;  %v2202_v56 = vld [vmem:[%s2767_s1 + $0x110] sm:$0xff]  }
  0x2c   : > { %2020 = vmatprep.subr.bf16.mxu1 %v2179_v54  ;;  %v2422_v19 = vld [vmem:[#allocation2 + $0x10] sm:$0xf]  ;;  %v394_v20 = vld [vmem:[#allocation2 + $0x14] sm:$0x1]  ;;  %v285_v36 = vrot.slane %v281_v30, 4  ;;  %v366_v15 = vsel %vm2386_vm3, %v292_v1, %v365_v61  ;;  %v369_v16 = vsel %vm2390_vm5, %v293_v2, %v368_v62 }
  0x2d   : > { %v461_v18 = vrot.slane %v459_v11, 1  ;;  %v1782_v21 = vcombine.low %v505_v5, %v506_v12  ;;  %v2432_v26 = vcombine.low %v2422_v19, %v394_v20  ;;  %v1783_v27 = vcombine.low %v391_v0, %v2422_v19  ;;  %v395_v53 = vld [vmem:[#allocation2 + $0x18] sm:$0xf]  ;;  %v2191_v0 = vld [vmem:[%s2767_s1 + $0x160] sm:$0xff]   ;;  %367 = vst [vmem:[#allocation2 + $0x28] sm:$0xf] %v366_v15 }
  0x2e   : > { %v360_v42 = vsel %vm2386_vm3, %v284_v34, %v359_v24  ;;  %v363_v43 = vsel %vm2390_vm5, %v285_v36, %v362_v25  ;;  %v396_v54 = vld [vmem:[#allocation2 + $0x1c] sm:$0x1]  ;;  %370 = vst [vmem:[#allocation2 + $0x2c] sm:$0x1] %v369_v16  ;;  %v301_v24 = vrot.slane %v297_v8, 4  ;;  %v2519_v30 = vcombine.low %v2422_v19, %v395_v53 }
  0x2f   : > { %v2440_v31 = vor.u32 %v461_v18, %v457_v10  ;;  %1293 = vmatprep.mubr.bf16.mxu1 %v1783_v27  ;;  %v466_v41 = vshll.u32 %v2432_v26, 16  ;;  %v464_v45 = vshrl.u32 %v2432_v26, 16  ;;  %361 = vst [vmem:[#allocation2 + $0x20] sm:$0xf] %v360_v42  ;;  %364 = vst [vmem:[#allocation2 + $0x24] sm:$0x1] %v363_v43  ;;  %v2474_v58 = vcombine.low %v395_v53, %v396_v54 }
  0x30   : > { %1294 = vmatmul.mubr.bf16.vlgmr.msra.gmra.mxu1 %v1782_v21  ;;  %v507_v46 = vrot.slane %v2432_v26, 1  ;;  %v374_v10 = vld [vmem:[#allocation2 + $0x34] sm:$0x1]  ;;  %v2199_v25 = vld [vmem:[%s2767_s1 + $0x1d8] sm:$0xff]   ;;  %v383_v1 = vld [vmem:[#allocation2 + $0x40] sm:$0xf] }
  0x31   : > { %v1781_v38 = vcombine.low %v455_v17, %v2440_v31  ;;  %2021 = vmatpush3.bf16.msra.mxu1 %v2180_v22  ;;  %v468_v55 = vrot.slane %v466_v41, 1  ;;  %v471_v5 = vshrl.u32 %v2474_v58, 16  ;;  %v473_v6 = vshll.u32 %v2474_v58, 16  ;;  %v2195_v22 = vld [vmem:[%s2767_s1 + $0x1a0] sm:$0xff]   ;;  %v252_v41 = vld [vmem:[%s2377_s10 + $0x18] sm:$0xf] }
  0x32   : > { %2022 = vmatprep.subr.bf16.mxu1 %v2183_v28  ;;  %v508_v7 = vrot.slane %v2474_v58, 1  ;;  %v2192_v28 = vld [vmem:[%s2767_s1 + $0x120] sm:$0xff]   ;;  %v375_v34 = vsel %vm2390_vm5, %v301_v24, %v374_v10  ;;  %v2201_v43 = vld [vmem:[%s2767_s1 + $0x150] sm:$0xff]   ;;  %v2217_v58 = vld [vmem:[%s2767_s1 + $0x228] sm:$0xff]  }
  0x33   : > { %1228 = vmatprep.mubr.bf16.mxu0 %v1781_v38  ;;  %v2488_v11 = vor.u32 %v468_v55, %v464_v45  ;;  %v475_v17 = vrot.slane %v473_v6, 1  ;;  %376 = vst [vmem:[#allocation2 + $0x34] sm:$0x1] %v375_v34  ;;  %v2198_v38 = vld [vmem:[%s2767_s1 + $0x118] sm:$0xff]   ;;  %v303_v45 = vshrl.u32 %v252_v41, 16 }
  0x34   : > { %1229 = vmatmul.mubr.bf16.vlgmr.msra.gmra.mxu0 %v1780_v32  ;;  %v2504_v21 = vcombine.low %v507_v46, %v508_v7  ;;  %v2196_v32 = vld [vmem:[%s2767_s1 + $0x158] sm:$0xff]   ;;  %v386_v2 = vld [vmem:[#allocation2 + $0x44] sm:$0x1] }
  0x35   : > { %1981 = vmatpush3.bf16.msra.mxu0 %v2178_v33  ;;  %2023 = vmatpush3.bf16.msra.mxu1 %v2185_v39  ;;  %v2512_v27 = vor.u32 %v475_v17, %v471_v5  ;;  %v372_v33 = vsel %vm2386_vm3, %v300_v23, %v371_v9  ;;  %v400_v51 = vld [vmem:[#allocation2 + $0x2c] sm:$0x1]  ;;  %v305_v52 = vrot.slane %v303_v45, 7  ;;  %v253_v55 = vld [vmem:[%s2377_s10 + $0x1c] sm:$0xf] }
  0x36   : > { %1982 = vmatprep.subr.bf16.mxu0 %v2181_v40  ;;  %2024 = vmatprep.subr.bf16.mxu1 %v2189_v47  ;;  %v2490_v13 = vld [vmem:[#allocation2 + $0x20] sm:$0xf]  ;;  %v398_v14 = vld [vmem:[#allocation2 + $0x24] sm:$0x1]  ;;  %373 = vst [vmem:[#allocation2 + $0x30] sm:$0xf] %v372_v33 }
  0x37   : > { %v2497_v18 = vcombine.low %v2490_v13, %v398_v14  ;;  %v1789_v20 = vcombine.low %v395_v53, %v2490_v13  ;;  %v2531_v36 = vcombine.low %v2488_v11, %v2512_v27  ;;  %v2200_v40 = vld [vmem:[%s2767_s1 + $0x198] sm:$0xff]   ;;  %v306_v47 = vshll.u32 %v252_v41, 16  ;;  %v2205_v53 = vld [vmem:[%s2767_s1 + $0x190] sm:$0xff]   ;;  %v2206_v14 = vld [vmem:[%s2767_s1 + $0x148] sm:$0xff]  }
  0x38   : > { %v314_v61 = vshll.u32 %v253_v55, 16  ;;  %v2210_v23 = vld [vmem:[%s2767_s1 + $0x188] sm:$0xff]   ;;  %v2213_v33 = vld [vmem:[%s2767_s1 + $0x1c0] sm:$0xff]  }
  0x39   : > { %1983 = vmatpush3.bf16.msra.mxu0 %v2182_v44  ;;  %2025 = vmatpush3.bf16.msra.mxu1 %v2190_v50  ;;  %v480_v29 = vshll.u32 %v2497_v18, 16  ;;  %v478_v19 = vshrl.u32 %v2497_v18, 16  ;;  %v509_v42 = vrot.slane %v2497_v18, 1  ;;  %v2203_v44 = vld [vmem:[%s2767_s1 + $0x1d0] sm:$0xff]   ;;  %v399_v50 = vld [vmem:[#allocation2 + $0x28] sm:$0xf]  ;;  %v308_v57 = vor.u32 %v306_v47, %v305_v52 }
  0x3a   : > { %1984 = vmatprep.subr.bf16.mxu0 %v2186_v49  ;;  %2026 = vmatprep.subr.bf16.mxu1 %v2193_v60  ;;  %v380_v49 = vld [vmem:[#allocation2 + $0x3c] sm:$0x1]  ;;  %v2553_v54 = vcombine.low %v399_v50, %v400_v51  ;;  %v311_v60 = vshrl.u32 %v253_v55, 16  ;;  %v402_v8 = vld [vmem:[#allocation2 + $0x34] sm:$0x1]  ;;  %v2597_v34 = vcombine.low %v2490_v13, %v399_v50  ;;  %v2212_v13 = vld [vmem:[%s2767_s1 + $0x100] sm:$0xff]  }
  0x3b   : > { %1301 = vmatprep.mubr.bf16.mxu1 %v1789_v20  ;;  %v482_v39 = vrot.slane %v480_v29, 1  ;;  %1236 = vmatprep.mubr.bf16.mxu0 %v2531_v36  ;;  %v378_v9 = vsel %vm2386_vm3, %v308_v57, %v377_v48  ;;  %v1791_v4 = vcombine.low %v508_v7, %v509_v42 }
  0x3c   : > { %1302 = vmatmul.mubr.bf16.gmra.mxu1 %v2504_v21  ;;  %1237 = vmatmul.mubr.bf16.gmra.mxu0 %v2519_v30  ;;  %v485_v62 = vshrl.u32 %v2553_v54, 16  ;;  %v487_v63 = vshll.u32 %v2553_v54, 16  ;;  %v313_v15 = vrot.slane %v311_v60, 7  ;;  %379 = vst [vmem:[#allocation2 + $0x38] sm:$0xf] %v378_v9 }
  0x3d   : > { %1985 = vmatpush3.bf16.msra.mxu0 %v2188_v59  ;;  %2027 = vmatpush3.bf16.msra.mxu1 %v2195_v22  ;;  %v309_v59 = vrot.slane %v305_v52, 4  ;;  %v2565_v5 = vor.u32 %v482_v39, %v478_v19  ;;  %v401_v6 = vld [vmem:[#allocation2 + $0x30] sm:$0xf] }
  0x3e   : > { %1986 = vmatprep.subr.bf16.mxu0 %v2191_v0  ;;  %2028 = vmatprep.subr.bf16.mxu1 %v2199_v25  ;;  %v510_v0 = vrot.slane %v2553_v54, 1  ;;  %v489_v16 = vrot.slane %v487_v63, 1  ;;  %v2574_v17 = vcombine.low %v401_v6, %v402_v8  ;;  %v1795_v20 = vcombine.low %v399_v50, %v401_v6 }
  0x3f   : > { %v381_v10 = vsel %vm2390_vm5, %v309_v59, %v380_v49  ;;  %v316_v24 = vor.u32 %v314_v61, %v313_v15  ;;  %v317_v25 = vrot.slane %v313_v15, 4  ;;  %v1784_v8 = vcombine.low %v2440_v31, %v2488_v11 }
  0x40   : > { %v2580_v22 = vcombine.low %v509_v42, %v510_v0  ;;  %382 = vst [vmem:[#allocation2 + $0x3c] sm:$0x1] %v381_v10  ;;  %v2588_v29 = vor.u32 %v489_v16, %v485_v62  ;;  %1309 = vmatprep.mubr.bf16.mxu1 %v1795_v20  ;;  %v494_v41 = vshll.u32 %v2574_v17, 16  ;;  %v511_v48 = vrot.slane %v2574_v17, 1  ;;  %v407_v62 = vld [vmem:[#allocation2 + $0x48] sm:$0xf] }
  0x41   : > { %1987 = vmatpush3.bf16.msra.mxu0 %v2192_v28  ;;  %2029 = vmatpush3.bf16.msra.mxu1 %v2200_v40  ;;  %v2208_v28 = vld [vmem:[%s2767_s1 + $0x108] sm:$0xff]   ;;  %v384_v19 = vsel %vm2386_vm3, %v316_v24, %v383_v1  ;;  %v1785_v1 = vcombine.low %v506_v12, %v507_v46  ;;  %v2216_v46 = vld [vmem:[%s2767_s1 + $0x230] sm:$0xff]   ;;  %v1790_v7 = vcombine.low %v2512_v27, %v2565_v5  ;;  %v2218_v10 = vld [vmem:[%s2767_s1 + $0x220] sm:$0xff]  }
  0x42   : > { %1988 = vmatprep.subr.bf16.mxu0 %v2196_v32  ;;  %2030 = vmatprep.subr.bf16.mxu1 %v2203_v44  ;;  %v2211_v32 = vld [vmem:[%s2767_s1 + $0x140] sm:$0xff]   ;;  %v1793_v40 = vcombine.low %v2565_v5, %v2588_v29  ;;  %385 = vst [vmem:[#allocation2 + $0x40] sm:$0xf] %v384_v19  ;;  %v2215_v44 = vld [vmem:[%s2767_s1 + $0x238] sm:$0xff]   ;;  %v496_v47 = vrot.slane %v494_v41, 1  ;;  %v1797_v18 = vcombine.low %v510_v0, %v511_v48  ;;  %v2220_v5 = vld [vmem:[%s2767_s1 + $0x210] sm:$0xff]  }
  0x43   : > { %v403_v37 = vld [vmem:[#allocation2 + $0x38] sm:$0xf]  ;;  %v2232_v19 = vld [vmem:[%s2769_s3] sm:$0xff]  }
  0x44   : > { %1310 = vmatmul.mubr.bf16.gmra.mxu1 %v2580_v22  ;;  %1244 = vmatprep.mubr.bf16.mxu0 %v1793_v40  ;;  %v1798_v60 = vcombine.low %v401_v6, %v403_v37  ;;  %v2219_v27 = vld [vmem:[%s2767_s1 + $0x218] sm:$0xff]  }
  0x45   : > { %1989 = vmatpush3.bf16.msra.mxu0 %v2198_v38  ;;  %2031 = vmatpush3.bf16.msra.mxu1 %v2205_v53  ;;  %v387_v38 = vsel %vm2390_vm5, %v317_v25, %v386_v2  ;;  %v408_v2 = vld [vmem:[#allocation2 + $0x4c] sm:$0x1] }
  0x46   : > { %1990 = vmatprep.subr.bf16.mxu0 %v2201_v43  ;;  %2032 = vmatprep.subr.bf16.mxu1 %v2209_v3  ;;  %388 = vst [vmem:[#allocation2 + $0x44] sm:$0x1] %v387_v38  ;;  %v492_v43 = vshrl.u32 %v2574_v17, 16  ;;  %v1778_v6 = vcombine.low %v407_v62, %v408_v2  ;;  %v2221_v17 = vld [vmem:[%s2767_s1 + $0x208] sm:$0xff]  }
  0x47   : > { %1245 = vmatmul.mubr.bf16.gmra.mxu0 %v2597_v34  ;;  %v404_v39 = vld [vmem:[#allocation2 + $0x3c] sm:$0x1] }
  0x48   : > { %v2618_v45 = vcombine.low %v403_v37, %v404_v39  ;;  %v497_v53 = vor.u32 %v496_v47, %v492_v43  ;;  %v534_v26 = vshll.u32 %v1778_v6, 16  ;;  %v532_v31 = vshrl.u32 %v1778_v6, 16 }
  0x49   : > { %1991 = vmatpush3.bf16.msra.mxu0 %v2202_v56  ;;  %2033 = vmatpush3.bf16.msra.mxu1 %v2210_v23  ;;  %v2624_v52 = vld [vmem:[#allocation2 + $0x40] sm:$0xf]  ;;  %v538_v24 = vrot.slane %v1778_v6, 1 }
  0x4a   : > { %1992 = vmatprep.subr.bf16.mxu0 %v2206_v14  ;;  %2034 = vmatprep.subr.bf16.mxu1 %v2213_v33  ;;  %v499_v49 = vshrl.u32 %v2618_v45, 16  ;;  %v501_v50 = vshll.u32 %v2618_v45, 16  ;;  %v512_v51 = vrot.slane %v2618_v45, 1  ;;  %v1801_v56 = vcombine.low %v403_v37, %v2624_v52  ;;  %v2224_v23 = vld [vmem:[%s2767_s1 + $0x200] sm:$0xff]   ;;  %v2230_v33 = vld [vmem:[%s2769_s3 + $0x10] sm:$0xff]  }
  0x4b   : > { %v536_v11 = vrot.slane %v534_v26, 1  ;;  %v1796_v54 = vcombine.low %v2588_v29, %v497_v53  ;;  %v1804_v16 = vcombine.low %v2624_v52, %v407_v62  ;;  %v2226_v29 = vld [vmem:[%s2769_s3 + $0x30] sm:$0xff]  }
  0x4c   : > { %v503_v55 = vrot.slane %v501_v50, 1  ;;  %v2627_v57 = vcombine.low %v511_v48, %v512_v51  ;;  %1317 = vmatprep.mubr.bf16.mxu1 %v1801_v56 }
  0x4d   : > { %1993 = vmatpush3.bf16.msra.mxu0 %v2208_v28  ;;  %2035 = vmatpush3.bf16.msra.mxu1 %v2214_v35  ;;  %v406_v61 = vld [vmem:[#allocation2 + $0x44] sm:$0x1]  ;;  %v537_v42 = vor.u32 %v536_v11, %v532_v31  ;;  %v2225_v28 = vld [vmem:[%s2769_s3 + $0x38] sm:$0xff]  }
  0x4e   : > { %1994 = vmatprep.subr.bf16.mxu0 %v2211_v32  ;;  %v2629_v59 = vor.u32 %v503_v55, %v499_v49  ;;  %1318 = vmatmul.mubr.bf16.gmra.mxu1 %v2627_v57  ;;  %v1777_v3 = vcombine.low %v2624_v52, %v406_v61  ;;  %v2229_v32 = vld [vmem:[%s2769_s3 + $0x18] sm:$0xff]  }
  0x4f   : > { %1423 = vmatprep.mubr.bf16.mxu1 %v2531_v36  ;;  %2108 = vmatprep.subr.bf16.mxu1 %v2225_v28 }
  0x50   : > { %v1799_v63 = vcombine.low %v497_v53, %v2629_v59  ;;  %v521_v12 = vshll.u32 %v1777_v3, 16  ;;  %v519_v36 = vshrl.u32 %v1777_v3, 16  ;;  %v525_v14 = vrot.slane %v1777_v3, 1 }
  0x51   : > { %1995 = vmatpush3.bf16.msra.mxu0 %v2212_v13 }
  0x52   : > { %2084 = vmatprep.subr.bf16.mxu0 %v2215_v44  ;;  %1252 = vmatprep.mubr.bf16.mxu0 %v1799_v63  ;;  %v523_v9 = vrot.slane %v521_v12, 1  ;;  %v1803_v0 = vcombine.low %v512_v51, %v525_v14  ;;  %v1806_v25 = vcombine.low %v525_v14, %v538_v24 }
  0x53   : > { %1253 = vmatmul.mubr.bf16.gmra.mxu0 %v1798_v60 }
  0x54   : > { %1358 = vmatprep.mubr.bf16.mxu0 %v1785_v1 }
  0x56   : > { %1424 = vmatmul.mubr.bf16.vlgmr.msra.gmra.mxu1 %v2519_v30  ;;  %v524_v30 = vor.u32 %v523_v9, %v519_v36 }
  0x57   : > { %1431 = vmatprep.mubr.bf16.mxu1 %v1793_v40  ;;  %2109 = vmatpush3.bf16.msra.mxu1 %v2225_v28 }
  0x58   : > { %v1805_v15 = vcombine.low %v524_v30, %v537_v42  ;;  %v1802_v20 = vcombine.low %v2629_v59, %v524_v30  ;;  %2110 = vmatprep.subr.bf16.mxu1 %v2226_v29 }
  0x5b   : > { %1359 = vmatmul.mubr.bf16.vlgmr.msra.gmra.mxu0 %v1784_v8  ;;  %2111 = vmatpush3.bf16.msra.mxu1 %v2226_v29  ;;  %v1779_v29 = vld [vmem:[%s2768_s2] ss:$0 sm:$0xff] }
  0x5c   : > { %2085 = vmatpush3.bf16.msra.mxu0 %v2215_v44  ;;  %1366 = vmatprep.mubr.bf16.mxu0 %v1791_v4 }
  0x5d   : > { %2086 = vmatprep.subr.bf16.mxu0 %v2216_v46 }
  0x5e   : > { %1432 = vmatmul.mubr.bf16.gmra.mxu1 %v2597_v34  ;;  %v2231_v34 = vld [vmem:[%s2769_s3 + $0x8] sm:$0xff]  }
  0x5f   : > { %1439 = vmatprep.mubr.bf16.mxu1 %v1799_v63 }
  0x60   : > { %2087 = vmatpush3.bf16.msra.mxu0 %v2216_v46 }
  0x61   : > { %2088 = vmatprep.subr.bf16.mxu0 %v2217_v58 }
  0x63   : > { %1367 = vmatmul.mubr.bf16.gmra.mxu0 %v1790_v7 }
  0x64   : > { %2089 = vmatpush3.bf16.msra.mxu0 %v2217_v58  ;;  %1374 = vmatprep.mubr.bf16.mxu0 %v1797_v18 }
  0x65   : > { %2090 = vmatprep.subr.bf16.mxu0 %v2218_v10 }
  0x66   : > { %1440 = vmatmul.mubr.bf16.gmra.mxu1 %v1798_v60 }
  0x67   : > { %1447 = vmatprep.mubr.bf16.mxu1 %v1805_v15 }
  0x68   : > { %2091 = vmatpush3.bf16.msra.mxu0 %v2218_v10 }
  0x69   : > { %2092 = vmatprep.subr.bf16.mxu0 %v2219_v27 }
  0x6b   : > { %1375 = vmatmul.mubr.bf16.gmra.mxu0 %v1796_v54 }
  0x6c   : > { %2093 = vmatpush3.bf16.msra.mxu0 %v2219_v27  ;;  %1382 = vmatprep.mubr.bf16.mxu0 %v1803_v0 }
  0x6d   : > { %2094 = vmatprep.subr.bf16.mxu0 %v2220_v5 }
  0x6e   : > { %1448 = vmatmul.mubr.bf16.gmra.mxu1 %v1804_v16 }
  0x70   : > { %2095 = vmatpush3.bf16.msra.mxu0 %v2220_v5 }
  0x71   : > { %2096 = vmatprep.subr.bf16.mxu0 %v2221_v17 }
  0x73   : > { %1383 = vmatmul.mubr.bf16.gmra.mxu0 %v1802_v20 }
  0x74   : > { %2097 = vmatpush3.bf16.msra.mxu0 %v2221_v17  ;;  %2100 = vmatprep.mubr.bf16.mxu0 %v2504_v21  ;;  %v2227_v21 = vld [vmem:[%s2769_s3 + $0x28] sm:$0xff]  }
  0x75   : > { %2098 = vmatprep.subr.bf16.mxu0 %v2224_v23  ;;  %2112 = vmatprep.subr.bf16.mxu1 %v2227_v21 }
  0x76   : > { %2113 = vmatpush3.bf16.msra.mxu1 %v2227_v21 }
  0x78   : > { %2099 = vmatpush3.bf16.msra.mxu0 %v2224_v23 }
  0x7b   : > { %2101 = vmatmul.mubr.bf16.vlgmr.msra.gmra.mxu0 %v2580_v22  ;;  %v2228_v22 = vld [vmem:[%s2769_s3 + $0x20] sm:$0xff]  }
  0x7c   : > { %2104 = vmatprep.mubr.bf16.mxu0 %v2627_v57  ;;  %2114 = vmatprep.subr.bf16.mxu1 %v2228_v22 }
  0x7d   : > { %2115 = vmatpush3.bf16.msra.mxu1 %v2228_v22 }
  0x7e   : > { %2116 = vmatprep.subr.bf16.mxu1 %v2229_v32 }
  0x81   : > { %2117 = vmatpush3.bf16.msra.mxu1 %v2229_v32 }
  0x82   : > { %2118 = vmatprep.subr.bf16.mxu1 %v2230_v33 }
  0x83   : > { %2105 = vmatmul.mubr.bf16.gmra.mxu0 %v1806_v25 }
  0x85   : > { %2119 = vmatpush3.bf16.msra.mxu1 %v2230_v33 }
  0x86   : > { %2120 = vmatprep.subr.bf16.mxu1 %v2231_v34 }
  0x89   : > { %2121 = vmatpush3.bf16.msra.mxu1 %v2231_v34 }
  0x8a   : > { %2122 = vmatprep.subr.bf16.mxu1 %v2232_v19 }
  0x8d   : > { %2123 = vmatpush3.bf16.msra.mxu1 %v2232_v19 }
  0xf0   : > { %v1956_v38 = vpop.f32.mrf.mxu1 }
  0xf2   : > { %v1957_v40 = vpop.f32.mrf.mxu1 }
  0xf3   : > { %v1958_v34 = vadd.f32 %v1957_v40, %v1956_v38 }
  0xf4   : > { %v1916_v41 = vpop.f32.mrf.mxu0  ;;  %v1959_v35 = vpop.f32.mrf.mxu1 }
  0xf6   : > { %v1917_v13 = vpop.f32.mrf.mxu0  ;;  %v1960_v39 = vpop.f32.mrf.mxu1 }
  0xf7   : > { %v1918_v23 = vadd.f32 %v1917_v13, %v1916_v41 }
  0xf8   : > { %v1919_v37 = vpop.f32.mrf.mxu0 }
  0xf9   : > { %v1231_v33 = vadd.f32 %v1918_v23, %v1779_v29 }
  0xfa   : > { %v1920_v43 = vpop.f32.mrf.mxu0 }
  0xfb   : > { %v1921_v24 = vadd.f32 %v1920_v43, %v1919_v37 }
  0xfc   : > { %v1962_v44 = vpop.f32.mrf.mxu1  ;;  %v1922_v47 = vpop.f32.mrf.mxu0 }
  0xfd   : > { %v1234_v19 = vadd.f32 %v1921_v24, %v1779_v29 }
  0xfe   : > { %v1963_v45 = vpop.f32.mrf.mxu1  ;;  %v1923_v49 = vpop.f32.mrf.mxu0 }
  0xff   : > { %v1924_v21 = vadd.f32 %v1923_v49, %v1922_v47  ;;  %v1964_v41 = vadd.f32 %v1963_v45, %v1962_v44 }
 0x100   : > { %v1965_v48 = vpop.f32.mrf.mxu1  ;;  %v1925_v50 = vpop.f32.mrf.mxu0 }
 0x102   : > { %v1966_v51 = vpop.f32.mrf.mxu1  ;;  %v1926_v52 = vpop.f32.mrf.mxu0 }
 0x103   : > { %v1927_v22 = vadd.f32 %v1926_v52, %v1925_v50  ;;  %v1967_v37 = vadd.f32 %v1966_v51, %v1965_v48 }
 0x104   : > { %v2702_v53 = vpop.f32.mrf.mxu1 }
 0x105   : > { %v1242_v13 = vadd.f32 %v1927_v22, %v1779_v29 }
 0x106   : > { %v2704_v55 = vpop.f32.mrf.mxu1 }
 0x107   : > { %v1928_v56 = vpop.f32.mrf.mxu0  ;;  %v1307_v40 = vadd.f32 %v1967_v37, %v1242_v13  ;;  %v1970_v23 = vadd.f32 %v2704_v55, %v2702_v53 }
 0x108   : > { %v2706_v57 = vpop.f32.mrf.mxu1 }
 0x109   : > { %2776 = vst [vmem:[#allocation3_spill] sm:$0xff] %v2706_v57  ;;  %v1929_v59 = vpop.f32.mrf.mxu0  ;;  %v1296_v57 = vadd.f32 %v1958_v34, %v1231_v33 }
 0x10a   : > { %v2710_v61 = vpop.f32.mrf.mxu1  ;;  %v1930_v43 = vadd.f32 %v1929_v59, %v1928_v56 }
 0x10b   : > { %v2708_v60 = vpop.f32.mrf.mxu0  ;;  %2777 = vst [vmem:[#allocation4_spill] sm:$0xff] %v2710_v61 }
 0x10d   : > { %v2712_v62 = vpop.f32.mrf.mxu0 }
 0x10e   : > { %v2714_v63 = vpop.f32.mrf.mxu1  ;;  %v1933_v44 = vadd.f32 %v2712_v62, %v2708_v60 }
 0x10f   : > { %2778 = vst [vmem:[#allocation5_spill] sm:$0xff] %v2714_v63 }
 0x110   : > { %v2716_v1 = vpop.f32.mrf.mxu1  ;;  %v2786_v60 = vld [vmem:[#allocation3_spill] sm:$0xff] }
 0x111   : > { %2779 = vst [vmem:[#allocation6_spill] sm:$0xff] %v2716_v1 }
 0x112   : > { %v2718_v3 = vpop.f32.mrf.mxu1  ;;  %v2787_v62 = vld [vmem:[#allocation4_spill] sm:$0xff] }
 0x113   : > { %v1934_v2 = vpop.f32.mrf.mxu0 }
 0x114   : > { %v2720_v8 = vpop.f32.mrf.mxu1 }
 0x115   : > { %v1935_v6 = vpop.f32.mrf.mxu0 }
 0x116   : > { %v2036_v12 = vpop.f32.mrf.mxu1  ;;  %v1936_v45 = vadd.f32 %v1935_v6, %v1934_v2  ;;  %v1973_v2 = vadd.f32 %v2787_v62, %v2786_v60 }
 0x117   : > { %v1937_v4 = vpop.f32.mrf.mxu0 }
 0x118   : > { %v2037_v46 = vpop.f32.mrf.mxu1 }
 0x119   : > { %v1938_v26 = vpop.f32.mrf.mxu0  ;;  %v2038_v56 = vadd.f32 %v2037_v46, %v2036_v12 }
 0x11a   : > { %v2722_v9 = vpop.f32.mrf.mxu1 }
 0x11b   : > { %v1996_v36 = vpop.f32.mrf.mxu0 }
 0x11c   : > { %v2724_v11 = vpop.f32.mrf.mxu1 }
 0x11d   : > { %v1997_v31 = vpop.f32.mrf.mxu0  ;;  %2780 = vst [vmem:[#allocation7_spill] sm:$0xff] %v2724_v11  ;;  %v1939_v11 = vadd.f32 %v1938_v26, %v1937_v4 }
 0x11e   : > { %v2042_v7 = vpop.f32.mrf.mxu1  ;;  %v1998_v63 = vadd.f32 %v1997_v31, %v1996_v36  ;;  %v1979_v36 = vadd.f32 %v2720_v8, %v2718_v3 }
 0x11f   : > { %v1999_v58 = vpop.f32.mrf.mxu0  ;;  %v1258_v26 = vadd.f32 %v1939_v11, %v1779_v29 }
 0x120   : > { %v2043_v30 = vpop.f32.mrf.mxu1  ;;  %v1361_v51 = vadd.f32 %v1998_v63, %v1296_v57  ;;  %v1255_v57 = vadd.f32 %v1936_v45, %v1779_v29  ;;  %v2788_v63 = vld [vmem:[#allocation5_spill] sm:$0xff] }
 0x121   : > { %v2000_v18 = vpop.f32.mrf.mxu0 }
 0x122   : > { %v2045_v10 = vpop.f32.mrf.mxu1  ;;  %v1426_v3 = vadd.f32 %v2038_v56, %v1361_v51 }
 0x123   : > { %v2002_v42 = vpop.f32.mrf.mxu0 }
 0x124   : > { %v2046_v15 = vpop.f32.mrf.mxu1  ;;  %v2785_v53 = vld [vmem:[#allocation7_spill] sm:$0xff] }
 0x125   : > { %v2003_v14 = vpop.f32.mrf.mxu0  ;;  %v2047_v4 = vadd.f32 %v2046_v15, %v2045_v10  ;;  %v2041_v55 = vadd.f32 %v2785_v53, %v2722_v9 }
 0x126   : > { %v2726_v54 = vpop.f32.mrf.mxu1  ;;  %v2004_v47 = vadd.f32 %v2003_v14, %v2002_v42  ;;  %v2044_v42 = vadd.f32 %v2043_v30, %v2042_v7  ;;  %v1323_v30 = vadd.f32 %v1979_v36, %v1258_v26 }
 0x127   : > { %v2005_v27 = vpop.f32.mrf.mxu0  ;;  %2781 = vst [vmem:[#allocation8_spill] sm:$0xff] %v2726_v54 }
 0x128   : > { %v2728_v5 = vpop.f32.mrf.mxu1 }
 0x129   : > { %v2006_v0 = vpop.f32.mrf.mxu0  ;;  %2782 = vst [vmem:[#allocation9_spill] sm:$0xff] %v2728_v5  ;;  %v1961_v5 = vadd.f32 %v1960_v39, %v1959_v35  ;;  %v2001_v35 = vadd.f32 %v2000_v18, %v1999_v58  ;;  %v1247_v39 = vadd.f32 %v1930_v43, %v1779_v29 }
 0x12a   : > { %v2730_v17 = vpop.f32.mrf.mxu1  ;;  %v2007_v61 = vadd.f32 %v2006_v0, %v2005_v27  ;;  %v1250_v27 = vadd.f32 %v1933_v44, %v1779_v29 }
 0x12b   : > { %v2008_v16 = vpop.f32.mrf.mxu0  ;;  %2783 = vst [vmem:[#allocation10_spill] sm:$0xff] %v2730_v17  ;;  %v1239_v17 = vadd.f32 %v1924_v21, %v1779_v29  ;;  %v1299_v52 = vadd.f32 %v1961_v5, %v1234_v19  ;;  %v1312_v7 = vadd.f32 %v1970_v23, %v1247_v39 }
 0x12c   : > { %v2732_v28 = vpop.f32.mrf.mxu1  ;;  %v1372_v59 = vadd.f32 %v2007_v61, %v1307_v40  ;;  %v2789_v61 = vld [vmem:[#allocation6_spill] sm:$0xff]  ;;  %v1315_v22 = vadd.f32 %v1973_v2, %v1250_v27  ;;  %v1879_v27 = vld [vmem:[%s2770_s4] ss:$0 sm:$0xff] }
 0x12d   : > { %v2009_v20 = vpop.f32.mrf.mxu0  ;;  %2784 = vst [vmem:[#allocation11_spill] sm:$0xff] %v2732_v28  ;;  %v1304_v38 = vadd.f32 %v1964_v41, %v1239_v17  ;;  %v1364_v14 = vadd.f32 %v2001_v35, %v1299_v52  ;;  %v1976_v6 = vadd.f32 %v2789_v61, %v2788_v63 }
 0x12e   : > { %v2737_v1 = vpop.f32.mrf.mxu1  ;;  %v2010_v46 = vadd.f32 %v2009_v20, %v2008_v16  ;;  %v1437_v8 = vadd.f32 %v2047_v4, %v1372_v59  ;;  %v2790_v33 = vld [vmem:[#allocation8_spill] sm:$0xff] }
 0x12f   : > { %v2011_v25 = vpop.f32.mrf.mxu0  ;;  %v1369_v31 = vadd.f32 %v2004_v47, %v1304_v38  ;;  %v1429_v21 = vadd.f32 %v2041_v55, %v1364_v14  ;;  %v1320_v29 = vadd.f32 %v1976_v6, %v1255_v57 }
 0x130   : > { %v2055_v50 = vpop.f32.mrf.mxu1  ;;  %v2791_v34 = vld [vmem:[#allocation9_spill] sm:$0xff]  ;;  %v1377_v20 = vadd.f32 %v2010_v46, %v1312_v7 }
 0x131   : > { %v2012_v32 = vpop.f32.mrf.mxu0  ;;  %v1434_v0 = vadd.f32 %v2044_v42, %v1369_v31  ;;  %v2050_v19 = vadd.f32 %v2791_v34, %v2790_v33 }
 0x132   : > { %v2057_v58 = vpop.f32.mrf.mxu1  ;;  %v2013_v9 = vadd.f32 %v2012_v32, %v2011_v25  ;;  %v2792_v32 = vld [vmem:[#allocation10_spill] sm:$0xff] }
 0x133   : > { %v2014_v54 = vpop.f32.mrf.mxu0  ;;  %v1442_v45 = vadd.f32 %v2050_v19, %v1377_v20 }
 0x134   : > { %v2058_v15 = vpop.f32.mrf.mxu1  ;;  %v1380_v25 = vadd.f32 %v2013_v9, %v1315_v22  ;;  %v2793_v52 = vld [vmem:[#allocation11_spill] sm:$0xff] }
 0x135   : > { %v2015_v28 = vpop.f32.mrf.mxu0  ;;  %v2059_v37 = vadd.f32 %v2058_v15, %v2057_v58  ;;  %v2053_v38 = vadd.f32 %v2793_v52, %v2792_v32 }
 0x136   : > { %v2016_v10 = vadd.f32 %v2015_v28, %v2014_v54  ;;  %v2056_v54 = vadd.f32 %v2055_v50, %v2737_v1 }
 0x137   : > { %v2017_v49 = vpop.f32.mrf.mxu0  ;;  %v1445_v1 = vadd.f32 %v2053_v38, %v1380_v25 }
 0x138   : > { %v1385_v47 = vadd.f32 %v2016_v10, %v1320_v29 }
 0x139   : > { %v2018_v48 = vpop.f32.mrf.mxu0 }
 0x13a   : > { %v2019_v11 = vadd.f32 %v2018_v48, %v2017_v49  ;;  %v1450_v56 = vadd.f32 %v2056_v54, %v1385_v47 }
 0x13b   : > { %v2102_v18 = vpop.f32.mrf.mxu0 }
 0x13c   : > { %v1499_v41 = vadd.f32 %v2102_v18, %v1434_v0  ;;  %v1388_v13 = vadd.f32 %v2019_v11, %v1323_v30 }
 0x13d   : > { %v1490_v12 = vpop.f32.mrf.mxu0 }
 0x13e   : > { %v1491_v17 = vadd.f32 %v1490_v12, %v1426_v3  ;;  %v1523_v39 = vmax.f32 %v1499_v41, 0.0  ;;  %v1453_v48 = vadd.f32 %v2059_v37, %v1388_v13 }
 0x13f   : > { %v2103_v5 = vpop.f32.mrf.mxu0 }
 0x140   : > { %v1502_v24 = vadd.f32 %v2103_v5, %v1437_v8  ;;  %v1521_v40 = vmax.f32 %v1491_v17, 0.0 }
 0x141   : > { %v1493_v16 = vpop.f32.mrf.mxu0 }
 0x142   : > { %v1494_v43 = vadd.f32 %v1493_v16, %v1429_v21  ;;  %v1524_v28 = vmax.f32 %v1502_v24, 0.0 }
 0x143   : > { %v2106_v49 = vpop.f32.mrf.mxu0 }
 0x144   : > { %v1522_v35 = vmax.f32 %v1494_v43, 0.0  ;;  %v1897_v51 = vpack.c.bf16 %v1524_v28, %v1523_v39  ;;  %v1515_v50 = vadd.f32 %v2106_v49, %v1450_v56 }
 0x145   : > { %v1506_v23 = vpop.f32.mrf.mxu0 }
 0x146   : > { %v1896_v44 = vpack.c.bf16 %v1522_v35, %v1521_v40  ;;  %v1507_v4 = vadd.f32 %v1506_v23, %v1442_v45  ;;  %v1527_v14 = vmax.f32 %v1515_v50, 0.0 }
 0x147   : > { %v2107_v59 = vpop.f32.mrf.mxu0 }
 0x148   : > { %v1518_v26 = vadd.f32 %v2107_v59, %v1453_v48  ;;  %2124 = vmatprep.mubr.bf16.mxu1 %v1896_v44  ;;  %v1525_v58 = vmax.f32 %v1507_v4, 0.0 }
 0x149   : > { %v1509_v36 = vpop.f32.mrf.mxu0  ;;  %2125 = vmatmul.mubr.bf16.vlgmr.msra.gmra.mxu1 %v1897_v51 }
 0x14a   : > { %v1510_v31 = vadd.f32 %v1509_v36, %v1445_v1  ;;  %v1528_v42 = vmax.f32 %v1518_v26, 0.0 }
 0x14c   : > { %v1526_v18 = vmax.f32 %v1510_v31, 0.0  ;;  %v1899_v55 = vpack.c.bf16 %v1528_v42, %v1527_v14 }
 0x14e   : > { %v1898_v53 = vpack.c.bf16 %v1526_v18, %v1525_v58 }
 0x150   : > { %2128 = vmatprep.mubr.bf16.mxu1 %v1898_v53 }
 0x151   : > { %2129 = vmatmul.mubr.bf16.gmra.mxu1 %v1899_v55 }
 0x209   : > { %v2126_v60 = vpop.f32.mrf.mxu1 }
 0x20a   : > { %v1675_v62 = vadd.f32 %v2126_v60, %v1879_v27 }
 0x20b   : > { %v1666_v2 = vpop.f32.mrf.mxu1 }
 0x20c   : > { %1699 = vst [vmem:[%s224_s6 + $0x10] sm:$0xff] %v1675_v62  ;;  %v1667_v57 = vadd.f32 %v1879_v27, %v1666_v2 }
 0x20d   : > { %v2127_v63 = vpop.f32.mrf.mxu1 }
 0x20e   : > { %1697 = vst [vmem:[%s224_s6] sm:$0xff] %v1667_v57  ;;  %v1678_v61 = vadd.f32 %v2127_v63, %v1879_v27 }
 0x20f   : > { %v1669_v6 = vpop.f32.mrf.mxu1 }
 0x210   : > { %1700 = vst [vmem:[%s224_s6 + $0x18] sm:$0xff] %v1678_v61  ;;  %v1670_v12 = vadd.f32 %v1879_v27, %v1669_v6 }
 0x211   : > { %v2130_v46 = vpop.f32.mrf.mxu1 }
 0x212   : > { %1698 = vst [vmem:[%s224_s6 + $0x8] sm:$0xff] %v1670_v12  ;;  %v1691_v11 = vadd.f32 %v2130_v46, %v1879_v27 }
 0x213   : > { %v1682_v3 = vpop.f32.mrf.mxu1 }
 0x214   : > { %1703 = vst [vmem:[%s224_s6 + $0x30] sm:$0xff] %v1691_v11  ;;  %v1683_v8 = vadd.f32 %v1879_v27, %v1682_v3 }
 0x215   : > { %v2131_v7 = vpop.f32.mrf.mxu1 }
 0x216   : > { %1701 = vst [vmem:[%s224_s6 + $0x20] sm:$0xff] %v1683_v8  ;;  %v1694_v30 = vadd.f32 %v2131_v7, %v1879_v27 }
 0x217   : > { %v1685_v10 = vpop.f32.mrf.mxu1 }
 0x218   : > { %1704 = vst [vmem:[%s224_s6 + $0x38] sm:$0xff] %v1694_v30  ;;  %v1686_v15 = vadd.f32 %v1879_v27, %v1685_v10 }
 0x21a   : > { %1702 = vst [vmem:[%s224_s6 + $0x28] sm:$0xff] %v1686_v15 }
 0x21b PF: > { %s15_s18 = sadd.s32 1, %s2239_s18  }
 0x21c   : > { %p12_p4 = scmp.ge.s32.totalorder %s15_s18, 4  }
 0x21e   :  { %14 = sbr.rel (!%p12_p4) target bundleno = 1 (0x1), region = 71 }

// kernel: network_heads.3
= control target key start
LH: loop header
LB: loop body
LE: loop exit
PB: predicated region body
PF: predicated region fallthrough
CT: control target
= control target key end

     0   :  { %s3924_s18 = smov 0   ;;  %s5192_s0 = inlined_call_operand.vmem [shape: bf16[2,16,16,128], index: 0, kind: input, shape index: {}]   ;;  %s5193_s1 = inlined_call_operand.vmem [shape: bf16[1152,128], index: 1, kind: input, shape index: {}]   ;;  %s5194_s2 = inlined_call_operand.vmem [shape: f32[1,128], index: 2, kind: input, shape index: {}]   ;;  %s5195_s3 = inlined_call_operand.vmem [shape: bf16[128,128], index: 3, kind: input, shape index: {}]   ;;  %s5196_s4 = inlined_call_operand.vmem [shape: f32[1,128], index: 4, kind: input, shape index: {}]   ;;  %s5197_s5 = inlined_call_operand.vmem [shape: f32[2,16,16,128], index: 5, kind: output, shape index: {}]  }
   0x1 LB: > { %s3032_s19 = sadd.s32 4294967295, %s3891_s18   ;;  %p3036_p0 = scmp.ge.s32.totalorder %s3891_s18, 1  ;;  %s3891_s18 = sphi %s3924_s18, %s15_s18  }
   0x2   : > { %p187_p1 = scmp.lt.s32.totalorder %s3891_s18, 3 }
   0x4   : > { %p188_p2 = pnand %p3036_p0, %p187_p1 }
   0x6   : > { %191 = sbr.rel (%p188_p2) target bundleno = 774 (0x306), region = 40 }
   0xb   : > { %v3764_v0 = vld [vmem:[%s5193_s1 + $0x78] sm:$0xff]   ;;  %v3893_v2 = vmov 0   ;;  %v3768_v5 = vld [vmem:[%s5193_s1 + $0x70] sm:$0xff]   ;;  %v3772_v9 = vld [vmem:[%s5193_s1 + $0x68] sm:$0xff]   ;;  %p215_p3 = scmp.lt.s32.totalorder %s3032_s19, 1  ;;  %vm636_vm0 = vcmask 1043456  }
   0xc   : > { %v3765_v1 = vld [vmem:[%s5193_s1 + $0x38] sm:$0xff]   ;;  %226 = vst [vmem:[#allocation2] sm:$0xf] %v3893_v2  ;;  %227 = vst [vmem:[#allocation2 + $0x4] sm:$0xf] %v3893_v2  ;;  %3163 = vmatprep.subr.bf16.mxu0 %v3764_v0  ;;  %v3769_v6 = vld [vmem:[%s5193_s1 + $0x30] sm:$0xff]  }
   0xd   : > { %228 = vst [vmem:[#allocation2 + $0x8] sm:$0x1] %v3893_v2  ;;  %229 = vst [vmem:[#allocation2 + $0xc] sm:$0xf] %v3893_v2  ;;  %v3766_v3 = vld [vmem:[%s5193_s1 + $0xf8] sm:$0xff]   ;;  %3164 = vmatpush3.bf16.msra.mxu0 %v3765_v1  ;;  %v3770_v7 = vld [vmem:[%s5193_s1 + $0xf0] sm:$0xff]  }
   0xe   : > { %230 = vst [vmem:[#allocation2 + $0x10] sm:$0xf] %v3893_v2  ;;  %231 = vst [vmem:[#allocation2 + $0x14] sm:$0x1] %v3893_v2  ;;  %v3767_v4 = vld [vmem:[%s5193_s1 + $0xb8] sm:$0xff]   ;;  %3275 = vmatprep.subr.bf16.mxu1 %v3766_v3  ;;  %3165 = vmatprep.subr.bf16.mxu0 %v3768_v5  ;;  %v3771_v8 = vld [vmem:[%s5193_s1 + $0xb0] sm:$0xff]  }
   0xf   : > { %232 = vst [vmem:[#allocation2 + $0x18] sm:$0xf] %v3893_v2  ;;  %233 = vst [vmem:[#allocation2 + $0x1c] sm:$0xf] %v3893_v2  ;;  %3276 = vmatpush3.bf16.msra.mxu1 %v3767_v4  ;;  %v3773_v10 = vld [vmem:[%s5193_s1 + $0x28] sm:$0xff]   ;;  %v3776_v13 = vld [vmem:[%s5193_s1 + $0x60] sm:$0xff]  }
  0x10   : > { %234 = vst [vmem:[#allocation2 + $0x20] sm:$0x1] %v3893_v2  ;;  %235 = vst [vmem:[#allocation2 + $0x24] sm:$0xf] %v3893_v2  ;;  %3277 = vmatprep.subr.bf16.mxu1 %v3770_v7  ;;  %v3774_v11 = vld [vmem:[%s5193_s1 + $0xe8] sm:$0xff]   ;;  %v3777_v14 = vld [vmem:[%s5193_s1 + $0x20] sm:$0xff]  }
  0x11   : > { %236 = vst [vmem:[#allocation2 + $0x28] sm:$0xf] %v3893_v2  ;;  %237 = vst [vmem:[#allocation2 + $0x2c] sm:$0x1] %v3893_v2  ;;  %3166 = vmatpush3.bf16.msra.mxu0 %v3769_v6  ;;  %v3775_v12 = vld [vmem:[%s5193_s1 + $0xa8] sm:$0xff]   ;;  %v3778_v15 = vld [vmem:[%s5193_s1 + $0xe0] sm:$0xff]  }
  0x12   : > { %238 = vst [vmem:[#allocation2 + $0x30] sm:$0xf] %v3893_v2  ;;  %239 = vst [vmem:[#allocation2 + $0x34] sm:$0xf] %v3893_v2  ;;  %3167 = vmatprep.subr.bf16.mxu0 %v3772_v9  ;;  %v3779_v16 = vld [vmem:[%s5193_s1 + $0xa0] sm:$0xff]   ;;  %v3780_v17 = vld [vmem:[%s5193_s1 + $0x58] sm:$0xff]  }
  0x13   : > { %240 = vst [vmem:[#allocation2 + $0x38] sm:$0x1] %v3893_v2  ;;  %241 = vst [vmem:[#allocation2 + $0x3c] sm:$0xf] %v3893_v2  ;;  %3278 = vmatpush3.bf16.msra.mxu1 %v3771_v8  ;;  %v3781_v18 = vld [vmem:[%s5193_s1 + $0x18] sm:$0xff]   ;;  %v3784_v21 = vld [vmem:[%s5193_s1 + $0x50] sm:$0xff]  }
  0x14   : > { %242 = vst [vmem:[#allocation2 + $0x40] sm:$0xf] %v3893_v2  ;;  %243 = vst [vmem:[#allocation2 + $0x44] sm:$0x1] %v3893_v2  ;;  %3279 = vmatprep.subr.bf16.mxu1 %v3774_v11  ;;  %v3782_v19 = vld [vmem:[%s5193_s1 + $0xd8] sm:$0xff]   ;;  %v3785_v22 = vld [vmem:[%s5193_s1 + $0x10] sm:$0xff]  }
  0x15   : > { %244 = vst [vmem:[#allocation2 + $0x48] sm:$0xf] %v3893_v2  ;;  %245 = vst [vmem:[#allocation2 + $0x4c] sm:$0xf] %v3893_v2  ;;  %3168 = vmatpush3.bf16.msra.mxu0 %v3773_v10  ;;  %v3783_v20 = vld [vmem:[%s5193_s1 + $0x98] sm:$0xff]   ;;  %v3786_v23 = vld [vmem:[%s5193_s1 + $0xd0] sm:$0xff]  }
  0x16   : > { %246 = vst [vmem:[#allocation2 + $0x50] sm:$0x1] %v3893_v2  ;;  %247 = vst [vmem:[#allocation2 + $0x54] sm:$0xf] %v3893_v2  ;;  %3169 = vmatprep.subr.bf16.mxu0 %v3776_v13  ;;  %v3787_v24 = vld [vmem:[%s5193_s1 + $0x90] sm:$0xff]   ;;  %v3788_v25 = vld [vmem:[%s5193_s1 + $0x48] sm:$0xff]  }
  0x17   : > { %248 = vst [vmem:[#allocation2 + $0x58] sm:$0xf] %v3893_v2  ;;  %249 = vst [vmem:[#allocation2 + $0x5c] sm:$0x1] %v3893_v2  ;;  %3280 = vmatpush3.bf16.msra.mxu1 %v3775_v12  ;;  %v3789_v26 = vld [vmem:[%s5193_s1 + $0x8] sm:$0xff]   ;;  %s5261_s19 = smov (!%p215_p3, %s3032_s19), 1 }
  0x18   : > { %250 = vst [vmem:[#allocation2 + $0x60] sm:$0xf] %v3893_v2  ;;  %251 = vst [vmem:[#allocation2 + $0x64] sm:$0xf] %v3893_v2  ;;  %3281 = vmatprep.subr.bf16.mxu1 %v3778_v15  ;;  %v3790_v27 = vld [vmem:[%s5193_s1 + $0xc8] sm:$0xff]   ;;  %v3792_v29 = vld [vmem:[%s5193_s1 + $0x40] sm:$0xff]  }
  0x19   : > { %252 = vst [vmem:[#allocation2 + $0x68] sm:$0x1] %v3893_v2  ;;  %253 = vst [vmem:[#allocation2 + $0x6c] sm:$0xf] %v3893_v2  ;;  %3170 = vmatpush3.bf16.msra.mxu0 %v3777_v14  ;;  %v3791_v28 = vld [vmem:[%s5193_s1 + $0x88] sm:$0xff]   ;;  %v3793_v30 = vld [vmem:[%s5193_s1] sm:$0xff]  }
  0x1a   : > { %254 = vst [vmem:[#allocation2 + $0x70] sm:$0xf] %v3893_v2  ;;  %255 = vst [vmem:[#allocation2 + $0x74] sm:$0x1] %v3893_v2  ;;  %3171 = vmatprep.subr.bf16.mxu0 %v3780_v17  ;;  %s3161_s9 = sshll.u32 %s5261_s19, 7  ;;  %v3794_v31 = vld [vmem:[%s5193_s1 + $0xc0] sm:$0xff]  }
  0x1b   : > { %256 = vst [vmem:[#allocation2 + $0x78] sm:$0xf] %v3893_v2  ;;  %257 = vst [vmem:[#allocation2 + $0x7c] sm:$0xf] %v3893_v2  ;;  %3282 = vmatpush3.bf16.msra.mxu1 %v3779_v16  ;;  %v4032_v32 = vld [vmem:[#allocation2] sm:$0xff]   ;;  %s4039_s14 = scalar_lea.vmem %s5192_s0, %s3161_s9  ;;  %vm643_vm2 = vcmask 1040384  }
  0x1c   : > { %258 = vst [vmem:[#allocation2 + $0x80] sm:$0x1] %v3893_v2  ;;  %259 = vst [vmem:[#allocation2 + $0x84] sm:$0xf] %v3893_v2  ;;  %3283 = vmatprep.subr.bf16.mxu1 %v3782_v19  ;;  %vm951_vm1 = vsmask.f32 7424 }
  0x1d   : > { %260 = vst [vmem:[#allocation2 + $0x88] sm:$0xf] %v3893_v2  ;;  %261 = vst [vmem:[#allocation2 + $0x8c] sm:$0x1] %v3893_v2  ;;  %3172 = vmatpush3.bf16.msra.mxu0 %v3781_v18  ;;  %v3797_v34 = vld [vmem:[%s5193_s1 + $0x80] sm:$0xff]   ;;  %v953_v35 = vshrl.u32 %v4032_v32, 16 }
  0x1e   : > { %262 = vst [vmem:[#allocation2 + $0x90] sm:$0xf] %v3893_v2  ;;  %263 = vst [vmem:[#allocation2 + $0x94] sm:$0xf] %v3893_v2  ;;  %3173 = vmatprep.subr.bf16.mxu0 %v3784_v21  ;;  %v955_v36 = vshll.u32 %v4032_v32, 16  ;;  %v3798_v38 = vld [vmem:[%s5193_s1 + $0x178] sm:$0xff]  }
  0x1f   : > { %264 = vst [vmem:[#allocation2 + $0x98] sm:$0x1] %v3893_v2  ;;  %265 = vst [vmem:[#allocation2 + $0x9c] sm:$0xf] %v3893_v2  ;;  %3284 = vmatpush3.bf16.msra.mxu1 %v3783_v20  ;;  %v280_v39 = vld [vmem:[%s4039_s14] sm:$0xf] }
  0x20   : > { %266 = vst [vmem:[#allocation2 + $0xa0] sm:$0xf] %v3893_v2  ;;  %267 = vst [vmem:[#allocation2 + $0xa4] sm:$0x1] %v3893_v2  ;;  %3285 = vmatprep.subr.bf16.mxu1 %v3786_v23  ;;  %v281_v40 = vld [vmem:[%s4039_s14 + $0x4] sm:$0xf] }
  0x21   : > { %268 = vst [vmem:[#allocation2 + $0xa8] sm:$0xf] %v3893_v2  ;;  %269 = vst [vmem:[#allocation2 + $0xac] sm:$0xf] %v3893_v2  ;;  %3174 = vmatpush3.bf16.msra.mxu0 %v3785_v22  ;;  %v957_v41 = vrot.slane %v955_v36, 1  ;;  %v316_v43 = vshrl.u32 %v280_v39, 16 }
  0x22   : > { %270 = vst [vmem:[#allocation2 + $0xb0] sm:$0x1] %v3893_v2  ;;  %271 = vst [vmem:[#allocation2 + $0xb4] sm:$0xf] %v3893_v2  ;;  %3175 = vmatprep.subr.bf16.mxu0 %v3788_v25  ;;  %vm312_vm3 = vsmask.f32 256 }
  0x23   : > { %272 = vst [vmem:[#allocation2 + $0xb8] sm:$0xf] %v3893_v2  ;;  %273 = vst [vmem:[#allocation2 + $0xbc] sm:$0x1] %v3893_v2  ;;  %3286 = vmatpush3.bf16.msra.mxu1 %v3787_v24  ;;  %vm313_vm4 = vsmask.f32 4368  ;;  %v958_v47 = vor.u32 %v957_v41, %v953_v35 }
  0x24   : > { %274 = vst [vmem:[#allocation2 + $0xc0] sm:$0xf] %v3893_v2  ;;  %275 = vst [vmem:[#allocation2 + $0xc4] sm:$0xf] %v3893_v2  ;;  %3287 = vmatprep.subr.bf16.mxu1 %v3790_v27  ;;  %v319_v44 = vshll.u32 %v280_v39, 16  ;;  %v324_v45 = vshrl.u32 %v281_v40, 16 }
  0x25   : > { %276 = vst [vmem:[#allocation2 + $0xc8] sm:$0x1] %v3893_v2  ;;  %277 = vst [vmem:[#allocation2 + $0xcc] sm:$0xf] %v3893_v2  ;;  %3176 = vmatpush3.bf16.msra.mxu0 %v3789_v26  ;;  %v327_v46 = vshll.u32 %v281_v40, 16  ;;  %v318_v49 = vrot.slane %v316_v43, 7 }
  0x26   : > { %278 = vst [vmem:[#allocation2 + $0xd0] sm:$0xf] %v3893_v2  ;;  %279 = vst [vmem:[#allocation2 + $0xd4] sm:$0x1] %v3893_v2  ;;  %3177 = vmatprep.subr.bf16.mxu0 %v3792_v29  ;;  %vm637_vm6 = vsmask.f32 7938 }
  0x27   : > { %3288 = vmatpush3.bf16.msra.mxu1 %v3791_v28  ;;  %v4034_v33 = vld [vmem:[#allocation2 + $0x8] ss:$0 sps:$4 sm:$0x11]   ;;  %vm4053_vm5 = vmor %vm312_vm3, %vm313_vm4  ;;  %v326_v50 = vrot.slane %v324_v45, 7  ;;  %v639_v52 = vld [vmem:[#allocation2 + $0xc] sm:$0xf]  ;;  %v321_v59 = vor.u32 %v319_v44, %v318_v49 }
  0x28   : > { %3289 = vmatprep.subr.bf16.mxu1 %v3794_v31  ;;  %v960_v37 = vshll.u32 %v4034_v33, 16  ;;  %vm4058_vm7 = vmand %vm636_vm0, %vm637_vm6  ;;  %v3800_v53 = vld [vmem:[%s5193_s1 + $0x138] sm:$0xff]   ;;  %vm1160_vm8 = vcmask 1046528   ;;  %v1161_v55 = vrot.slane %v4032_v32, 1  ;;  %v282_v56 = vld [vmem:[%s4039_s14 + $0x8] sm:$0xf] }
  0x29   : > { %3178 = vmatpush3.bf16.msra.mxu0 %v3793_v30  ;;  %v283_v57 = vld [vmem:[%s4039_s14 + $0xc] sm:$0xf]  ;;  %v3804_v58 = vld [vmem:[%s5193_s1 + $0x170] sm:$0xff]   ;;  %v322_v60 = vrot.slane %v318_v49, 4  ;;  %v329_v61 = vor.u32 %v327_v46, %v326_v50  ;;  %v1162_v62 = vrot.slane %v4034_v33, 1  ;;  %vm4075_vm9 = vmand %vm643_vm2, %vm312_vm3  ;;  %v331_v1 = vrot.slane %v326_v50, 4 }
  0x2a   : > { %v962_v42 = vrot.slane %v960_v37, 1  ;;  %3387 = vmatprep.subr.bf16.mxu0 %v3798_v38  ;;  %v645_v0 = vld [vmem:[#allocation2 + $0x14] sm:$0x1]  ;;  %v333_v2 = vshrl.u32 %v282_v56, 16  ;;  %v336_v3 = vshll.u32 %v282_v56, 16  ;;  %v341_v4 = vshrl.u32 %v283_v57, 16 }
  0x2b   : > { %3290 = vmatpush3.bf16.msra.mxu1 %v3797_v34  ;;  %v330_v5 = vsel %vm4053_vm5, %v322_v60, %v329_v61  ;;  %v640_v6 = vsel %vm4058_vm7, %v321_v59, %v639_v52  ;;  %v344_v7 = vshll.u32 %v283_v57, 16  ;;  %v648_v8 = vld [vmem:[#allocation2 + $0x18] sm:$0xf]  ;;  %v284_v9 = vld [vmem:[%s4039_s14 + $0x10] sm:$0xf]  ;;  %v646_v11 = vsel %vm4075_vm9, %v331_v1, %v645_v0  ;;  %v3810_v16 = vld [vmem:[%s5193_s1 + $0x168] sm:$0xff]  }
  0x2c   : > { %v963_v54 = vsel %vm951_vm1, %v958_v47, %v962_v42  ;;  %v3806_v10 = vld [vmem:[%s5193_s1 + $0x130] sm:$0xff]   ;;  %641 = vst [vmem:[#allocation2 + $0xc] sm:$0xf] %v640_v6  ;;  %642 = vst [vmem:[#allocation2 + $0x10] sm:$0xf] %v330_v5  ;;  %v335_v12 = vrot.slane %v333_v2, 7  ;;  %v1163_v43 = vsel %vm1160_vm8, %v1161_v55, %v1162_v62 }
  0x2d   : > { %1892 = vmatprep.mubr.bf16.mxu0 %v963_v54  ;;  %v343_v13 = vrot.slane %v341_v4, 7  ;;  %v285_v14 = vld [vmem:[%s4039_s14 + $0x14] sm:$0xf]  ;;  %v350_v15 = vshrl.u32 %v284_v9, 16  ;;  %647 = vst [vmem:[#allocation2 + $0x14] sm:$0x1] %v646_v11 }
  0x2e   : > { %1893 = vmatmul.mubr.bf16.vlgmr.msra.gmra.mxu0 %v4032_v32  ;;  %v652_v17 = vld [vmem:[#allocation2 + $0x20] sm:$0x1]  ;;  %v353_v18 = vshll.u32 %v284_v9, 16  ;;  %v358_v19 = vshrl.u32 %v285_v14, 16  ;;  %v361_v20 = vshll.u32 %v285_v14, 16  ;;  %v3812_v21 = vld [vmem:[%s5193_s1 + $0x128] sm:$0xff]   ;;  %v338_v22 = vor.u32 %v336_v3, %v335_v12 }
  0x2f   : > { %3388 = vmatpush3.bf16.msra.mxu0 %v3800_v53  ;;  %v339_v23 = vrot.slane %v335_v12, 4  ;;  %v346_v24 = vor.u32 %v344_v7, %v343_v13  ;;  %v348_v25 = vrot.slane %v343_v13, 4  ;;  %v352_v26 = vrot.slane %v350_v15, 7  ;;  %v655_v28 = vld [vmem:[#allocation2 + $0x24] sm:$0xf]  ;;  %v3821_v4 = vld [vmem:[%s5193_s1 + $0x1f8] sm:$0xff]  }
  0x30   : > { %3389 = vmatprep.subr.bf16.mxu0 %v3804_v58  ;;  %v360_v27 = vrot.slane %v358_v19, 7  ;;  %v286_v29 = vld [vmem:[%s4039_s14 + $0x18] sm:$0xf]  ;;  %v649_v31 = vsel %vm4058_vm7, %v338_v22, %v648_v8  ;;  %v659_v34 = vld [vmem:[#allocation2 + $0x2c] sm:$0x1]  ;;  %v3816_v37 = vld [vmem:[%s5193_s1 + $0x160] sm:$0xff]   ;;  %3499 = vmatprep.subr.bf16.mxu1 %v3821_v4 }
  0x31   : > { %v347_v30 = vsel %vm4053_vm5, %v339_v23, %v346_v24  ;;  %v653_v33 = vsel %vm4075_vm9, %v348_v25, %v652_v17  ;;  %v287_v35 = vld [vmem:[%s4039_s14 + $0x1c] sm:$0xf]  ;;  %v367_v36 = vshrl.u32 %v286_v29, 16  ;;  %650 = vst [vmem:[#allocation2 + $0x18] sm:$0xf] %v649_v31  ;;  %v355_v38 = vor.u32 %v353_v18, %v352_v26  ;;  %v3818_v47 = vld [vmem:[%s5193_s1 + $0x120] sm:$0xff]  }
  0x32   : > { %651 = vst [vmem:[#allocation2 + $0x1c] sm:$0xf] %v347_v30  ;;  %654 = vst [vmem:[#allocation2 + $0x20] sm:$0x1] %v653_v33  ;;  %v356_v39 = vrot.slane %v352_v26, 4  ;;  %v363_v40 = vor.u32 %v361_v20, %v360_v27  ;;  %v365_v41 = vrot.slane %v360_v27, 4 }
  0x33   : > { %3390 = vmatpush3.bf16.msra.mxu0 %v3806_v10  ;;  %v662_v42 = vld [vmem:[#allocation2 + $0x30] sm:$0xf]  ;;  %v369_v44 = vrot.slane %v367_v36, 7  ;;  %v370_v45 = vshll.u32 %v286_v29, 16  ;;  %v375_v46 = vshrl.u32 %v287_v35, 16  ;;  %v656_v52 = vsel %vm4058_vm7, %v355_v38, %v655_v28  ;;  %v3822_v10 = vld [vmem:[%s5193_s1 + $0x1b8] sm:$0xff]  }
  0x34   : > { %3391 = vmatprep.subr.bf16.mxu0 %v3810_v16  ;;  %v3799_v49 = vld [vmem:[#allocation2 + $0xc] sm:$0xff]   ;;  %v364_v50 = vsel %vm4053_vm5, %v356_v39, %v363_v40  ;;  %v660_v32 = vsel %vm4075_vm9, %v365_v41, %v659_v34  ;;  %v378_v53 = vshll.u32 %v287_v35, 16  ;;  %v3801_v54 = vld [vmem:[#allocation2 + $0x14] ss:$0 sps:$4 sm:$0x11]   ;;  %s3162_s27 = sshll.u32 %s5261_s19, 8 }
  0x35   : > { %657 = vst [vmem:[#allocation2 + $0x24] sm:$0xf] %v656_v52  ;;  %658 = vst [vmem:[#allocation2 + $0x28] sm:$0xf] %v364_v50  ;;  %v372_v55 = vor.u32 %v370_v45, %v369_v44  ;;  %v373_v56 = vrot.slane %v369_v44, 4  ;;  %2053 = vmatprep.mubr.bf16.mxu1 %v3799_v49  ;;  %v965_v57 = vshrl.u32 %v3799_v49, 16  ;;  %s5123_s7 = scalar_lea.vmem %s5197_s5, %s3162_s27 }
  0x36   : > { %661 = vst [vmem:[#allocation2 + $0x2c] sm:$0x1] %v660_v32  ;;  %v967_v58 = vshll.u32 %v3799_v49, 16  ;;  %v1164_v59 = vrot.slane %v3799_v49, 1  ;;  %v377_v60 = vrot.slane %v375_v46, 7  ;;  %2054 = vmatmul.mubr.bf16.vlgmr.msra.gmra.mxu1 %v1163_v43  ;;  %v972_v62 = vshll.u32 %v3801_v54, 16 }
  0x37   : > { %3392 = vmatpush3.bf16.msra.mxu0 %v3812_v21  ;;  %v288_v61 = vld [vmem:[%s4039_s14 + $0x20] sm:$0xf]  ;;  %v1165_v0 = vrot.slane %v3801_v54, 1  ;;  %v663_v1 = vsel %vm4058_vm7, %v372_v55, %v662_v42  ;;  %v666_v2 = vld [vmem:[#allocation2 + $0x38] sm:$0x1]  ;;  %3500 = vmatpush3.bf16.msra.mxu1 %v3822_v10 }
  0x38   : > { %3393 = vmatprep.subr.bf16.mxu0 %v3816_v37  ;;  %v384_v3 = vshrl.u32 %v288_v61, 16  ;;  %v969_v5 = vrot.slane %v967_v58, 1  ;;  %v380_v6 = vor.u32 %v378_v53, %v377_v60  ;;  %664 = vst [vmem:[#allocation2 + $0x30] sm:$0xf] %v663_v1  ;;  %v382_v7 = vrot.slane %v377_v60, 4  ;;  %v3824_v1 = vld [vmem:[%s5193_s1 + $0x158] sm:$0xff]  }
  0x39   : > { %v289_v8 = vld [vmem:[%s4039_s14 + $0x24] sm:$0xf]  ;;  %v387_v9 = vshll.u32 %v288_v61, 16  ;;  %v974_v11 = vrot.slane %v972_v62, 1  ;;  %v4130_v12 = vld [vmem:[#allocation2 + $0x18] sm:$0xff]   ;;  %v4143_v23 = vsel %vm1160_vm8, %v1164_v59, %v1165_v0 }
  0x3a   : > { %v669_v13 = vld [vmem:[#allocation2 + $0x3c] sm:$0xf]  ;;  %v970_v14 = vor.u32 %v969_v5, %v965_v57  ;;  %v3803_v15 = vld [vmem:[#allocation2 + $0x20] ss:$0 sps:$4 sm:$0x11]   ;;  %v381_v16 = vsel %vm4053_vm5, %v373_v56, %v380_v6  ;;  %v667_v17 = vsel %vm4075_vm9, %v382_v7, %v666_v2  ;;  %v386_v18 = vrot.slane %v384_v3, 7  ;;  %2061 = vmatprep.mubr.bf16.mxu1 %v4130_v12 }
  0x3b   : > { %3394 = vmatpush3.bf16.msra.mxu0 %v3818_v47  ;;  %v977_v19 = vshrl.u32 %v4130_v12, 16  ;;  %v979_v20 = vshll.u32 %v4130_v12, 16  ;;  %665 = vst [vmem:[#allocation2 + $0x34] sm:$0xf] %v381_v16  ;;  %668 = vst [vmem:[#allocation2 + $0x38] sm:$0x1] %v667_v17 }
  0x3c   : > { %v392_v21 = vshrl.u32 %v289_v8, 16  ;;  %v4140_v22 = vsel %vm951_vm1, %v970_v14, %v974_v11  ;;  %v984_v24 = vshll.u32 %v3803_v15, 16  ;;  %v4145_v25 = vld [vmem:[#allocation2 + $0x24] sm:$0xff]   ;;  %v389_v26 = vor.u32 %v387_v9, %v386_v18  ;;  %v291_v47 = vld [vmem:[%s4039_s14 + $0x2c] sm:$0xf]  ;;  %3395 = vmatprep.subr.bf16.mxu0 %v3824_v1 }
  0x3d   : > { %1900 = vmatprep.mubr.bf16.mxu0 %v4140_v22  ;;  %v981_v27 = vrot.slane %v979_v20, 1  ;;  %v1167_v28 = vrot.slane %v4130_v12, 1  ;;  %v1168_v29 = vrot.slane %v3803_v15, 1  ;;  %v4149_v33 = vld [vmem:[#allocation2 + $0x2c] ss:$0 sps:$4 sm:$0x11]  }
  0x3e   : > { %v394_v30 = vrot.slane %v392_v21, 7  ;;  %1901 = vmatmul.mubr.bf16.gmra.mxu0 %v3799_v49  ;;  %v986_v31 = vrot.slane %v984_v24, 1  ;;  %v989_v34 = vshrl.u32 %v4145_v25, 16  ;;  %v991_v35 = vshll.u32 %v4145_v25, 16  ;;  %2062 = vmatmul.mubr.bf16.gmra.mxu1 %v4143_v23  ;;  %v673_v43 = vld [vmem:[#allocation2 + $0x44] sm:$0x1] }
  0x3f   : > { %v670_v36 = vsel %vm4058_vm7, %v389_v26, %v669_v13  ;;  %v982_v37 = vor.u32 %v981_v27, %v977_v19  ;;  %v390_v38 = vrot.slane %v386_v18, 4  ;;  %v395_v39 = vshll.u32 %v289_v8, 16  ;;  %2069 = vmatprep.mubr.bf16.mxu1 %v4145_v25  ;;  %v290_v46 = vld [vmem:[%s4039_s14 + $0x28] sm:$0xf]  ;;  %v680_v6 = vld [vmem:[#allocation2 + $0x50] sm:$0x1] }
  0x40   : > { %671 = vst [vmem:[#allocation2 + $0x3c] sm:$0xf] %v670_v36  ;;  %v993_v40 = vrot.slane %v991_v35, 1  ;;  %v996_v41 = vshll.u32 %v4149_v33, 16  ;;  %v399_v42 = vrot.slane %v394_v30, 4  ;;  %v4165_v49 = vsel %vm1160_vm8, %v1167_v28, %v1168_v29  ;;  %v3826_v26 = vld [vmem:[%s5193_s1 + $0x118] sm:$0xff]  }
  0x41   : > { %v4159_v44 = vsel %vm951_vm1, %v982_v37, %v986_v31  ;;  %v397_v45 = vor.u32 %v395_v39, %v394_v30  ;;  %v401_v56 = vshrl.u32 %v290_v46, 16  ;;  %v404_v57 = vshll.u32 %v290_v46, 16  ;;  %v676_v0 = vld [vmem:[#allocation2 + $0x48] sm:$0xf]  ;;  %v292_v13 = vld [vmem:[%s4039_s14 + $0x30] sm:$0xf]  ;;  %3396 = vmatpush3.bf16.msra.mxu0 %v3826_v26 }
  0x42   : > { %1908 = vmatprep.mubr.bf16.mxu0 %v4159_v44  ;;  %v994_v50 = vor.u32 %v993_v40, %v989_v34  ;;  %v998_v52 = vrot.slane %v996_v41, 1  ;;  %v4167_v32 = vld [vmem:[#allocation2 + $0x30] sm:$0xff]   ;;  %v674_v53 = vsel %vm4075_vm9, %v399_v42, %v673_v43  ;;  %v4171_v54 = vld [vmem:[#allocation2 + $0x38] ss:$0 sps:$4 sm:$0x11]   ;;  %v409_v58 = vshrl.u32 %v291_v47, 16 }
  0x43   : > { %v398_v55 = vsel %vm4053_vm5, %v390_v38, %v397_v45  ;;  %675 = vst [vmem:[#allocation2 + $0x44] sm:$0x1] %v674_v53  ;;  %v1170_v60 = vrot.slane %v4145_v25, 1  ;;  %v1001_v61 = vshrl.u32 %v4167_v32, 16  ;;  %v1003_v62 = vshll.u32 %v4167_v32, 16  ;;  %v3829_v41 = vld [vmem:[%s5193_s1 + $0x1f0] sm:$0xff]  }
  0x44   : > { %v4176_v59 = vsel %vm951_vm1, %v994_v50, %v998_v52  ;;  %672 = vst [vmem:[#allocation2 + $0x40] sm:$0xf] %v398_v55  ;;  %v1171_v2 = vrot.slane %v4149_v33, 1  ;;  %v1008_v3 = vshll.u32 %v4171_v54, 16  ;;  %v403_v4 = vrot.slane %v401_v56, 7  ;;  %v3830_v50 = vld [vmem:[%s5193_s1 + $0x1b0] sm:$0xff]   ;;  %3501 = vmatprep.subr.bf16.mxu1 %v3829_v41 }
  0x45   : > { %v411_v5 = vrot.slane %v409_v58, 7  ;;  %v1005_v7 = vrot.slane %v1003_v62, 1  ;;  %v412_v8 = vshll.u32 %v291_v47, 16  ;;  %v293_v14 = vld [vmem:[%s4039_s14 + $0x34] sm:$0xf]  ;;  %v418_v18 = vshrl.u32 %v292_v13, 16  ;;  %3502 = vmatpush3.bf16.msra.mxu1 %v3830_v50 }
  0x46   : > { %1909 = vmatmul.mubr.bf16.gmra.mxu0 %v4130_v12  ;;  %2070 = vmatmul.mubr.bf16.gmra.mxu1 %v4165_v49  ;;  %v1010_v9 = vrot.slane %v1008_v3, 1  ;;  %v406_v10 = vor.u32 %v404_v57, %v403_v4  ;;  %v407_v11 = vrot.slane %v403_v4, 4  ;;  %v421_v19 = vshll.u32 %v292_v13, 16  ;;  %v683_v24 = vld [vmem:[#allocation2 + $0x54] sm:$0xf]  ;;  %v3838_v26 = vld [vmem:[%s5193_s1 + $0x1a8] sm:$0xff]  }
  0x47   : > { %1916 = vmatprep.mubr.bf16.mxu0 %v4176_v59  ;;  %2077 = vmatprep.mubr.bf16.mxu1 %v4167_v32  ;;  %v1006_v15 = vor.u32 %v1005_v7, %v1001_v61  ;;  %v414_v16 = vor.u32 %v412_v8, %v411_v5  ;;  %v416_v17 = vrot.slane %v411_v5, 4  ;;  %v426_v20 = vshrl.u32 %v293_v14, 16  ;;  %v687_v35 = vld [vmem:[#allocation2 + $0x5c] sm:$0x1]  ;;  %v294_v40 = vld [vmem:[%s4039_s14 + $0x38] sm:$0xf] }
  0x48   : > { %v677_v12 = vsel %vm4058_vm7, %v406_v10, %v676_v0  ;;  %v429_v21 = vshll.u32 %v293_v14, 16  ;;  %v420_v30 = vrot.slane %v418_v18, 7  ;;  %v4204_v31 = vsel %vm1160_vm8, %v1170_v60, %v1171_v2  ;;  %v295_v47 = vld [vmem:[%s4039_s14 + $0x3c] sm:$0xf]  ;;  %v3832_v57 = vld [vmem:[%s5193_s1 + $0x150] sm:$0xff]   ;;  %v3837_v18 = vld [vmem:[%s5193_s1 + $0x1e8] sm:$0xff]  }
  0x49   : > { %v415_v28 = vsel %vm4053_vm5, %v407_v11, %v414_v16  ;;  %678 = vst [vmem:[#allocation2 + $0x48] sm:$0xf] %v677_v12  ;;  %v681_v29 = vsel %vm4075_vm9, %v416_v17, %v680_v6  ;;  %v428_v34 = vrot.slane %v426_v20, 7  ;;  %v4209_v36 = vsel %vm951_vm1, %v1006_v15, %v1010_v9  ;;  %v690_v60 = vld [vmem:[#allocation2 + $0x60] sm:$0xf]  ;;  %v3834_v2 = vld [vmem:[%s5193_s1 + $0x110] sm:$0xff]   ;;  %3397 = vmatprep.subr.bf16.mxu0 %v3832_v57 }
  0x4a   : > { %v4197_v27 = vld [vmem:[#allocation2 + $0x44] ss:$0 sps:$4 sm:$0x11]   ;;  %679 = vst [vmem:[#allocation2 + $0x4c] sm:$0xf] %v415_v28  ;;  %v423_v38 = vor.u32 %v421_v19, %v420_v30  ;;  %v424_v39 = vrot.slane %v420_v30, 4  ;;  %3398 = vmatpush3.bf16.msra.mxu0 %v3834_v2  ;;  %3503 = vmatprep.subr.bf16.mxu1 %v3837_v18 }
  0x4b   : > { %v4206_v33 = vld [vmem:[#allocation2 + $0x3c] sm:$0xff]   ;;  %682 = vst [vmem:[#allocation2 + $0x50] sm:$0x1] %v681_v29  ;;  %v1020_v37 = vshll.u32 %v4197_v27, 16  ;;  %v1173_v42 = vrot.slane %v4167_v32, 1  ;;  %v431_v46 = vor.u32 %v429_v21, %v428_v34  ;;  %v1174_v52 = vrot.slane %v4171_v54, 1  ;;  %3504 = vmatpush3.bf16.msra.mxu1 %v3838_v26 }
  0x4c   : > { %v1013_v43 = vshrl.u32 %v4206_v33, 16  ;;  %v1015_v45 = vshll.u32 %v4206_v33, 16  ;;  %v684_v53 = vsel %vm4058_vm7, %v423_v38, %v683_v24  ;;  %v433_v55 = vrot.slane %v428_v34, 4  ;;  %v694_v9 = vld [vmem:[#allocation2 + $0x68] sm:$0x1] }
  0x4d   : > { %v435_v56 = vshrl.u32 %v294_v40, 16  ;;  %685 = vst [vmem:[#allocation2 + $0x54] sm:$0xf] %v684_v53  ;;  %v438_v54 = vshll.u32 %v294_v40, 16  ;;  %v1022_v61 = vrot.slane %v1020_v37, 1  ;;  %v443_v1 = vshrl.u32 %v295_v47, 16 }
  0x4e   : > { %1917 = vmatmul.mubr.bf16.gmra.mxu0 %v4145_v25  ;;  %2078 = vmatmul.mubr.bf16.gmra.mxu1 %v4204_v31  ;;  %v1017_v58 = vrot.slane %v1015_v45, 1  ;;  %v432_v25 = vsel %vm4053_vm5, %v424_v39, %v431_v46  ;;  %v688_v62 = vsel %vm4075_vm9, %v433_v55, %v687_v35  ;;  %v1177_v4 = vrot.slane %v4197_v27, 1  ;;  %v296_v24 = vld [vmem:[%s4039_s14 + $0x40] sm:$0xf]  ;;  %v297_v38 = vld [vmem:[%s4039_s14 + $0x44] sm:$0xf] }
  0x4f   : > { %1924 = vmatprep.mubr.bf16.mxu0 %v4209_v36  ;;  %2085 = vmatprep.mubr.bf16.mxu1 %v4206_v33  ;;  %686 = vst [vmem:[#allocation2 + $0x58] sm:$0xf] %v432_v25  ;;  %v437_v0 = vrot.slane %v435_v56, 7  ;;  %689 = vst [vmem:[#allocation2 + $0x5c] sm:$0x1] %v688_v62  ;;  %v446_v5 = vshll.u32 %v295_v47, 16  ;;  %v4244_v10 = vsel %vm1160_vm8, %v1173_v42, %v1174_v52 }
  0x50   : > { %v1018_v3 = vor.u32 %v1017_v58, %v1013_v43  ;;  %v445_v13 = vrot.slane %v443_v1, 7  ;;  %v1176_v12 = vrot.slane %v4206_v33, 1  ;;  %v452_v30 = vshrl.u32 %v296_v24, 16  ;;  %v697_v45 = vld [vmem:[#allocation2 + $0x6c] sm:$0xf]  ;;  %v3845_v62 = vld [vmem:[%s5193_s1 + $0x1e0] sm:$0xff]  }
  0x51   : > { %v4241_v6 = vld [vmem:[#allocation2 + $0x48] sm:$0xff]   ;;  %v440_v7 = vor.u32 %v438_v54, %v437_v0  ;;  %v441_v8 = vrot.slane %v437_v0, 4  ;;  %v455_v43 = vshll.u32 %v296_v24, 16  ;;  %v460_v56 = vshrl.u32 %v297_v38, 16  ;;  %3505 = vmatprep.subr.bf16.mxu1 %v3845_v62  ;;  %v704_v18 = vld [vmem:[#allocation2 + $0x78] sm:$0xf] }
  0x52   : > { %v4246_v11 = vld [vmem:[#allocation2 + $0x50] ss:$0 sps:$4 sm:$0x11]   ;;  %v4249_v14 = vsel %vm951_vm1, %v1018_v3, %v1022_v61  ;;  %v1025_v15 = vshrl.u32 %v4241_v6, 16  ;;  %v1027_v16 = vshll.u32 %v4241_v6, 16  ;;  %v448_v20 = vor.u32 %v446_v5, %v445_v13  ;;  %v3840_v52 = vld [vmem:[%s5193_s1 + $0x148] sm:$0xff]  }
  0x53   : > { %v691_v17 = vsel %vm4058_vm7, %v440_v7, %v690_v60  ;;  %v1032_v19 = vshll.u32 %v4246_v11, 16  ;;  %v450_v21 = vrot.slane %v445_v13, 4  ;;  %v1179_v28 = vrot.slane %v4241_v6, 1  ;;  %v3842_v58 = vld [vmem:[%s5193_s1 + $0x108] sm:$0xff]   ;;  %3399 = vmatprep.subr.bf16.mxu0 %v3840_v52  ;;  %v701_v3 = vld [vmem:[#allocation2 + $0x74] sm:$0x1] }
  0x54   : > { %692 = vst [vmem:[#allocation2 + $0x60] sm:$0xf] %v691_v17  ;;  %v1029_v27 = vrot.slane %v1027_v16, 1  ;;  %v1180_v29 = vrot.slane %v4246_v11, 1  ;;  %v449_v37 = vsel %vm4053_vm5, %v441_v8, %v448_v20  ;;  %v454_v41 = vrot.slane %v452_v30, 7  ;;  %3400 = vmatpush3.bf16.msra.mxu0 %v3842_v58  ;;  %v3846_v13 = vld [vmem:[%s5193_s1 + $0x1a0] sm:$0xff]  }
  0x55   : > { %v1034_v34 = vrot.slane %v1032_v19, 1  ;;  %693 = vst [vmem:[#allocation2 + $0x64] sm:$0xf] %v449_v37  ;;  %v463_v57 = vshll.u32 %v297_v38, 16  ;;  %v4290_v25 = vsel %vm1160_vm8, %v1176_v12, %v1177_v4  ;;  %v298_v61 = vld [vmem:[%s4039_s14 + $0x48] sm:$0xf]  ;;  %3506 = vmatpush3.bf16.msra.mxu1 %v3846_v13 }
  0x56   : > { %1925 = vmatmul.mubr.bf16.gmra.mxu0 %v4167_v32  ;;  %2086 = vmatmul.mubr.bf16.gmra.mxu1 %v4244_v10  ;;  %v4269_v35 = vld [vmem:[#allocation2 + $0x54] sm:$0xff]   ;;  %v695_v32 = vsel %vm4075_vm9, %v450_v21, %v694_v9  ;;  %v1030_v39 = vor.u32 %v1029_v27, %v1025_v15  ;;  %v4277_v40 = vld [vmem:[#allocation2 + $0x5c] ss:$0 sps:$4 sm:$0x11]   ;;  %v457_v53 = vor.u32 %v455_v43, %v454_v41  ;;  %v458_v55 = vrot.slane %v454_v41, 4  ;;  %v3848_v21 = vld [vmem:[%s5193_s1 + $0x140] sm:$0xff]  }
  0x57   : > { %1932 = vmatprep.mubr.bf16.mxu0 %v4249_v14  ;;  %2093 = vmatprep.mubr.bf16.mxu1 %v4241_v6  ;;  %696 = vst [vmem:[#allocation2 + $0x68] sm:$0x1] %v695_v32  ;;  %v1039_v42 = vshll.u32 %v4269_v35, 16  ;;  %v1037_v46 = vshrl.u32 %v4269_v35, 16  ;;  %v1044_v47 = vshll.u32 %v4277_v40, 16  ;;  %v1182_v50 = vrot.slane %v4269_v35, 1 }
  0x58   : > { %v4293_v54 = vsel %vm951_vm1, %v1030_v39, %v1034_v34  ;;  %v462_v1 = vrot.slane %v460_v56, 7  ;;  %v698_v2 = vsel %vm4058_vm7, %v457_v53, %v697_v45  ;;  %v299_v5 = vld [vmem:[%s4039_s14 + $0x4c] sm:$0xf]  ;;  %v469_v7 = vshrl.u32 %v298_v61, 16  ;;  %v3850_v34 = vld [vmem:[%s5193_s1 + $0x100] sm:$0xff]   ;;  %3401 = vmatprep.subr.bf16.mxu0 %v3848_v21  ;;  %v3852_v56 = vld [vmem:[%s5193_s1 + $0x198] sm:$0xff]  }
  0x59   : > { %v1041_v60 = vrot.slane %v1039_v42, 1  ;;  %v1046_v0 = vrot.slane %v1044_v47, 1  ;;  %699 = vst [vmem:[#allocation2 + $0x6c] sm:$0xf] %v698_v2  ;;  %v472_v4 = vshll.u32 %v298_v61, 16  ;;  %v477_v8 = vshrl.u32 %v299_v5, 16  ;;  %3402 = vmatpush3.bf16.msra.mxu0 %v3850_v34 }
  0x5a   : > { %v480_v9 = vshll.u32 %v299_v5, 16  ;;  %v465_v16 = vor.u32 %v463_v57, %v462_v1  ;;  %v467_v17 = vrot.slane %v462_v1, 4  ;;  %v471_v19 = vrot.slane %v469_v7, 7  ;;  %v708_v45 = vld [vmem:[#allocation2 + $0x80] sm:$0x1] }
  0x5b   : > { %v479_v20 = vrot.slane %v477_v8, 7  ;;  %v1183_v24 = vrot.slane %v4277_v40, 1  ;;  %v4336_v47 = vsel %vm1160_vm8, %v1179_v28, %v1180_v29  ;;  %v300_v29 = vld [vmem:[%s4039_s14 + $0x50] sm:$0xf]  ;;  %v301_v58 = vld [vmem:[%s4039_s14 + $0x54] sm:$0xf] }
  0x5c   : > { %v4308_v15 = vld [vmem:[#allocation2 + $0x60] sm:$0xff]   ;;  %v466_v30 = vsel %vm4053_vm5, %v458_v55, %v465_v16  ;;  %v702_v38 = vsel %vm4075_vm9, %v467_v17, %v701_v3  ;;  %v474_v39 = vor.u32 %v472_v4, %v471_v19  ;;  %v475_v41 = vrot.slane %v471_v19, 4  ;;  %v715_v5 = vld [vmem:[#allocation2 + $0x8c] sm:$0x1]  ;;  %v302_v7 = vld [vmem:[%s4039_s14 + $0x58] sm:$0xf] }
  0x5d   : > { %v1049_v26 = vshrl.u32 %v4308_v15, 16  ;;  %v1051_v27 = vshll.u32 %v4308_v15, 16  ;;  %700 = vst [vmem:[#allocation2 + $0x70] sm:$0xf] %v466_v30  ;;  %v1185_v32 = vrot.slane %v4308_v15, 1  ;;  %v482_v42 = vor.u32 %v480_v9, %v479_v20 }
  0x5e   : > { %1933 = vmatmul.mubr.bf16.gmra.mxu0 %v4206_v33  ;;  %2094 = vmatmul.mubr.bf16.gmra.mxu1 %v4290_v25  ;;  %v1042_v33 = vor.u32 %v1041_v60, %v1037_v46  ;;  %v4311_v12 = vld [vmem:[#allocation2 + $0x68] ss:$0 sps:$4 sm:$0x11]   ;;  %703 = vst [vmem:[#allocation2 + $0x74] sm:$0x1] %v702_v38  ;;  %v484_v43 = vrot.slane %v479_v20, 4  ;;  %v705_v55 = vsel %vm4058_vm7, %v474_v39, %v704_v18 }
  0x5f   : > { %1940 = vmatprep.mubr.bf16.mxu0 %v4293_v54  ;;  %2101 = vmatprep.mubr.bf16.mxu1 %v4269_v35  ;;  %v1056_v37 = vshll.u32 %v4311_v12, 16  ;;  %v1053_v40 = vrot.slane %v1051_v27, 1  ;;  %v3851_v46 = vld [vmem:[%s5193_s1 + $0x1d8] sm:$0xff]   ;;  %v483_v11 = vsel %vm4053_vm5, %v475_v41, %v482_v42  ;;  %706 = vst [vmem:[#allocation2 + $0x78] sm:$0xf] %v705_v55  ;;  %v486_v60 = vshrl.u32 %v300_v29, 16 }
  0x60   : > { %v4339_v52 = vsel %vm951_vm1, %v1042_v33, %v1046_v0  ;;  %v709_v28 = vsel %vm4075_vm9, %v484_v43, %v708_v45  ;;  %3507 = vmatprep.subr.bf16.mxu1 %v3851_v46  ;;  %707 = vst [vmem:[#allocation2 + $0x7c] sm:$0xf] %v483_v11  ;;  %v489_v61 = vshll.u32 %v300_v29, 16  ;;  %v494_v62 = vshrl.u32 %v301_v58, 16  ;;  %v711_v1 = vld [vmem:[#allocation2 + $0x84] sm:$0xf] }
  0x61   : > { %v1058_v53 = vrot.slane %v1056_v37, 1  ;;  %v1054_v57 = vor.u32 %v1053_v40, %v1049_v26  ;;  %710 = vst [vmem:[#allocation2 + $0x80] sm:$0x1] %v709_v28  ;;  %v497_v0 = vshll.u32 %v301_v58, 16  ;;  %3508 = vmatpush3.bf16.msra.mxu1 %v3852_v56  ;;  %v488_v2 = vrot.slane %v486_v60, 7  ;;  %v3855_v28 = vld [vmem:[%s5193_s1 + $0x190] sm:$0xff]  }
  0x62   : > { %v496_v3 = vrot.slane %v494_v62, 7  ;;  %v4361_v4 = vsel %vm1160_vm8, %v1182_v50, %v1183_v24  ;;  %v1186_v9 = vrot.slane %v4311_v12, 1  ;;  %v503_v13 = vshrl.u32 %v302_v7, 16  ;;  %v718_v42 = vld [vmem:[#allocation2 + $0x90] sm:$0xf] }
  0x63   : > { %v506_v16 = vshll.u32 %v302_v7, 16  ;;  %v4367_v17 = vsel %vm951_vm1, %v1054_v57, %v1058_v53  ;;  %v491_v33 = vor.u32 %v489_v61, %v488_v2  ;;  %v492_v19 = vrot.slane %v488_v2, 4  ;;  %v3853_v53 = vld [vmem:[%s5193_s1 + $0x1d0] sm:$0xff]   ;;  %v3857_v61 = vld [vmem:[%s5193_s1 + $0x1c8] sm:$0xff]   ;;  %v304_v7 = vld [vmem:[%s4039_s14 + $0x60] sm:$0xf] }
  0x64   : > { %v4363_v8 = vld [vmem:[#allocation2 + $0x6c] sm:$0xff]   ;;  %v499_v20 = vor.u32 %v497_v0, %v496_v3  ;;  %v501_v50 = vrot.slane %v496_v3, 4  ;;  %v505_v41 = vrot.slane %v503_v13, 7  ;;  %3509 = vmatprep.subr.bf16.mxu1 %v3853_v53  ;;  %v4413_v13 = vsel %vm1160_vm8, %v1185_v32, %v1186_v9 }
  0x65   : > { %v4369_v18 = vld [vmem:[#allocation2 + $0x74] ss:$0 sps:$4 sm:$0x11]   ;;  %v1061_v21 = vshrl.u32 %v4363_v8, 16  ;;  %v1063_v26 = vshll.u32 %v4363_v8, 16  ;;  %v1188_v12 = vrot.slane %v4363_v8, 1  ;;  %v712_v34 = vsel %vm4058_vm7, %v491_v33, %v711_v1  ;;  %3510 = vmatpush3.bf16.msra.mxu1 %v3855_v28 }
  0x66   : > { %1941 = vmatmul.mubr.bf16.gmra.mxu0 %v4241_v6  ;;  %2102 = vmatmul.mubr.bf16.gmra.mxu1 %v4336_v47  ;;  %v303_v6 = vld [vmem:[%s4039_s14 + $0x5c] sm:$0xf]  ;;  %v1068_v27 = vshll.u32 %v4369_v18, 16  ;;  %v500_v30 = vsel %vm4053_vm5, %v492_v19, %v499_v20  ;;  %713 = vst [vmem:[#allocation2 + $0x84] sm:$0xf] %v712_v34  ;;  %v716_v39 = vsel %vm4075_vm9, %v501_v50, %v715_v5  ;;  %v509_v29 = vrot.slane %v505_v41, 4 }
  0x67   : > { %1948 = vmatprep.mubr.bf16.mxu0 %v4339_v52  ;;  %2109 = vmatprep.mubr.bf16.mxu1 %v4308_v15  ;;  %v511_v24 = vshrl.u32 %v303_v6, 16  ;;  %v1065_v37 = vrot.slane %v1063_v26, 1  ;;  %v4379_v38 = vld [vmem:[#allocation2 + $0x78] sm:$0xff]   ;;  %714 = vst [vmem:[#allocation2 + $0x88] sm:$0xf] %v500_v30  ;;  %v508_v11 = vor.u32 %v506_v16, %v505_v41  ;;  %v514_v58 = vshll.u32 %v303_v6, 16 }
  0x68   : > { %v4384_v40 = vld [vmem:[#allocation2 + $0x80] ss:$0 sps:$4 sm:$0x11]   ;;  %717 = vst [vmem:[#allocation2 + $0x8c] sm:$0x1] %v716_v39  ;;  %v1070_v43 = vrot.slane %v1068_v27, 1  ;;  %3511 = vmatprep.subr.bf16.mxu1 %v3857_v61 }
  0x69   : > { %v1075_v45 = vshll.u32 %v4379_v38, 16  ;;  %v513_v46 = vrot.slane %v511_v24, 7  ;;  %v1066_v55 = vor.u32 %v1065_v37, %v1061_v21  ;;  %v1073_v56 = vshrl.u32 %v4379_v38, 16  ;;  %v722_v1 = vld [vmem:[#allocation2 + $0x98] sm:$0x1]  ;;  %v3858_v2 = vld [vmem:[%s5193_s1 + $0x188] sm:$0xff]  }
  0x6a   : > { %v1080_v57 = vshll.u32 %v4384_v40, 16  ;;  %v719_v0 = vsel %vm4058_vm7, %v508_v11, %v718_v42  ;;  %v305_v6 = vld [vmem:[%s4039_s14 + $0x64] sm:$0xf]  ;;  %v520_v19 = vshrl.u32 %v304_v7, 16  ;;  %v523_v26 = vshll.u32 %v304_v7, 16  ;;  %3512 = vmatpush3.bf16.msra.mxu1 %v3858_v2 }
  0x6b   : > { %v518_v60 = vrot.slane %v513_v46, 4  ;;  %v1077_v62 = vrot.slane %v1075_v45, 1  ;;  %v516_v3 = vor.u32 %v514_v58, %v513_v46  ;;  %720 = vst [vmem:[#allocation2 + $0x90] sm:$0xf] %v719_v0  ;;  %v4416_v16 = vsel %vm951_vm1, %v1066_v55, %v1070_v43  ;;  %v725_v37 = vld [vmem:[#allocation2 + $0x9c] sm:$0xf] }
  0x6c   : > { %v1189_v50 = vrot.slane %v4369_v18, 1  ;;  %v1082_v24 = vrot.slane %v1080_v57, 1  ;;  %v522_v9 = vrot.slane %v520_v19, 7  ;;  %v528_v30 = vshrl.u32 %v305_v6, 16  ;;  %v306_v46 = vld [vmem:[%s4039_s14 + $0x68] sm:$0xf] }
  0x6d   : > { %v723_v5 = vsel %vm4075_vm9, %v518_v60, %v722_v1  ;;  %v517_v21 = vsel %vm4053_vm5, %v509_v29, %v516_v3  ;;  %v1078_v27 = vor.u32 %v1077_v62, %v1073_v56  ;;  %v531_v34 = vshll.u32 %v305_v6, 16  ;;  %v307_v53 = vld [vmem:[%s4039_s14 + $0x6c] sm:$0xf]  ;;  %v729_v57 = vld [vmem:[#allocation2 + $0xa4] sm:$0x1] }
  0x6e   : > { %1949 = vmatmul.mubr.bf16.gmra.mxu0 %v4269_v35  ;;  %2110 = vmatmul.mubr.bf16.gmra.mxu1 %v4361_v4  ;;  %v4418_v33 = vld [vmem:[#allocation2 + $0x84] sm:$0xff]   ;;  %724 = vst [vmem:[#allocation2 + $0x98] sm:$0x1] %v723_v5  ;;  %721 = vst [vmem:[#allocation2 + $0x94] sm:$0xf] %v517_v21  ;;  %v525_v42 = vor.u32 %v523_v26, %v522_v9  ;;  %v526_v43 = vrot.slane %v522_v9, 4  ;;  %v4439_v28 = vsel %vm1160_vm8, %v1188_v12, %v1189_v50 }
  0x6f   : > { %1956 = vmatprep.mubr.bf16.mxu0 %v4367_v17  ;;  %2117 = vmatprep.mubr.bf16.mxu1 %v4363_v8  ;;  %v4420_v20 = vld [vmem:[#allocation2 + $0x8c] ss:$0 sps:$4 sm:$0x11]   ;;  %v1087_v32 = vshll.u32 %v4418_v33, 16  ;;  %v1085_v18 = vshrl.u32 %v4418_v33, 16  ;;  %v530_v45 = vrot.slane %v528_v30, 7  ;;  %v4444_v62 = vsel %vm951_vm1, %v1078_v27, %v1082_v24 }
  0x70   : > { %v1092_v41 = vshll.u32 %v4420_v20, 16  ;;  %v726_v55 = vsel %vm4058_vm7, %v525_v42, %v725_v37  ;;  %v537_v56 = vshrl.u32 %v306_v46, 16  ;;  %v540_v11 = vshll.u32 %v306_v46, 16  ;;  %v732_v61 = vld [vmem:[#allocation2 + $0xa8] sm:$0xf]  ;;  %v3859_v3 = vld [vmem:[%s5193_s1 + $0x1c0] sm:$0xff]  }
  0x71   : > { %v1089_v39 = vrot.slane %v1087_v32, 1  ;;  %v533_v58 = vor.u32 %v531_v34, %v530_v45  ;;  %727 = vst [vmem:[#allocation2 + $0x9c] sm:$0xf] %v726_v55  ;;  %v535_v60 = vrot.slane %v530_v45, 4  ;;  %v545_v1 = vshrl.u32 %v307_v53, 16  ;;  %v3860_v6 = vld [vmem:[%s5193_s1 + $0x180] sm:$0xff]   ;;  %3513 = vmatprep.subr.bf16.mxu1 %v3859_v3 }
  0x72   : > { %v539_v0 = vrot.slane %v537_v56, 7  ;;  %v548_v2 = vshll.u32 %v307_v53, 16  ;;  %v1191_v50 = vrot.slane %v4379_v38, 1  ;;  %v1192_v24 = vrot.slane %v4384_v40, 1  ;;  %v736_v42 = vld [vmem:[#allocation2 + $0xb0] sm:$0x1]  ;;  %3514 = vmatpush3.bf16.msra.mxu1 %v3860_v6 }
  0x73   : > { %v534_v12 = vsel %vm4053_vm5, %v526_v43, %v533_v58  ;;  %v730_v7 = vsel %vm4075_vm9, %v535_v60, %v729_v57  ;;  %v547_v26 = vrot.slane %v545_v1, 7  ;;  %v1094_v32 = vrot.slane %v1092_v41, 1  ;;  %v4470_v43 = vld [vmem:[%s5193_s1 + $0x238] sm:$0xff]   ;;  %v308_v45 = vld [vmem:[%s4039_s14 + $0x70] sm:$0xf] }
  0x74   : > { %728 = vst [vmem:[#allocation2 + $0xa0] sm:$0xf] %v534_v12  ;;  %731 = vst [vmem:[#allocation2 + $0xa4] sm:$0x1] %v730_v7  ;;  %v542_v19 = vor.u32 %v540_v11, %v539_v0  ;;  %v543_v21 = vrot.slane %v539_v0, 4  ;;  %v1090_v27 = vor.u32 %v1089_v39, %v1085_v18  ;;  %v554_v53 = vshrl.u32 %v308_v45, 16  ;;  %3659 = vmatprep.subr.bf16.mxu0 %v4470_v43 }
  0x75   : > { %v4441_v29 = vld [vmem:[#allocation2 + $0x98] ss:$0 sps:$4 sm:$0x11]   ;;  %v4449_v5 = vld [vmem:[#allocation2 + $0x90] sm:$0xff]   ;;  %v550_v30 = vor.u32 %v548_v2, %v547_v26  ;;  %v552_v37 = vrot.slane %v547_v26, 4  ;;  %v557_v55 = vshll.u32 %v308_v45, 16  ;;  %v4482_v58 = vsel %vm1160_vm8, %v1191_v50, %v1192_v24 }
  0x76   : > { %1957 = vmatmul.mubr.bf16.gmra.mxu0 %v4308_v15  ;;  %2118 = vmatmul.mubr.bf16.gmra.mxu1 %v4413_v13  ;;  %v1099_v9 = vshll.u32 %v4449_v5, 16  ;;  %v733_v34 = vsel %vm4058_vm7, %v542_v19, %v732_v61  ;;  %v1097_v40 = vshrl.u32 %v4449_v5, 16  ;;  %v1104_v41 = vshll.u32 %v4441_v29, 16  ;;  %v309_v46 = vld [vmem:[%s4039_s14 + $0x74] sm:$0xf] }
  0x77   : > { %1964 = vmatprep.mubr.bf16.mxu0 %v4416_v16  ;;  %2125 = vmatprep.mubr.bf16.mxu1 %v4379_v38  ;;  %734 = vst [vmem:[#allocation2 + $0xa8] sm:$0xf] %v733_v34  ;;  %v551_v18 = vsel %vm4053_vm5, %v543_v21, %v550_v30  ;;  %v737_v39 = vsel %vm4075_vm9, %v552_v37, %v736_v42  ;;  %v562_v57 = vshrl.u32 %v309_v46, 16  ;;  %v565_v56 = vshll.u32 %v309_v46, 16  ;;  %v739_v11 = vld [vmem:[#allocation2 + $0xb4] sm:$0xf] }
  0x78   : > { %735 = vst [vmem:[#allocation2 + $0xac] sm:$0xf] %v551_v18  ;;  %738 = vst [vmem:[#allocation2 + $0xb0] sm:$0x1] %v737_v39  ;;  %v4485_v60 = vsel %vm951_vm1, %v1090_v27, %v1094_v32  ;;  %v1101_v61 = vrot.slane %v1099_v9, 1  ;;  %v556_v0 = vrot.slane %v554_v53, 7 }
  0x79   : > { %v564_v2 = vrot.slane %v562_v57, 7  ;;  %v1194_v3 = vrot.slane %v4418_v33, 1  ;;  %v1195_v6 = vrot.slane %v4420_v20, 1  ;;  %v1106_v50 = vrot.slane %v1104_v41, 1  ;;  %v743_v34 = vld [vmem:[#allocation2 + $0xbc] sm:$0x1] }
  0x7a   : > { %v559_v12 = vor.u32 %v557_v55, %v556_v0  ;;  %v560_v7 = vrot.slane %v556_v0, 4  ;;  %v1102_v26 = vor.u32 %v1101_v61, %v1097_v40  ;;  %v310_v18 = vld [vmem:[%s4039_s14 + $0x78] sm:$0xf]  ;;  %v1198_v39 = vrot.slane %v4441_v29, 1  ;;  %v311_v53 = vld [vmem:[%s4039_s14 + $0x7c] sm:$0xf] }
  0x7b   : > { %v4487_v1 = vld [vmem:[#allocation2 + $0x9c] sm:$0xff]   ;;  %v4494_v19 = vld [vmem:[#allocation2 + $0xa4] ss:$0 sps:$4 sm:$0x11]   ;;  %v567_v21 = vor.u32 %v565_v56, %v564_v2  ;;  %v569_v27 = vrot.slane %v564_v2, 4  ;;  %v4503_v20 = vsel %vm1160_vm8, %v1194_v3, %v1195_v6  ;;  %v571_v55 = vshrl.u32 %v310_v18, 16 }
  0x7c   : > { %v1111_v24 = vshll.u32 %v4487_v1, 16  ;;  %v740_v32 = vsel %vm4058_vm7, %v559_v12, %v739_v11  ;;  %v1116_v30 = vshll.u32 %v4494_v19, 16  ;;  %v4507_v37 = vsel %vm951_vm1, %v1102_v26, %v1106_v50  ;;  %v746_v2 = vld [vmem:[#allocation2 + $0xc0] sm:$0xf] }
  0x7d   : > { %v568_v9 = vsel %vm4053_vm5, %v560_v7, %v567_v21  ;;  %741 = vst [vmem:[#allocation2 + $0xb4] sm:$0xf] %v740_v32  ;;  %v1109_v42 = vshrl.u32 %v4487_v1, 16  ;;  %v744_v45 = vsel %vm4075_vm9, %v569_v27, %v743_v34  ;;  %v574_v57 = vshll.u32 %v310_v18, 16 }
  0x7e   : > { %1965 = vmatmul.mubr.bf16.gmra.mxu0 %v4363_v8  ;;  %2126 = vmatmul.mubr.bf16.gmra.mxu1 %v4439_v28  ;;  %742 = vst [vmem:[#allocation2 + $0xb8] sm:$0xf] %v568_v9  ;;  %v1113_v40 = vrot.slane %v1111_v24, 1  ;;  %745 = vst [vmem:[#allocation2 + $0xbc] sm:$0x1] %v744_v45  ;;  %v1197_v56 = vrot.slane %v4449_v5, 1 }
  0x7f   : > { %1972 = vmatprep.mubr.bf16.mxu0 %v4444_v62  ;;  %2133 = vmatprep.mubr.bf16.mxu1 %v4418_v33  ;;  %v4510_v41 = vld [vmem:[#allocation2 + $0xa8] sm:$0xff]   ;;  %v3847_v46 = vld [vmem:[#allocation2 + $0xb0] ss:$0 sps:$4 sm:$0x11]   ;;  %v1118_v11 = vrot.slane %v1116_v30, 1  ;;  %v579_v61 = vshrl.u32 %v311_v53, 16 }
  0x80   : > { %v582_v0 = vshll.u32 %v311_v53, 16  ;;  %v1114_v3 = vor.u32 %v1113_v40, %v1109_v42  ;;  %v1123_v12 = vshll.u32 %v4510_v41, 16  ;;  %v573_v29 = vrot.slane %v571_v55, 7 }
  0x81   : > { %v581_v7 = vrot.slane %v579_v61, 7  ;;  %v4524_v26 = vsel %vm1160_vm8, %v1197_v56, %v1198_v39  ;;  %v1121_v50 = vshrl.u32 %v4510_v41, 16  ;;  %v1128_v27 = vshll.u32 %v3847_v46, 16 }
  0x82   : > { %v576_v6 = vor.u32 %v574_v57, %v573_v29  ;;  %v577_v21 = vrot.slane %v573_v29, 4  ;;  %v4528_v32 = vsel %vm951_vm1, %v1114_v3, %v1118_v11  ;;  %v1125_v9 = vrot.slane %v1123_v12, 1 }
  0x83   : > { %v584_v24 = vor.u32 %v582_v0, %v581_v7  ;;  %v1200_v40 = vrot.slane %v4487_v1, 1  ;;  %v1201_v45 = vrot.slane %v4494_v19, 1  ;;  %v1130_v39 = vrot.slane %v1128_v27, 1  ;;  %v750_v0 = vld [vmem:[#allocation2 + $0xc8] sm:$0x1]  ;;  %v3864_v27 = vld [vmem:[%s5193_s1 + $0x220] sm:$0xff]  }
  0x84   : > { %v747_v34 = vsel %vm4058_vm7, %v576_v6, %v746_v2  ;;  %v1126_v51 = vor.u32 %v1125_v9, %v1121_v50  ;;  %v586_v55 = vrot.slane %v581_v7, 4  ;;  %v1203_v61 = vrot.slane %v4510_v41, 1  ;;  %v3880_v9 = vld [vmem:[#allocation2 + $0x18] sm:$0xff]  }
  0x85   : > { %v4530_v30 = vld [vmem:[#allocation2 + $0xb4] sm:$0xff]   ;;  %v585_v42 = vsel %vm4053_vm5, %v577_v21, %v584_v24  ;;  %748 = vst [vmem:[#allocation2 + $0xc0] sm:$0xf] %v747_v34  ;;  %v3854_v18 = vld [vmem:[#allocation2 + $0xbc] ss:$0 sps:$4 sm:$0x11]   ;;  %v4545_v57 = vsel %vm1160_vm8, %v1200_v40, %v1201_v45 }
  0x86   : > { %1973 = vmatmul.mubr.bf16.gmra.mxu0 %v4379_v38  ;;  %2134 = vmatmul.mubr.bf16.gmra.mxu1 %v4482_v58  ;;  %749 = vst [vmem:[#allocation2 + $0xc4] sm:$0xf] %v585_v42  ;;  %v1135_v48 = vshll.u32 %v4530_v30, 16  ;;  %v1133_v53 = vshrl.u32 %v4530_v30, 16  ;;  %v4548_v19 = vsel %vm951_vm1, %v1126_v51, %v1130_v39  ;;  %v1140_v11 = vshll.u32 %v3854_v18, 16  ;;  %v3862_v24 = vld [vmem:[%s5193_s1 + $0x230] sm:$0xff]  }
  0x87   : > { %1980 = vmatprep.mubr.bf16.mxu0 %v4485_v60  ;;  %2141 = vmatprep.mubr.bf16.mxu1 %v4449_v5  ;;  %v751_v2 = vsel %vm4075_vm9, %v586_v55, %v750_v0  ;;  %v1204_v3 = vrot.slane %v3847_v46, 1  ;;  %v1206_v63 = vrot.slane %v4530_v30, 1  ;;  %v1207_v46 = vrot.slane %v3854_v18, 1  ;;  %v3866_v34 = vld [vmem:[%s5193_s1 + $0x210] sm:$0xff]   ;;  %v3867_v42 = vld [vmem:[%s5193_s1 + $0x208] sm:$0xff]   ;;  %v3868_v40 = vld [vmem:[%s5193_s1 + $0x200] sm:$0xff]  }
  0x88   : > { %v1137_v56 = vrot.slane %v1135_v48, 1  ;;  %v1142_v29 = vrot.slane %v1140_v11, 1  ;;  %752 = vst [vmem:[#allocation2 + $0xc8] sm:$0x1] %v751_v2  ;;  %v3884_v45 = vld [vmem:[#allocation2 + $0x48] sm:$0xff]  }
  0x89   : > { %v4560_v6 = vsel %vm1160_vm8, %v1203_v61, %v1204_v3  ;;  %v4571_v50 = vsel %vm1160_vm8, %v1206_v63, %v1207_v46 }
  0x8a   : > { %v1138_v12 = vor.u32 %v1137_v56, %v1133_v53 }
  0x8c   : > { %v4563_v21 = vsel %vm951_vm1, %v1138_v12, %v1142_v29 }
  0x8d   : > { %v4557_v7 = vld [vmem:[#allocation2 + $0xc0] sm:$0xff]  }
  0x8e   : > { %1981 = vmatmul.mubr.bf16.gmra.mxu0 %v4418_v33  ;;  %2142 = vmatmul.mubr.bf16.gmra.mxu1 %v4503_v20 }
  0x8f   : > { %1988 = vmatprep.mubr.bf16.mxu0 %v4507_v37  ;;  %2149 = vmatprep.mubr.bf16.mxu1 %v4487_v1 }
  0x96   : > { %1989 = vmatmul.mubr.bf16.gmra.mxu0 %v4449_v5  ;;  %2150 = vmatmul.mubr.bf16.gmra.mxu1 %v4524_v26 }
  0x97   : > { %1996 = vmatprep.mubr.bf16.mxu0 %v4528_v32  ;;  %2157 = vmatprep.mubr.bf16.mxu1 %v4510_v41 }
  0x9e   : > { %1997 = vmatmul.mubr.bf16.gmra.mxu0 %v4487_v1  ;;  %2158 = vmatmul.mubr.bf16.gmra.mxu1 %v4545_v57 }
  0x9f   : > { %2004 = vmatprep.mubr.bf16.mxu0 %v4548_v19  ;;  %2165 = vmatprep.mubr.bf16.mxu1 %v4530_v30 }
  0xa6   : > { %2005 = vmatmul.mubr.bf16.gmra.mxu0 %v4510_v41  ;;  %2166 = vmatmul.mubr.bf16.gmra.mxu1 %v4560_v6 }
  0xa7   : > { %2012 = vmatprep.mubr.bf16.mxu0 %v4563_v21  ;;  %2173 = vmatprep.mubr.bf16.mxu1 %v4557_v7 }
  0xae   : > { %2013 = vmatmul.mubr.bf16.gmra.mxu0 %v4530_v30  ;;  %2174 = vmatmul.mubr.bf16.gmra.mxu1 %v4571_v50 }
  0xaf   : > { %2214 = vmatprep.mubr.bf16.mxu0 %v4143_v23  ;;  %2375 = vmatprep.mubr.bf16.mxu1 %v4159_v44  ;;  %v3863_v23 = vld [vmem:[%s5193_s1 + $0x228] sm:$0xff]  }
  0xb6   : > { %2215 = vmatmul.mubr.bf16.vlgmr.msra.gmra.mxu0 %v4140_v22  ;;  %2376 = vmatmul.mubr.bf16.vlgmr.msra.gmra.mxu1 %v3880_v9  ;;  %v3881_v22 = vld [vmem:[#allocation2 + $0x24] sm:$0xff]  }
  0xb7   : > { %3660 = vmatpush3.bf16.msra.mxu0 %v4470_v43  ;;  %2222 = vmatprep.mubr.bf16.mxu0 %v4165_v49  ;;  %v3865_v43 = vld [vmem:[%s5193_s1 + $0x218] sm:$0xff]  }
  0xb8   : > { %2383 = vmatprep.mubr.bf16.mxu1 %v4176_v59  ;;  %3661 = vmatprep.subr.bf16.mxu0 %v3862_v24 }
  0xbb   : > { %3662 = vmatpush3.bf16.msra.mxu0 %v3862_v24 }
  0xbc   : > { %3663 = vmatprep.subr.bf16.mxu0 %v3863_v23 }
  0xbe   : > { %2223 = vmatmul.mubr.bf16.gmra.mxu0 %v4159_v44  ;;  %2384 = vmatmul.mubr.bf16.gmra.mxu1 %v3881_v22  ;;  %v3882_v44 = vld [vmem:[#allocation2 + $0x30] sm:$0xff]  }
  0xbf   : > { %2230 = vmatprep.mubr.bf16.mxu0 %v4204_v31  ;;  %2391 = vmatprep.mubr.bf16.mxu1 %v4209_v36 }
  0xc0   : > { %3664 = vmatpush3.bf16.msra.mxu0 %v3863_v23 }
  0xc1   : > { %3665 = vmatprep.subr.bf16.mxu0 %v3864_v27 }
  0xc4   : > { %3666 = vmatpush3.bf16.msra.mxu0 %v3864_v27 }
  0xc5   : > { %3667 = vmatprep.subr.bf16.mxu0 %v3865_v43 }
  0xc6   : > { %2231 = vmatmul.mubr.bf16.gmra.mxu0 %v4176_v59  ;;  %2392 = vmatmul.mubr.bf16.gmra.mxu1 %v3882_v44  ;;  %v3883_v59 = vld [vmem:[#allocation2 + $0x3c] sm:$0xff]  }
  0xc7   : > { %2238 = vmatprep.mubr.bf16.mxu0 %v4244_v10  ;;  %2399 = vmatprep.mubr.bf16.mxu1 %v4249_v14 }
  0xc8   : > { %3668 = vmatpush3.bf16.msra.mxu0 %v3865_v43 }
  0xc9   : > { %3669 = vmatprep.subr.bf16.mxu0 %v3866_v34 }
  0xcc   : > { %3670 = vmatpush3.bf16.msra.mxu0 %v3866_v34  ;;  %v3872_v34 = vld [vmem:[%s5195_s3 + $0x38] sm:$0xff]  }
  0xcd   : > { %3671 = vmatprep.subr.bf16.mxu0 %v3867_v42  ;;  %3707 = vmatprep.subr.bf16.mxu1 %v3872_v34 }
  0xce   : > { %2239 = vmatmul.mubr.bf16.gmra.mxu0 %v4209_v36  ;;  %2400 = vmatmul.mubr.bf16.gmra.mxu1 %v3883_v59 }
  0xcf   : > { %2246 = vmatprep.mubr.bf16.mxu0 %v4290_v25  ;;  %2407 = vmatprep.mubr.bf16.mxu1 %v4293_v54 }
  0xd0   : > { %3672 = vmatpush3.bf16.msra.mxu0 %v3867_v42  ;;  %3708 = vmatpush3.bf16.msra.mxu1 %v3872_v34 }
  0xd1   : > { %3673 = vmatprep.subr.bf16.mxu0 %v3868_v40 }
  0xd4   : > { %3674 = vmatpush3.bf16.msra.mxu0 %v3868_v40 }
  0xd6   : > { %2247 = vmatmul.mubr.bf16.gmra.mxu0 %v4249_v14  ;;  %2408 = vmatmul.mubr.bf16.gmra.mxu1 %v3884_v45 }
  0xd7   : > { %2254 = vmatprep.mubr.bf16.mxu0 %v4336_v47  ;;  %2415 = vmatprep.mubr.bf16.mxu1 %v4339_v52 }
  0xde   : > { %2255 = vmatmul.mubr.bf16.gmra.mxu0 %v4293_v54  ;;  %2416 = vmatmul.mubr.bf16.gmra.mxu1 %v4269_v35 }
  0xdf   : > { %2262 = vmatprep.mubr.bf16.mxu0 %v4361_v4  ;;  %2423 = vmatprep.mubr.bf16.mxu1 %v4367_v17 }
  0xe6   : > { %2263 = vmatmul.mubr.bf16.gmra.mxu0 %v4339_v52  ;;  %2424 = vmatmul.mubr.bf16.gmra.mxu1 %v4308_v15  ;;  %v4629_v15 = vld [vmem:[%s5194_s2] ss:$0 sm:$0xff] }
  0xe7   : > { %2270 = vmatprep.mubr.bf16.mxu0 %v4413_v13  ;;  %2431 = vmatprep.mubr.bf16.mxu1 %v4416_v16 }
  0xee   : > { %v3179_v36 = vpop.f32.mrf.mxu0  ;;  %2271 = vmatmul.mubr.bf16.gmra.mxu0 %v4367_v17  ;;  %2432 = vmatmul.mubr.bf16.gmra.mxu1 %v4363_v8 }
  0xef   : > { %2278 = vmatprep.mubr.bf16.mxu0 %v4439_v28  ;;  %2439 = vmatprep.mubr.bf16.mxu1 %v4444_v62 }
  0xf0   : > { %v3180_v14 = vpop.f32.mrf.mxu0 }
  0xf1   : > { %v3181_v18 = vadd.f32 %v3180_v14, %v3179_v36 }
  0xf2   : > { %v3182_v35 = vpop.f32.mrf.mxu0 }
  0xf3   : > { %v1895_v8 = vadd.f32 %v3181_v18, %v4629_v15 }
  0xf4   : > { %v3183_v54 = vpop.f32.mrf.mxu0 }
  0xf5   : > { %v3184_v52 = vadd.f32 %v3183_v54, %v3182_v35 }
  0xf6   : > { %2279 = vmatmul.mubr.bf16.gmra.mxu0 %v4416_v16  ;;  %v3291_v51 = vpop.f32.mrf.mxu1  ;;  %2440 = vmatmul.mubr.bf16.gmra.mxu1 %v4379_v38 }
  0xf7   : > { %2286 = vmatprep.mubr.bf16.mxu0 %v4482_v58  ;;  %2447 = vmatprep.mubr.bf16.mxu1 %v4485_v60  ;;  %v1898_v55 = vadd.f32 %v3184_v52, %v4629_v15 }
  0xf8   : > { %v3292_v17 = vpop.f32.mrf.mxu1 }
  0xf9   : > { %v3293_v39 = vadd.f32 %v3292_v17, %v3291_v51 }
  0xfa   : > { %v3294_v48 = vpop.f32.mrf.mxu1 }
  0xfb   : > { %v4636_v53 = vadd.f32 %v3293_v39, %v1895_v8 }
  0xfc   : > { %v3295_v56 = vpop.f32.mrf.mxu1 }
  0xfd   : > { %v3296_v61 = vadd.f32 %v3295_v56, %v3294_v48 }
  0xfe   : > { %v3185_v11 = vpop.f32.mrf.mxu0  ;;  %2287 = vmatmul.mubr.bf16.gmra.mxu0 %v4444_v62  ;;  %v3297_v16 = vpop.f32.mrf.mxu1  ;;  %2448 = vmatmul.mubr.bf16.gmra.mxu1 %v4418_v33 }
  0xff   : > { %2294 = vmatprep.mubr.bf16.mxu0 %v4503_v20  ;;  %v4642_v38 = vadd.f32 %v3296_v61, %v1898_v55  ;;  %2455 = vmatprep.mubr.bf16.mxu1 %v4507_v37  ;;  %v1237_v61 = vshll.u32 %v4557_v7, 16 }
 0x100   : > { %v3186_v0 = vpop.f32.mrf.mxu0  ;;  %v3298_v3 = vpop.f32.mrf.mxu1 }
 0x101   : > { %v3187_v2 = vadd.f32 %v3186_v0, %v3185_v11  ;;  %v3299_v29 = vadd.f32 %v3298_v3, %v3297_v16  ;;  %v4668_v11 = vld [vmem:[#allocation2 + $0xc8] ss:$0 sps:$4 sm:$0x11]  }
 0x102   : > { %v3188_v12 = vpop.f32.mrf.mxu0  ;;  %v3300_v46 = vpop.f32.mrf.mxu1 }
 0x103   : > { %v1903_v63 = vadd.f32 %v3187_v2, %v4629_v15 }
 0x104   : > { %v3189_v24 = vpop.f32.mrf.mxu0  ;;  %v3301_v23 = vpop.f32.mrf.mxu1 }
 0x105   : > { %v4646_v9 = vadd.f32 %v3299_v29, %v1903_v63  ;;  %v3190_v62 = vadd.f32 %v3189_v24, %v3188_v12  ;;  %v3302_v27 = vadd.f32 %v3301_v23, %v3300_v46  ;;  %v4673_v12 = vld [vmem:[#allocation2 + $0xcc] sm:$0xff]   ;;  %v1239_v24 = vrot.slane %v1237_v61, 1 }
 0x106   : > { %v3191_v33 = vpop.f32.mrf.mxu0  ;;  %2295 = vmatmul.mubr.bf16.gmra.mxu0 %v4485_v60  ;;  %v3303_v43 = vpop.f32.mrf.mxu1  ;;  %2456 = vmatmul.mubr.bf16.gmra.mxu1 %v4449_v5 }
 0x107   : > { %v1906_v22 = vadd.f32 %v3190_v62, %v4629_v15  ;;  %2302 = vmatprep.mubr.bf16.mxu0 %v4524_v26  ;;  %2463 = vmatprep.mubr.bf16.mxu1 %v4528_v32  ;;  %v1242_v62 = vshll.u32 %v4668_v11, 16 }
 0x108   : > { %v3192_v44 = vpop.f32.mrf.mxu0  ;;  %v3304_v59 = vpop.f32.mrf.mxu1 }
 0x109   : > { %v4656_v42 = vadd.f32 %v3302_v27, %v1906_v22  ;;  %v3193_v40 = vadd.f32 %v3192_v44, %v3191_v33  ;;  %v3305_v45 = vadd.f32 %v3304_v59, %v3303_v43  ;;  %v3873_v43 = vld [vmem:[%s5195_s3 + $0x30] sm:$0xff]   ;;  %v1263_v44 = vshll.u32 %v4673_v12, 16 }
 0x10a   : > { %v3194_v60 = vpop.f32.mrf.mxu0  ;;  %v3306_v5 = vpop.f32.mrf.mxu1  ;;  %3709 = vmatprep.subr.bf16.mxu1 %v3873_v43 }
 0x10b   : > { %v1911_v36 = vadd.f32 %v3193_v40, %v4629_v15  ;;  %3710 = vmatpush3.bf16.msra.mxu1 %v3873_v43 }
 0x10c   : > { %v3195_v14 = vpop.f32.mrf.mxu0  ;;  %v3307_v54 = vpop.f32.mrf.mxu1 }
 0x10d   : > { %v4659_v18 = vadd.f32 %v3305_v45, %v1911_v36  ;;  %v3196_v35 = vadd.f32 %v3195_v14, %v3194_v60  ;;  %v3308_v51 = vadd.f32 %v3307_v54, %v3306_v5  ;;  %v1244_v45 = vrot.slane %v1242_v62, 1  ;;  %v4689_v36 = vld [vmem:[#allocation2 + $0xd4] ss:$0 sps:$4 sm:$0x11]  }
 0x10e   : > { %v3197_v52 = vpop.f32.mrf.mxu0  ;;  %2303 = vmatmul.mubr.bf16.gmra.mxu0 %v4507_v37  ;;  %v3309_v17 = vpop.f32.mrf.mxu1  ;;  %2464 = vmatmul.mubr.bf16.gmra.mxu1 %v4487_v1  ;;  %v1235_v1 = vshrl.u32 %v4557_v7, 16 }
 0x10f   : > { %v1914_v8 = vadd.f32 %v3196_v35, %v4629_v15  ;;  %2310 = vmatprep.mubr.bf16.mxu0 %v4545_v57  ;;  %2471 = vmatprep.mubr.bf16.mxu1 %v4548_v19 }
 0x110   : > { %v3198_v39 = vpop.f32.mrf.mxu0  ;;  %v3310_v56 = vpop.f32.mrf.mxu1  ;;  %v1240_v60 = vor.u32 %v1239_v24, %v1235_v1  ;;  %v1248_v1 = vrot.slane %v4668_v11, 1 }
 0x111   : > { %v4666_v48 = vadd.f32 %v3308_v51, %v1914_v8  ;;  %v3199_v55 = vadd.f32 %v3198_v39, %v3197_v52  ;;  %v3311_v37 = vadd.f32 %v3310_v56, %v3309_v17  ;;  %v1261_v52 = vshrl.u32 %v4673_v12, 16 }
 0x112   : > { %v3200_v16 = vpop.f32.mrf.mxu0  ;;  %v3312_v2 = vpop.f32.mrf.mxu1  ;;  %v1265_v51 = vrot.slane %v1263_v44, 1  ;;  %v1268_v56 = vshll.u32 %v4689_v36, 16 }
 0x113   : > { %v1919_v0 = vadd.f32 %v3199_v55, %v4629_v15  ;;  %v1245_v55 = vsel %vm951_vm1, %v1240_v60, %v1244_v45 }
 0x114   : > { %v3201_v3 = vpop.f32.mrf.mxu0  ;;  %v3313_v46 = vpop.f32.mrf.mxu1  ;;  %v1266_v62 = vor.u32 %v1265_v51, %v1261_v52 }
 0x115   : > { %v4675_v29 = vadd.f32 %v3311_v37, %v1919_v0  ;;  %v3202_v63 = vadd.f32 %v3201_v3, %v3200_v16  ;;  %v3314_v33 = vadd.f32 %v3313_v46, %v3312_v2  ;;  %v1247_v3 = vrot.slane %v4557_v7, 1 }
 0x116   : > { %v3203_v23 = vpop.f32.mrf.mxu0  ;;  %2311 = vmatmul.mubr.bf16.gmra.mxu0 %v4528_v32  ;;  %v3315_v22 = vpop.f32.mrf.mxu1  ;;  %2472 = vmatmul.mubr.bf16.gmra.mxu1 %v4510_v41 }
 0x117   : > { %v1922_v27 = vadd.f32 %v3202_v63, %v4629_v15  ;;  %2318 = vmatprep.mubr.bf16.mxu0 %v4560_v6  ;;  %2479 = vmatprep.mubr.bf16.mxu1 %v4563_v21  ;;  %v4707_v43 = vsel %vm1160_vm8, %v1247_v3, %v1248_v1 }
 0x118   : > { %v3204_v34 = vpop.f32.mrf.mxu0  ;;  %v3316_v32 = vpop.f32.mrf.mxu1 }
 0x119   : > { %v4687_v40 = vadd.f32 %v3314_v33, %v1922_v27  ;;  %v3205_v59 = vadd.f32 %v3204_v34, %v3203_v23  ;;  %v3317_v5 = vadd.f32 %v3316_v32, %v3315_v22  ;;  %v1270_v23 = vrot.slane %v1268_v56, 1 }
 0x11a   : > { %v3206_v41 = vpop.f32.mrf.mxu0  ;;  %v3318_v35 = vpop.f32.mrf.mxu1 }
 0x11b   : > { %v1927_v14 = vadd.f32 %v3205_v59, %v4629_v15  ;;  %v1271_v11 = vsel %vm951_vm1, %v1266_v62, %v1270_v23 }
 0x11c   : > { %v3207_v54 = vpop.f32.mrf.mxu0  ;;  %v3319_v39 = vpop.f32.mrf.mxu1 }
 0x11d   : > { %v4693_v8 = vadd.f32 %v3317_v5, %v1927_v14  ;;  %v3208_v17 = vadd.f32 %v3207_v54, %v3206_v41  ;;  %v3320_v16 = vadd.f32 %v3319_v39, %v3318_v35  ;;  %v3874_v5 = vld [vmem:[%s5195_s3 + $0x28] sm:$0xff]  }
 0x11e   : > { %v3209_v61 = vpop.f32.mrf.mxu0  ;;  %2319 = vmatmul.mubr.bf16.gmra.mxu0 %v4548_v19  ;;  %v3321_v0 = vpop.f32.mrf.mxu1  ;;  %2480 = vmatmul.mubr.bf16.gmra.mxu1 %v4530_v30 }
 0x11f   : > { %v1930_v37 = vadd.f32 %v3208_v17, %v4629_v15  ;;  %2326 = vmatprep.mubr.bf16.mxu0 %v4571_v50  ;;  %2487 = vmatprep.mubr.bf16.mxu1 %v1245_v55 }
 0x120   : > { %v3210_v2 = vpop.f32.mrf.mxu0  ;;  %v3322_v24 = vpop.f32.mrf.mxu1  ;;  %3711 = vmatprep.subr.bf16.mxu1 %v3874_v5 }
 0x121   : > { %v4703_v63 = vadd.f32 %v3320_v16, %v1930_v37  ;;  %v3211_v46 = vadd.f32 %v3210_v2, %v3209_v61  ;;  %v3323_v33 = vadd.f32 %v3322_v24, %v3321_v0  ;;  %3712 = vmatpush3.bf16.msra.mxu1 %v3874_v5 }
 0x122   : > { %v3212_v19 = vpop.f32.mrf.mxu0  ;;  %v3324_v22 = vpop.f32.mrf.mxu1 }
 0x123   : > { %v1935_v27 = vadd.f32 %v3211_v46, %v4629_v15 }
 0x124   : > { %v3213_v30 = vpop.f32.mrf.mxu0  ;;  %v3325_v59 = vpop.f32.mrf.mxu1 }
 0x125   : > { %v4709_v34 = vadd.f32 %v3323_v33, %v1935_v27  ;;  %v3214_v44 = vadd.f32 %v3213_v30, %v3212_v19  ;;  %v3326_v60 = vadd.f32 %v3325_v59, %v3324_v22 }
 0x126   : > { %v3215_v32 = vpop.f32.mrf.mxu0  ;;  %2327 = vmatmul.mubr.bf16.gmra.mxu0 %v4563_v21  ;;  %v3327_v41 = vpop.f32.mrf.mxu1  ;;  %2488 = vmatmul.mubr.bf16.gmra.mxu1 %v4557_v7 }
 0x127   : > { %v1938_v45 = vadd.f32 %v3214_v44, %v4629_v15  ;;  %2334 = vmatprep.mubr.bf16.mxu0 %v4707_v43  ;;  %2495 = vmatprep.mubr.bf16.mxu1 %v1271_v11 }
 0x128   : > { %v3216_v14 = vpop.f32.mrf.mxu0  ;;  %v3328_v52 = vpop.f32.mrf.mxu1 }
 0x129   : > { %v4719_v35 = vadd.f32 %v3326_v60, %v1938_v45  ;;  %v3217_v54 = vadd.f32 %v3216_v14, %v3215_v32  ;;  %v3329_v21 = vadd.f32 %v3328_v52, %v3327_v41  ;;  %v3875_v60 = vld [vmem:[%s5195_s3 + $0x20] sm:$0xff]  }
 0x12a   : > { %v3218_v51 = vpop.f32.mrf.mxu0  ;;  %v3330_v39 = vpop.f32.mrf.mxu1  ;;  %3713 = vmatprep.subr.bf16.mxu1 %v3875_v60 }
 0x12b   : > { %v1943_v17 = vadd.f32 %v3217_v54, %v4629_v15  ;;  %3714 = vmatpush3.bf16.msra.mxu1 %v3875_v60 }
 0x12c   : > { %v3219_v7 = vpop.f32.mrf.mxu0  ;;  %v3331_v16 = vpop.f32.mrf.mxu1 }
 0x12d   : > { %v4722_v56 = vadd.f32 %v3329_v21, %v1943_v17  ;;  %v3220_v61 = vadd.f32 %v3219_v7, %v3218_v51  ;;  %v3332_v0 = vadd.f32 %v3331_v16, %v3330_v39 }
 0x12e   : > { %v3221_v37 = vpop.f32.mrf.mxu0  ;;  %2335 = vmatmul.mubr.bf16.gmra.mxu0 %v1245_v55  ;;  %v3333_v3 = vpop.f32.mrf.mxu1  ;;  %2496 = vmatmul.mubr.bf16.gmra.mxu1 %v4673_v12 }
 0x12f   : > { %v1946_v2 = vadd.f32 %v3220_v61, %v4629_v15  ;;  %3675 = vmatprep.mubr.bf16.mxu0 %v4165_v49 }
 0x130   : > { %v3222_v1 = vpop.f32.mrf.mxu0  ;;  %v3334_v62 = vpop.f32.mrf.mxu1 }
 0x131   : > { %v4727_v46 = vadd.f32 %v3332_v0, %v1946_v2  ;;  %v3223_v24 = vadd.f32 %v3222_v1, %v3221_v37  ;;  %v3335_v19 = vadd.f32 %v3334_v62, %v3333_v3 }
 0x132   : > { %v3224_v23 = vpop.f32.mrf.mxu0  ;;  %v3336_v27 = vpop.f32.mrf.mxu1 }
 0x133   : > { %v1951_v33 = vadd.f32 %v3223_v24, %v4629_v15 }
 0x134   : > { %v3225_v22 = vpop.f32.mrf.mxu0  ;;  %v3337_v44 = vpop.f32.mrf.mxu1 }
 0x135   : > { %v4730_v30 = vadd.f32 %v3335_v19, %v1951_v33  ;;  %v3226_v55 = vadd.f32 %v3225_v22, %v3224_v23  ;;  %v3338_v11 = vadd.f32 %v3337_v44, %v3336_v27 }
 0x136   : > { %v3227_v59 = vpop.f32.mrf.mxu0  ;;  %3676 = vmatmul.mubr.bf16.vlgmr.msra.gmra.mxu0 %v4204_v31  ;;  %v3339_v32 = vpop.f32.mrf.mxu1 }
 0x137   : > { %v1954_v49 = vadd.f32 %v3226_v55, %v4629_v15  ;;  %3679 = vmatprep.mubr.bf16.mxu0 %v4244_v10 }
 0x138   : > { %v3228_v45 = vpop.f32.mrf.mxu0  ;;  %v3340_v14 = vpop.f32.mrf.mxu1 }
 0x139   : > { %v4738_v41 = vadd.f32 %v3338_v11, %v1954_v49  ;;  %v3229_v5 = vadd.f32 %v3228_v45, %v3227_v59  ;;  %v3341_v52 = vadd.f32 %v3340_v14, %v3339_v32  ;;  %v3876_v11 = vld [vmem:[%s5195_s3 + $0x18] sm:$0xff]  }
 0x13a   : > { %v3230_v54 = vpop.f32.mrf.mxu0  ;;  %v3342_v51 = vpop.f32.mrf.mxu1  ;;  %3715 = vmatprep.subr.bf16.mxu1 %v3876_v11 }
 0x13b   : > { %v1959_v31 = vadd.f32 %v3229_v5, %v4629_v15  ;;  %3716 = vmatpush3.bf16.msra.mxu1 %v3876_v11 }
 0x13c   : > { %v3231_v21 = vpop.f32.mrf.mxu0  ;;  %v3343_v39 = vpop.f32.mrf.mxu1 }
 0x13d   : > { %v4741_v17 = vadd.f32 %v3341_v52, %v1959_v31  ;;  %v3232_v10 = vadd.f32 %v3231_v21, %v3230_v54  ;;  %v3344_v61 = vadd.f32 %v3343_v39, %v3342_v51 }
 0x13e   : > { %v3233_v7 = vpop.f32.mrf.mxu0  ;;  %3680 = vmatmul.mubr.bf16.gmra.mxu0 %v4290_v25  ;;  %v3345_v37 = vpop.f32.mrf.mxu1 }
 0x13f   : > { %v1962_v16 = vadd.f32 %v3232_v10, %v4629_v15  ;;  %3683 = vmatprep.mubr.bf16.mxu0 %v4336_v47 }
 0x140   : > { %v3234_v0 = vpop.f32.mrf.mxu0  ;;  %v3346_v1 = vpop.f32.mrf.mxu1 }
 0x141   : > { %v4746_v2 = vadd.f32 %v3344_v61, %v1962_v16  ;;  %v3235_v3 = vadd.f32 %v3234_v0, %v3233_v7  ;;  %v3347_v62 = vadd.f32 %v3346_v1, %v3345_v37 }
 0x142   : > { %v3236_v24 = vpop.f32.mrf.mxu0  ;;  %v3348_v19 = vpop.f32.mrf.mxu1 }
 0x143   : > { %v1967_v23 = vadd.f32 %v3235_v3, %v4629_v15 }
 0x144   : > { %v3237_v33 = vpop.f32.mrf.mxu0  ;;  %v3349_v25 = vpop.f32.mrf.mxu1 }
 0x145   : > { %v4749_v27 = vadd.f32 %v3347_v62, %v1967_v23  ;;  %v3238_v22 = vadd.f32 %v3237_v33, %v3236_v24  ;;  %v3350_v44 = vadd.f32 %v3349_v25, %v3348_v19 }
 0x146   : > { %v3239_v55 = vpop.f32.mrf.mxu0  ;;  %3684 = vmatmul.mubr.bf16.gmra.mxu0 %v4361_v4  ;;  %v3351_v59 = vpop.f32.mrf.mxu1 }
 0x147   : > { %v1970_v47 = vadd.f32 %v3238_v22, %v4629_v15  ;;  %3687 = vmatprep.mubr.bf16.mxu0 %v4413_v13 }
 0x148   : > { %v3240_v49 = vpop.f32.mrf.mxu0  ;;  %v3352_v45 = vpop.f32.mrf.mxu1 }
 0x149   : > { %v4757_v32 = vadd.f32 %v3350_v44, %v1970_v47  ;;  %v3241_v60 = vadd.f32 %v3240_v49, %v3239_v55  ;;  %v3353_v14 = vadd.f32 %v3352_v45, %v3351_v59  ;;  %v3877_v44 = vld [vmem:[%s5195_s3 + $0x10] sm:$0xff]  }
 0x14a   : > { %v3242_v5 = vpop.f32.mrf.mxu0  ;;  %v3354_v54 = vpop.f32.mrf.mxu1  ;;  %3717 = vmatprep.subr.bf16.mxu1 %v3877_v44 }
 0x14b   : > { %v1975_v4 = vadd.f32 %v3241_v60, %v4629_v15  ;;  %3718 = vmatpush3.bf16.msra.mxu1 %v3877_v44 }
 0x14c   : > { %v3243_v52 = vpop.f32.mrf.mxu0  ;;  %v3355_v51 = vpop.f32.mrf.mxu1 }
 0x14d   : > { %v4760_v31 = vadd.f32 %v3353_v14, %v1975_v4  ;;  %v3244_v13 = vadd.f32 %v3243_v52, %v3242_v5  ;;  %v3356_v10 = vadd.f32 %v3355_v51, %v3354_v54 }
 0x14e   : > { %v3245_v21 = vpop.f32.mrf.mxu0  ;;  %3688 = vmatmul.mubr.bf16.gmra.mxu0 %v4439_v28  ;;  %v3357_v7 = vpop.f32.mrf.mxu1 }
 0x14f   : > { %v1978_v39 = vadd.f32 %v3244_v13, %v4629_v15  ;;  %3691 = vmatprep.mubr.bf16.mxu0 %v4482_v58 }
 0x150   : > { %v3246_v61 = vpop.f32.mrf.mxu0  ;;  %v3358_v0 = vpop.f32.mrf.mxu1 }
 0x151   : > { %v4765_v16 = vadd.f32 %v3356_v10, %v1978_v39  ;;  %v3247_v37 = vadd.f32 %v3246_v61, %v3245_v21  ;;  %v3359_v1 = vadd.f32 %v3358_v0, %v3357_v7 }
 0x152   : > { %v3248_v3 = vpop.f32.mrf.mxu0  ;;  %v3360_v62 = vpop.f32.mrf.mxu1 }
 0x153   : > { %v1983_v24 = vadd.f32 %v3247_v37, %v4629_v15 }
 0x154   : > { %v3249_v23 = vpop.f32.mrf.mxu0  ;;  %v3361_v28 = vpop.f32.mrf.mxu1 }
 0x155   : > { %v4768_v19 = vadd.f32 %v3359_v1, %v1983_v24  ;;  %v3250_v33 = vadd.f32 %v3249_v23, %v3248_v3  ;;  %v3362_v25 = vadd.f32 %v3361_v28, %v3360_v62 }
 0x156   : > { %v3251_v22 = vpop.f32.mrf.mxu0  ;;  %3692 = vmatmul.mubr.bf16.gmra.mxu0 %v4503_v20  ;;  %v3363_v55 = vpop.f32.mrf.mxu1 }
 0x157   : > { %v1986_v58 = vadd.f32 %v3250_v33, %v4629_v15  ;;  %3695 = vmatprep.mubr.bf16.mxu0 %v4524_v26 }
 0x158   : > { %v3252_v47 = vpop.f32.mrf.mxu0  ;;  %v3364_v49 = vpop.f32.mrf.mxu1 }
 0x159   : > { %v4776_v59 = vadd.f32 %v3362_v25, %v1986_v58  ;;  %v3253_v11 = vadd.f32 %v3252_v47, %v3251_v22  ;;  %v3365_v45 = vadd.f32 %v3364_v49, %v3363_v55  ;;  %v1273_v25 = vrot.slane %v4673_v12, 1  ;;  %v3878_v55 = vld [vmem:[%s5195_s3 + $0x8] sm:$0xff]  }
 0x15a   : > { %v3254_v60 = vpop.f32.mrf.mxu0  ;;  %v3366_v5 = vpop.f32.mrf.mxu1  ;;  %v1274_v58 = vrot.slane %v4689_v36, 1  ;;  %3719 = vmatprep.subr.bf16.mxu1 %v3878_v55 }
 0x15b   : > { %v1991_v20 = vadd.f32 %v3253_v11, %v4629_v15  ;;  %3720 = vmatpush3.bf16.msra.mxu1 %v3878_v55 }
 0x15c   : > { %v3255_v14 = vpop.f32.mrf.mxu0  ;;  %v3367_v54 = vpop.f32.mrf.mxu1  ;;  %v1275_v12 = vsel %vm1160_vm8, %v1273_v25, %v1274_v58  ;;  %v3879_v25 = vld [vmem:[%s5195_s3] sm:$0xff]  }
 0x15d   : > { %v4779_v4 = vadd.f32 %v3365_v45, %v1991_v20  ;;  %v3256_v26 = vadd.f32 %v3255_v14, %v3254_v60  ;;  %v3368_v13 = vadd.f32 %v3367_v54, %v3366_v5  ;;  %3721 = vmatprep.subr.bf16.mxu1 %v3879_v25 }
 0x15e   : > { %v3257_v52 = vpop.f32.mrf.mxu0  ;;  %3696 = vmatmul.mubr.bf16.gmra.mxu0 %v4545_v57  ;;  %v3369_v21 = vpop.f32.mrf.mxu1 }
 0x15f   : > { %v1994_v51 = vadd.f32 %v3256_v26, %v4629_v15  ;;  %3699 = vmatprep.mubr.bf16.mxu0 %v4560_v6  ;;  %3722 = vmatpush3.bf16.msra.mxu1 %v3879_v25 }
 0x160   : > { %v3258_v10 = vpop.f32.mrf.mxu0  ;;  %v3370_v61 = vpop.f32.mrf.mxu1 }
 0x161   : > { %v4784_v39 = vadd.f32 %v3368_v13, %v1994_v51  ;;  %v3259_v7 = vadd.f32 %v3258_v10, %v3257_v52  ;;  %v3371_v0 = vadd.f32 %v3370_v61, %v3369_v21 }
 0x162   : > { %v3260_v37 = vpop.f32.mrf.mxu0  ;;  %v3372_v1 = vpop.f32.mrf.mxu1 }
 0x163   : > { %v1999_v3 = vadd.f32 %v3259_v7, %v4629_v15 }
 0x164   : > { %v3261_v24 = vpop.f32.mrf.mxu0  ;;  %v3373_v57 = vpop.f32.mrf.mxu1 }
 0x165   : > { %v4787_v62 = vadd.f32 %v3371_v0, %v1999_v3  ;;  %v3262_v23 = vadd.f32 %v3261_v24, %v3260_v37  ;;  %v3374_v28 = vadd.f32 %v3373_v57, %v3372_v1 }
 0x166   : > { %v3263_v33 = vpop.f32.mrf.mxu0  ;;  %3700 = vmatmul.mubr.bf16.gmra.mxu0 %v4571_v50  ;;  %v3375_v22 = vpop.f32.mrf.mxu1 }
 0x167   : > { %v2002_v6 = vadd.f32 %v3262_v23, %v4629_v15  ;;  %3703 = vmatprep.mubr.bf16.mxu0 %v4707_v43 }
 0x168   : > { %v3264_v44 = vpop.f32.mrf.mxu0  ;;  %v3376_v49 = vpop.f32.mrf.mxu1 }
 0x169   : > { %v4797_v47 = vadd.f32 %v3374_v28, %v2002_v6  ;;  %v3265_v11 = vadd.f32 %v3264_v44, %v3263_v33  ;;  %v3377_v60 = vadd.f32 %v3376_v49, %v3375_v22 }
 0x16a   : > { %v3266_v50 = vpop.f32.mrf.mxu0  ;;  %v3378_v43 = vpop.f32.mrf.mxu1 }
 0x16b   : > { %v2007_v45 = vadd.f32 %v3265_v11, %v4629_v15 }
 0x16c   : > { %v3267_v20 = vpop.f32.mrf.mxu0  ;;  %v3379_v14 = vpop.f32.mrf.mxu1 }
 0x16d   : > { %v4801_v36 = vadd.f32 %v3377_v60, %v2007_v45  ;;  %v3268_v5 = vadd.f32 %v3267_v20, %v3266_v50  ;;  %v3380_v54 = vadd.f32 %v3379_v14, %v3378_v43 }
 0x16e   : > { %v3269_v26 = vpop.f32.mrf.mxu0  ;;  %3704 = vmatmul.mubr.bf16.gmra.mxu0 %v1275_v12  ;;  %v3381_v13 = vpop.f32.mrf.mxu1 }
 0x16f   : > { %v2010_v52 = vadd.f32 %v3268_v5, %v4629_v15 }
 0x170   : > { %v3270_v51 = vpop.f32.mrf.mxu0  ;;  %v3382_v7 = vpop.f32.mrf.mxu1 }
 0x171   : > { %v4804_v21 = vadd.f32 %v3380_v54, %v2010_v52  ;;  %v3271_v10 = vadd.f32 %v3270_v51, %v3269_v26  ;;  %v3383_v37 = vadd.f32 %v3382_v7, %v3381_v13 }
 0x172   : > { %v3272_v61 = vpop.f32.mrf.mxu0  ;;  %v3384_v3 = vpop.f32.mrf.mxu1 }
 0x173   : > { %v2015_v0 = vadd.f32 %v3271_v10, %v4629_v15 }
 0x174   : > { %v3273_v1 = vpop.f32.mrf.mxu0  ;;  %v3385_v57 = vpop.f32.mrf.mxu1 }
 0x175   : > { %v4807_v24 = vadd.f32 %v3383_v37, %v2015_v0  ;;  %v3274_v23 = vadd.f32 %v3273_v1, %v3272_v61  ;;  %v3386_v33 = vadd.f32 %v3385_v57, %v3384_v3 }
 0x176   : > { %v3403_v28 = vpop.f32.mrf.mxu0  ;;  %v3515_v22 = vpop.f32.mrf.mxu1 }
 0x177   : > { %v2018_v6 = vadd.f32 %v3274_v23, %v4629_v15 }
 0x178   : > { %v3404_v58 = vpop.f32.mrf.mxu0  ;;  %v3516_v11 = vpop.f32.mrf.mxu1 }
 0x179   : > { %v4813_v55 = vadd.f32 %v3386_v33, %v2018_v6  ;;  %v3405_v44 = vadd.f32 %v3404_v58, %v3403_v28  ;;  %v3517_v50 = vadd.f32 %v3516_v11, %v3515_v22 }
 0x17a   : > { %v3406_v49 = vpop.f32.mrf.mxu0  ;;  %v3518_v45 = vpop.f32.mrf.mxu1 }
 0x17b   : > { %5204 = vst [vmem:[#allocation3_spill] sm:$0xff] %v4813_v55  ;;  %v2217_v60 = vadd.f32 %v3405_v44, %v4636_v53 }
 0x17c   : > { %v3407_v43 = vpop.f32.mrf.mxu0  ;;  %v3519_v15 = vpop.f32.mrf.mxu1 }
 0x17d   : > { %v3408_v12 = vadd.f32 %v3407_v43, %v3406_v49  ;;  %v4816_v20 = vadd.f32 %v3517_v50, %v2217_v60  ;;  %v3520_v14 = vadd.f32 %v3519_v15, %v3518_v45 }
 0x17e   : > { %v3409_v5 = vpop.f32.mrf.mxu0  ;;  %v4819_v54 = vpop.f32.mrf.mxu1 }
 0x17f   : > { %v2220_v26 = vadd.f32 %v3408_v12, %v4642_v38 }
 0x180   : > { %v3410_v52 = vpop.f32.mrf.mxu0  ;;  %v4821_v51 = vpop.f32.mrf.mxu1 }
 0x181   : > { %v3411_v13 = vadd.f32 %v3410_v52, %v3409_v5  ;;  %v4823_v10 = vadd.f32 %v3520_v14, %v2220_v26 }
 0x182   : > { %v3412_v7 = vpop.f32.mrf.mxu0  ;;  %v4828_v61 = vpop.f32.mrf.mxu1 }
 0x183   : > { %v4826_v53 = vadd.f32 %v3411_v13, %v4646_v9 }
 0x184   : > { %v3413_v37 = vpop.f32.mrf.mxu0  ;;  %v4830_v3 = vpop.f32.mrf.mxu1 }
 0x185   : > { %v3414_v0 = vadd.f32 %v3413_v37, %v3412_v7 }
 0x186   : > { %v3415_v1 = vpop.f32.mrf.mxu0  ;;  %v4835_v23 = vpop.f32.mrf.mxu1 }
 0x187   : > { %v4833_v38 = vadd.f32 %v3414_v0, %v4656_v42 }
 0x188   : > { %v3416_v57 = vpop.f32.mrf.mxu0  ;;  %v4837_v28 = vpop.f32.mrf.mxu1 }
 0x189   : > { %v3417_v33 = vadd.f32 %v3416_v57, %v3415_v1 }
 0x18a   : > { %v3418_v6 = vpop.f32.mrf.mxu0  ;;  %v4842_v22 = vpop.f32.mrf.mxu1 }
 0x18b   : > { %v4840_v9 = vadd.f32 %v3417_v33, %v4659_v18 }
 0x18c   : > { %v3419_v25 = vpop.f32.mrf.mxu0  ;;  %v4844_v44 = vpop.f32.mrf.mxu1 }
 0x18d   : > { %v3420_v58 = vadd.f32 %v3419_v25, %v3418_v6 }
 0x18e   : > { %v3421_v11 = vpop.f32.mrf.mxu0  ;;  %v4849_v49 = vpop.f32.mrf.mxu1 }
 0x18f   : > { %v4847_v42 = vadd.f32 %v3420_v58, %v4666_v48 }
 0x190   : > { %v3422_v50 = vpop.f32.mrf.mxu0  ;;  %v4851_v45 = vpop.f32.mrf.mxu1 }
 0x191   : > { %v3423_v60 = vadd.f32 %v3422_v50, %v3421_v11 }
 0x192   : > { %v3424_v43 = vpop.f32.mrf.mxu0  ;;  %v4856_v12 = vpop.f32.mrf.mxu1 }
 0x193   : > { %v4854_v18 = vadd.f32 %v3423_v60, %v4675_v29 }
 0x194   : > { %v3425_v15 = vpop.f32.mrf.mxu0  ;;  %v4858_v14 = vpop.f32.mrf.mxu1 }
 0x195   : > { %v3426_v5 = vadd.f32 %v3425_v15, %v3424_v43 }
 0x196   : > { %v3427_v26 = vpop.f32.mrf.mxu0  ;;  %v4863_v52 = vpop.f32.mrf.mxu1 }
 0x197   : > { %v4861_v48 = vadd.f32 %v3426_v5, %v4687_v40 }
 0x198   : > { %v3428_v13 = vpop.f32.mrf.mxu0  ;;  %v4865_v37 = vpop.f32.mrf.mxu1 }
 0x199   : > { %v3429_v7 = vadd.f32 %v3428_v13, %v3427_v26 }
 0x19a   : > { %v3430_v0 = vpop.f32.mrf.mxu0  ;;  %v4870_v1 = vpop.f32.mrf.mxu1 }
 0x19b   : > { %v4868_v29 = vadd.f32 %v3429_v7, %v4693_v8 }
 0x19c   : > { %v3431_v57 = vpop.f32.mrf.mxu0  ;;  %v4872_v6 = vpop.f32.mrf.mxu1 }
 0x19d   : > { %v3432_v33 = vadd.f32 %v3431_v57, %v3430_v0 }
 0x19e   : > { %v3433_v25 = vpop.f32.mrf.mxu0  ;;  %v4877_v58 = vpop.f32.mrf.mxu1 }
 0x19f   : > { %v4875_v40 = vadd.f32 %v3432_v33, %v4703_v63 }
 0x1a0   : > { %v3434_v11 = vpop.f32.mrf.mxu0  ;;  %v4879_v60 = vpop.f32.mrf.mxu1 }
 0x1a1   : > { %5205 = vst [vmem:[#allocation4_spill] sm:$0xff] %v4875_v40  ;;  %v3435_v50 = vadd.f32 %v3434_v11, %v3433_v25 }
 0x1a2   : > { %v3436_v43 = vpop.f32.mrf.mxu0  ;;  %v4884_v15 = vpop.f32.mrf.mxu1 }
 0x1a3   : > { %v4882_v8 = vadd.f32 %v3435_v50, %v4709_v34 }
 0x1a4   : > { %v3437_v5 = vpop.f32.mrf.mxu0  ;;  %v4886_v13 = vpop.f32.mrf.mxu1 }
 0x1a5   : > { %v3438_v26 = vadd.f32 %v3437_v5, %v3436_v43 }
 0x1a6   : > { %v3439_v7 = vpop.f32.mrf.mxu0  ;;  %v4891_v0 = vpop.f32.mrf.mxu1 }
 0x1a7   : > { %v4889_v63 = vadd.f32 %v3438_v26, %v4719_v35  ;;  %5206 = vst [vmem:[#allocation5_spill] sm:$0xff] %v4891_v0 }
 0x1a8   : > { %v3440_v57 = vpop.f32.mrf.mxu0  ;;  %v4893_v25 = vpop.f32.mrf.mxu1 }
 0x1a9   : > { %v3441_v33 = vadd.f32 %v3440_v57, %v3439_v7  ;;  %5207 = vst [vmem:[#allocation6_spill] sm:$0xff] %v4893_v25 }
 0x1aa   : > { %v3442_v11 = vpop.f32.mrf.mxu0  ;;  %v4898_v50 = vpop.f32.mrf.mxu1 }
 0x1ab   : > { %v4896_v34 = vadd.f32 %v3441_v33, %v4722_v56  ;;  %5209 = vst [vmem:[#allocation8_spill] sm:$0xff] %v4898_v50 }
 0x1ac   : > { %v3443_v55 = vpop.f32.mrf.mxu0  ;;  %v4900_v5 = vpop.f32.mrf.mxu1 }
 0x1ad   : > { %5208 = vst [vmem:[#allocation7_spill] sm:$0xff] %v4896_v34  ;;  %v3444_v43 = vadd.f32 %v3443_v55, %v3442_v11  ;;  %5210 = vst [vmem:[#allocation9_spill] sm:$0xff] %v4900_v5 }
 0x1ae   : > { %v3445_v40 = vpop.f32.mrf.mxu0  ;;  %v4905_v26 = vpop.f32.mrf.mxu1 }
 0x1af   : > { %v4903_v35 = vadd.f32 %v3444_v43, %v4727_v46 }
 0x1b0   : > { %v3446_v0 = vpop.f32.mrf.mxu0  ;;  %v4907_v57 = vpop.f32.mrf.mxu1 }
 0x1b1   : > { %5211 = vst [vmem:[#allocation10_spill] sm:$0xff] %v4903_v35  ;;  %v3447_v7 = vadd.f32 %v3446_v0, %v3445_v40 }
 0x1b2   : > { %v3448_v25 = vpop.f32.mrf.mxu0  ;;  %v4912_v33 = vpop.f32.mrf.mxu1 }
 0x1b3   : > { %v4910_v56 = vadd.f32 %v3447_v7, %v4730_v30 }
 0x1b4   : > { %v3449_v34 = vpop.f32.mrf.mxu0  ;;  %v4914_v11 = vpop.f32.mrf.mxu1 }
 0x1b5   : > { %5212 = vst [vmem:[#allocation11_spill] sm:$0xff] %v4910_v56  ;;  %v3450_v55 = vadd.f32 %v3449_v34, %v3448_v25  ;;  %5213 = vst [vmem:[#allocation12_spill] sm:$0xff] %v4914_v11 }
 0x1b6   : > { %v3451_v5 = vpop.f32.mrf.mxu0  ;;  %v4919_v43 = vpop.f32.mrf.mxu1 }
 0x1b7   : > { %v4917_v46 = vadd.f32 %v3450_v55, %v4738_v41  ;;  %5214 = vst [vmem:[#allocation13_spill] sm:$0xff] %v4919_v43 }
 0x1b8   : > { %v3452_v35 = vpop.f32.mrf.mxu0  ;;  %v4921_v0 = vpop.f32.mrf.mxu1 }
 0x1b9   : > { %v3453_v40 = vadd.f32 %v3452_v35, %v3451_v5  ;;  %5215 = vst [vmem:[#allocation14_spill] sm:$0xff] %v4921_v0 }
 0x1ba   : > { %v3454_v50 = vpop.f32.mrf.mxu0  ;;  %v4926_v7 = vpop.f32.mrf.mxu1 }
 0x1bb   : > { %v4924_v30 = vadd.f32 %v3453_v40, %v4741_v17  ;;  %5217 = vst [vmem:[#allocation16_spill] sm:$0xff] %v4926_v7 }
 0x1bc   : > { %v3455_v56 = vpop.f32.mrf.mxu0  ;;  %v4928_v34 = vpop.f32.mrf.mxu1 }
 0x1bd   : > { %5216 = vst [vmem:[#allocation15_spill] sm:$0xff] %v4924_v30  ;;  %v3456_v25 = vadd.f32 %v3455_v56, %v3454_v50  ;;  %5218 = vst [vmem:[#allocation17_spill] sm:$0xff] %v4928_v34 }
 0x1be   : > { %v3457_v11 = vpop.f32.mrf.mxu0  ;;  %v4933_v55 = vpop.f32.mrf.mxu1 }
 0x1bf   : > { %v4931_v41 = vadd.f32 %v3456_v25, %v4746_v2 }
 0x1c0   : > { %v3458_v43 = vpop.f32.mrf.mxu0  ;;  %v4935_v35 = vpop.f32.mrf.mxu1 }
 0x1c1   : > { %5219 = vst [vmem:[#allocation18_spill] sm:$0xff] %v4931_v41  ;;  %v3459_v5 = vadd.f32 %v3458_v43, %v3457_v11  ;;  %5220 = vst [vmem:[#allocation19_spill] sm:$0xff] %v4935_v35 }
 0x1c2   : > { %v3460_v0 = vpop.f32.mrf.mxu0  ;;  %v4940_v7 = vpop.f32.mrf.mxu1 }
 0x1c3   : > { %v4938_v17 = vadd.f32 %v3459_v5, %v4749_v27 }
 0x1c4   : > { %v3461_v40 = vpop.f32.mrf.mxu0  ;;  %v4945_v25 = vpop.f32.mrf.mxu1 }
 0x1c5   : > { %5221 = vst [vmem:[#allocation20_spill] sm:$0xff] %v4938_v17  ;;  %v3462_v30 = vadd.f32 %v3461_v40, %v3460_v0 }
 0x1c6   : > { %v3463_v50 = vpop.f32.mrf.mxu0  ;;  %v4950_v35 = vpop.f32.mrf.mxu1 }
 0x1c7   : > { %v4943_v56 = vadd.f32 %v3462_v30, %v4757_v32 }
 0x1c8   : > { %v3464_v2 = vpop.f32.mrf.mxu0  ;;  %v4955_v17 = vpop.f32.mrf.mxu1 }
 0x1c9   : > { %5222 = vst [vmem:[#allocation21_spill] sm:$0xff] %v4943_v56  ;;  %v3465_v41 = vadd.f32 %v3464_v2, %v3463_v50 }
 0x1ca   : > { %v3466_v34 = vpop.f32.mrf.mxu0  ;;  %v4960_v2 = vpop.f32.mrf.mxu1 }
 0x1cb   : > { %v4948_v11 = vadd.f32 %v3465_v41, %v4760_v31 }
 0x1cc   : > { %v3467_v43 = vpop.f32.mrf.mxu0 }
 0x1cd   : > { %5223 = vst [vmem:[#allocation22_spill] sm:$0xff] %v4948_v11  ;;  %v3468_v27 = vadd.f32 %v3467_v43, %v3466_v34  ;;  %v4965_v43 = vpop.f32.mrf.mxu1 }
 0x1ce   : > { %v3469_v5 = vpop.f32.mrf.mxu0 }
 0x1cf   : > { %v4953_v0 = vadd.f32 %v3468_v27, %v4765_v16 }
 0x1d0   : > { %v3470_v40 = vpop.f32.mrf.mxu0 }
 0x1d1   : > { %5224 = vst [vmem:[#allocation23_spill] sm:$0xff] %v4953_v0  ;;  %v3471_v32 = vadd.f32 %v3470_v40, %v3469_v5  ;;  %v4970_v40 = vpop.f32.mrf.mxu1 }
 0x1d2   : > { %v3472_v30 = vpop.f32.mrf.mxu0 }
 0x1d3   : > { %v4958_v56 = vadd.f32 %v3471_v32, %v4768_v19 }
 0x1d4   : > { %v3473_v50 = vpop.f32.mrf.mxu0 }
 0x1d5   : > { %5225 = vst [vmem:[#allocation24_spill] sm:$0xff] %v4958_v56  ;;  %v3474_v31 = vadd.f32 %v3473_v50, %v3472_v30  ;;  %v4975_v50 = vpop.f32.mrf.mxu1 }
 0x1d6   : > { %v3475_v41 = vpop.f32.mrf.mxu0 }
 0x1d7   : > { %v4963_v11 = vadd.f32 %v3474_v31, %v4776_v59 }
 0x1d8   : > { %v3476_v34 = vpop.f32.mrf.mxu0 }
 0x1d9   : > { %5226 = vst [vmem:[#allocation25_spill] sm:$0xff] %v4963_v11  ;;  %v3477_v16 = vadd.f32 %v3476_v34, %v3475_v41  ;;  %v4980_v34 = vpop.f32.mrf.mxu1 }
 0x1da   : > { %v3478_v27 = vpop.f32.mrf.mxu0 }
 0x1db   : > { %v4968_v0 = vadd.f32 %v3477_v16, %v4779_v4 }
 0x1dc   : > { %v3479_v5 = vpop.f32.mrf.mxu0 }
 0x1dd   : > { %5227 = vst [vmem:[#allocation26_spill] sm:$0xff] %v4968_v0  ;;  %v3480_v19 = vadd.f32 %v3479_v5, %v3478_v27  ;;  %v4985_v5 = vpop.f32.mrf.mxu1 }
 0x1de   : > { %v3481_v32 = vpop.f32.mrf.mxu0 }
 0x1df   : > { %v4973_v56 = vadd.f32 %v3480_v19, %v4784_v39 }
 0x1e0   : > { %v3482_v30 = vpop.f32.mrf.mxu0 }
 0x1e1   : > { %5228 = vst [vmem:[#allocation27_spill] sm:$0xff] %v4973_v56  ;;  %v3483_v59 = vadd.f32 %v3482_v30, %v3481_v32  ;;  %v4990_v30 = vpop.f32.mrf.mxu1 }
 0x1e2   : > { %v3484_v31 = vpop.f32.mrf.mxu0 }
 0x1e3   : > { %v4978_v11 = vadd.f32 %v3483_v59, %v4787_v62 }
 0x1e4   : > { %v3485_v41 = vpop.f32.mrf.mxu0 }
 0x1e5   : > { %5229 = vst [vmem:[#allocation28_spill] sm:$0xff] %v4978_v11  ;;  %v3486_v4 = vadd.f32 %v3485_v41, %v3484_v31  ;;  %v4995_v41 = vpop.f32.mrf.mxu1 }
 0x1e6   : > { %v3487_v16 = vpop.f32.mrf.mxu0 }
 0x1e7   : > { %v4983_v0 = vadd.f32 %v3486_v4, %v4797_v47 }
 0x1e8   : > { %v3488_v27 = vpop.f32.mrf.mxu0 }
 0x1e9   : > { %v3489_v39 = vadd.f32 %v3488_v27, %v3487_v16  ;;  %v3523_v16 = vadd.f32 %v4821_v51, %v4819_v54 }
 0x1ea   : > { %v3490_v19 = vpop.f32.mrf.mxu0 }
 0x1eb   : > { %v4988_v56 = vadd.f32 %v3489_v39, %v4801_v36  ;;  %v3526_v39 = vadd.f32 %v4830_v3, %v4828_v61  ;;  %v3529_v61 = vadd.f32 %v4837_v28, %v4835_v23 }
 0x1ec   : > { %v3491_v32 = vpop.f32.mrf.mxu0 }
 0x1ed   : > { %5230 = vst [vmem:[#allocation29_spill] sm:$0xff] %v4988_v56  ;;  %v3492_v62 = vadd.f32 %v3491_v32, %v3490_v19  ;;  %v5008_v19 = vpop.f32.mrf.mxu1  ;;  %v2386_v32 = vadd.f32 %v3523_v16, %v4826_v53  ;;  %v3538_v53 = vadd.f32 %v4858_v14, %v4856_v12  ;;  %v2394_v14 = vadd.f32 %v3529_v61, %v4840_v9 }
 0x1ee   : > { %v3493_v59 = vpop.f32.mrf.mxu0 }
 0x1ef   : > { %v4993_v11 = vadd.f32 %v3492_v62, %v4804_v21 }
 0x1f0   : > { %v3494_v31 = vpop.f32.mrf.mxu0 }
 0x1f1   : > { %5231 = vst [vmem:[#allocation30_spill] sm:$0xff] %v4993_v11  ;;  %v3495_v47 = vadd.f32 %v3494_v31, %v3493_v59  ;;  %v5011_v59 = vpop.f32.mrf.mxu1  ;;  %v2389_v11 = vadd.f32 %v3526_v39, %v4833_v38  ;;  %v3532_v39 = vadd.f32 %v4844_v44, %v4842_v22 }
 0x1f2   : > { %v4997_v4 = vpop.f32.mrf.mxu0 }
 0x1f3   : > { %v5002_v36 = vadd.f32 %v3495_v47, %v4807_v24  ;;  %v3535_v24 = vadd.f32 %v4851_v45, %v4849_v49  ;;  %v5021_v16 = vpop.f32.mrf.mxu1 }
 0x1f4   : > { %v5004_v27 = vpop.f32.mrf.mxu0 }
 0x1f5   : > { %v5027_v28 = vpop.f32.mrf.mxu1 }
 0x1f6   : > { %v3677_v21 = vpop.f32.mrf.mxu0 }
 0x1f7   : > { %v2547_v31 = vadd.f32 %v3677_v21, %v2386_v32  ;;  %v2402_v32 = vadd.f32 %v3535_v24, %v4854_v18  ;;  %v3541_v18 = vadd.f32 %v4865_v37, %v4863_v52  ;;  %v5038_v9 = vpop.f32.mrf.mxu1 }
 0x1f8   : > { %v2538_v62 = vpop.f32.mrf.mxu0 }
 0x1f9   : > { %v2539_v51 = vadd.f32 %v2538_v62, %v4816_v20  ;;  %v2667_v56 = vmax.f32 %v2547_v31, 0.0  ;;  %v2405_v31 = vadd.f32 %v3538_v53, %v4861_v48  ;;  %v5043_v37 = vpop.f32.mrf.mxu1 }
 0x1fa   : > { %v3678_v54 = vpop.f32.mrf.mxu0 }
 0x1fb   : > { %v2550_v47 = vadd.f32 %v3678_v54, %v2389_v11  ;;  %v2665_v45 = vmax.f32 %v2539_v51, 0.0  ;;  %v3550_v51 = vadd.f32 %v4886_v13, %v4884_v15  ;;  %v2410_v15 = vadd.f32 %v3541_v18, %v4868_v29  ;;  %v5054_v29 = vpop.f32.mrf.mxu1 }
 0x1fc   : > { %v2541_v3 = vpop.f32.mrf.mxu0 }
 0x1fd   : > { %v2668_v21 = vmax.f32 %v2550_v47, 0.0  ;;  %v2542_v38 = vadd.f32 %v2541_v3, %v4823_v10  ;;  %v3547_v10 = vadd.f32 %v4879_v60, %v4877_v58  ;;  %v3544_v58 = vadd.f32 %v4872_v6, %v4870_v1 }
 0x1fe   : > { %v3681_v49 = vpop.f32.mrf.mxu0  ;;  %v2421_v13 = vadd.f32 %v3550_v51, %v4889_v63 }
 0x1ff   : > { %v2698_v20 = vpack.c.bf16 %v2668_v21, %v2667_v56  ;;  %v2666_v11 = vmax.f32 %v2542_v38, 0.0  ;;  %v2563_v12 = vadd.f32 %v3681_v49, %v2402_v32  ;;  %v2397_v56 = vadd.f32 %v3532_v39, %v4847_v42  ;;  %v5233_v32 = vld [vmem:[#allocation5_spill] sm:$0xff] }
 0x200   : > { %v2554_v23 = vpop.f32.mrf.mxu0  ;;  %v2418_v21 = vadd.f32 %v3547_v10, %v4882_v8  ;;  %v5234_v8 = vld [vmem:[#allocation6_spill] sm:$0xff]  ;;  %v5236_v10 = vld [vmem:[#allocation8_spill] sm:$0xff] }
 0x201   : > { %v2697_v62 = vpack.c.bf16 %v2666_v11, %v2665_v45  ;;  %v2555_v22 = vadd.f32 %v2554_v23, %v2394_v14  ;;  %v2671_v48 = vmax.f32 %v2563_v12, 0.0  ;;  %v3559_v45 = vadd.f32 %v4907_v57, %v4905_v26  ;;  %v5235_v12 = vld [vmem:[#allocation12_spill] sm:$0xff]  ;;  %v5237_v26 = vld [vmem:[#allocation9_spill] sm:$0xff] }
 0x202   : > { %v3682_v54 = vpop.f32.mrf.mxu0  ;;  %v3553_v23 = vadd.f32 %v5234_v8, %v5233_v32  ;;  %v3562_v14 = vadd.f32 %v5235_v12, %v4912_v33  ;;  %v3556_v57 = vadd.f32 %v5237_v26, %v5236_v10  ;;  %v5239_v33 = vld [vmem:[#allocation7_spill] sm:$0xff]  ;;  %v5244_v8 = vld [vmem:[#allocation16_spill] sm:$0xff] }
 0x203   : > { %v2566_v44 = vadd.f32 %v3682_v54, %v2405_v31  ;;  %3723 = vmatprep.mubr.bf16.mxu1 %v2697_v62  ;;  %v2669_v3 = vmax.f32 %v2555_v22, 0.0 }
 0x204   : > { %v2557_v24 = vpop.f32.mrf.mxu0  ;;  %3724 = vmatmul.mubr.bf16.vlgmr.msra.gmra.mxu1 %v2698_v20  ;;  %v5232_v20 = vld [vmem:[#allocation4_spill] sm:$0xff] }
 0x205   : > { %v2672_v47 = vmax.f32 %v2566_v44, 0.0  ;;  %v2558_v61 = vadd.f32 %v2557_v24, %v2397_v56  ;;  %v2413_v11 = vadd.f32 %v3544_v58, %v5232_v20  ;;  %v5238_v24 = vld [vmem:[#allocation11_spill] sm:$0xff] }
 0x206   : > { %v3685_v60 = vpop.f32.mrf.mxu0  ;;  %v2434_v51 = vadd.f32 %v3559_v45, %v5238_v24  ;;  %v3583_v24 = vadd.f32 %v4975_v50, %v4970_v40  ;;  %v3580_v40 = vadd.f32 %v4965_v43, %v4960_v2  ;;  %v5253_v43 = vld [vmem:[#allocation23_spill] sm:$0xff] }
 0x207   : > { %v2700_v53 = vpack.c.bf16 %v2672_v47, %v2671_v48  ;;  %v2670_v42 = vmax.f32 %v2558_v61, 0.0  ;;  %v2579_v39 = vadd.f32 %v3685_v60, %v2418_v21  ;;  %v5059_v47 = vpop.f32.mrf.mxu1  ;;  %v2426_v60 = vadd.f32 %v3553_v23, %v5239_v33 }
 0x208   : > { %v2570_v52 = vpop.f32.mrf.mxu0  ;;  %v3577_v33 = vadd.f32 %v4955_v17, %v4950_v35 }
 0x209   : > { %v2699_v38 = vpack.c.bf16 %v2670_v42, %v2669_v3  ;;  %v2571_v1 = vadd.f32 %v2570_v52, %v2410_v15  ;;  %v2675_v63 = vmax.f32 %v2579_v39, 0.0  ;;  %v2437_v3 = vadd.f32 %v3562_v14, %v4917_v46  ;;  %v5240_v42 = vld [vmem:[#allocation19_spill] sm:$0xff]  ;;  %v5241_v39 = vld [vmem:[#allocation10_spill] sm:$0xff]  ;;  %v5070_v20 = vpop.f32.mrf.mxu1 }
 0x20a   : > { %v3686_v49 = vpop.f32.mrf.mxu0  ;;  %v3571_v21 = vadd.f32 %v5240_v42, %v4933_v55  ;;  %v2429_v15 = vadd.f32 %v3556_v57, %v5241_v39  ;;  %v5245_v55 = vld [vmem:[#allocation17_spill] sm:$0xff] }
 0x20b   : > { %v2582_v6 = vadd.f32 %v3686_v49, %v2421_v13  ;;  %3727 = vmatprep.mubr.bf16.mxu1 %v2699_v38  ;;  %v2673_v44 = vmax.f32 %v2571_v1, 0.0  ;;  %v5242_v13 = vld [vmem:[#allocation13_spill] sm:$0xff]  ;;  %v5243_v49 = vld [vmem:[#allocation14_spill] sm:$0xff]  ;;  %v3568_v23 = vadd.f32 %v5245_v55, %v5244_v8  ;;  %v5075_v26 = vpop.f32.mrf.mxu1  ;;  %v2461_v55 = vadd.f32 %v3580_v40, %v5253_v43 }
 0x20c   : > { %v2573_v62 = vpop.f32.mrf.mxu0  ;;  %3728 = vmatmul.mubr.bf16.gmra.mxu1 %v2700_v53  ;;  %v3565_v45 = vadd.f32 %v5243_v49, %v5242_v13  ;;  %v5250_v13 = vld [vmem:[#allocation24_spill] sm:$0xff] }
 0x20d   : > { %v2676_v31 = vmax.f32 %v2582_v6, 0.0  ;;  %v2574_v54 = vadd.f32 %v2573_v62, %v2413_v11  ;;  %v3574_v6 = vadd.f32 %v4945_v25, %v4940_v7  ;;  %v5247_v7 = vld [vmem:[#allocation15_spill] sm:$0xff]  ;;  %v2466_v49 = vadd.f32 %v3583_v24, %v5250_v13 }
 0x20e   : > { %v3689_v22 = vpop.f32.mrf.mxu0  ;;  %v2442_v25 = vadd.f32 %v3565_v45, %v5247_v7  ;;  %v5254_v7 = vld [vmem:[#allocation28_spill] sm:$0xff] }
 0x20f   : > { %v2702_v56 = vpack.c.bf16 %v2676_v31, %v2675_v63  ;;  %v2674_v18 = vmax.f32 %v2574_v54, 0.0  ;;  %v2595_v58 = vadd.f32 %v3689_v22, %v2434_v51  ;;  %v5246_v31 = vld [vmem:[#allocation20_spill] sm:$0xff] }
 0x210   : > { %v2586_v48 = vpop.f32.mrf.mxu0  ;;  %v2450_v54 = vadd.f32 %v3571_v21, %v5246_v31 }
 0x211   : > { %v2701_v61 = vpack.c.bf16 %v2674_v18, %v2673_v44  ;;  %v2587_v52 = vadd.f32 %v2586_v48, %v2426_v60  ;;  %v2679_v46 = vmax.f32 %v2595_v58, 0.0  ;;  %v5248_v44 = vld [vmem:[#allocation21_spill] sm:$0xff] }
 0x212   : > { %v3690_v53 = vpop.f32.mrf.mxu0 }
 0x213   : > { %v2598_v38 = vadd.f32 %v3690_v53, %v2437_v3  ;;  %3731 = vmatprep.mubr.bf16.mxu1 %v2701_v61  ;;  %v2677_v12 = vmax.f32 %v2587_v52, 0.0  ;;  %v5249_v61 = vld [vmem:[#allocation18_spill] sm:$0xff]  ;;  %v3586_v3 = vadd.f32 %v4985_v5, %v4980_v34  ;;  %v3605_v53 = vpop.f32.mrf.mxu1  ;;  %v5252_v34 = vld [vmem:[#allocation25_spill] sm:$0xff] }
 0x214   : > { %v2589_v1 = vpop.f32.mrf.mxu0  ;;  %3732 = vmatmul.mubr.bf16.gmra.mxu1 %v2702_v56  ;;  %v2453_v56 = vadd.f32 %v3574_v6, %v5248_v44  ;;  %v2445_v58 = vadd.f32 %v3568_v23, %v5249_v61  ;;  %v5251_v6 = vld [vmem:[#allocation22_spill] sm:$0xff]  ;;  %v3589_v23 = vadd.f32 %v4995_v41, %v4990_v30  ;;  %v5256_v61 = vld [vmem:[#allocation27_spill] sm:$0xff] }
 0x215   : > { %v2680_v11 = vmax.f32 %v2598_v38, 0.0  ;;  %v2590_v32 = vadd.f32 %v2589_v1, %v2429_v15  ;;  %v3606_v35 = vpop.f32.mrf.mxu1  ;;  %v2469_v5 = vadd.f32 %v3586_v3, %v5252_v34  ;;  %v5255_v44 = vld [vmem:[#allocation26_spill] sm:$0xff] }
 0x216   : > { %v3693_v62 = vpop.f32.mrf.mxu0  ;;  %v2474_v30 = vadd.f32 %v3589_v23, %v5255_v44 }
 0x217   : > { %v2704_v14 = vpack.c.bf16 %v2680_v11, %v2679_v46  ;;  %v2678_v63 = vmax.f32 %v2590_v32, 0.0  ;;  %v2611_v22 = vadd.f32 %v3693_v62, %v2450_v54  ;;  %v2458_v46 = vadd.f32 %v3577_v33, %v5251_v6  ;;  %v5259_v6 = vld [vmem:[#allocation30_spill] sm:$0xff] }
 0x218   : > { %v2602_v10 = vpop.f32.mrf.mxu0  ;;  %v3595_v32 = vadd.f32 %v5027_v28, %v5021_v16  ;;  %v3592_v16 = vadd.f32 %v5011_v59, %v5008_v19  ;;  %v3601_v33 = vadd.f32 %v5059_v47, %v5054_v29  ;;  %v5258_v47 = vld [vmem:[#allocation29_spill] sm:$0xff] }
 0x219   : > { %v2703_v57 = vpack.c.bf16 %v2678_v63, %v2677_v12  ;;  %v2603_v51 = vadd.f32 %v2602_v10, %v2442_v25  ;;  %v2683_v42 = vmax.f32 %v2611_v22, 0.0  ;;  %v3598_v12 = vadd.f32 %v5043_v37, %v5038_v9 }
 0x21a   : > { %v3694_v18 = vpop.f32.mrf.mxu0  ;;  %v2482_v25 = vadd.f32 %v3595_v32, %v5254_v7 }
 0x21b   : > { %v2614_v48 = vadd.f32 %v3694_v18, %v2453_v56  ;;  %3735 = vmatprep.mubr.bf16.mxu1 %v2703_v57  ;;  %v2681_v38 = vmax.f32 %v2603_v51, 0.0  ;;  %v3498_v56 = vadd.f32 %v5004_v27, %v4997_v4  ;;  %v2485_v24 = vadd.f32 %v3598_v12, %v4983_v0 }
 0x21c   : > { %v2605_v60 = vpop.f32.mrf.mxu0  ;;  %3736 = vmatmul.mubr.bf16.gmra.mxu1 %v2704_v14  ;;  %v3608_v14 = vpop.f32.mrf.mxu1  ;;  %v3604_v0 = vadd.f32 %v5075_v26, %v5070_v20 }
 0x21d   : > { %v2684_v21 = vmax.f32 %v2614_v48, 0.0  ;;  %v2606_v52 = vadd.f32 %v2605_v60, %v2445_v58  ;;  %v3607_v48 = vadd.f32 %v3606_v35, %v3605_v53  ;;  %v2477_v58 = vadd.f32 %v3592_v16, %v5256_v61 }
 0x21e   : > { %v3697_v50 = vpop.f32.mrf.mxu0  ;;  %v3609_v9 = vpop.f32.mrf.mxu1 }
 0x21f   : > { %v2706_v39 = vpack.c.bf16 %v2684_v21, %v2683_v42  ;;  %v2682_v15 = vmax.f32 %v2606_v52, 0.0  ;;  %v2627_v1 = vadd.f32 %v3697_v50, %v2466_v49  ;;  %v3610_v60 = vadd.f32 %v3609_v9, %v3608_v14  ;;  %v5257_v42 = vld [vmem:[#allocation3_spill] sm:$0xff] }
 0x220   : > { %v2618_v45 = vpop.f32.mrf.mxu0  ;;  %v2340_v4 = vadd.f32 %v3498_v56, %v5257_v42  ;;  %v2490_v49 = vadd.f32 %v3601_v33, %v5258_v47 }
 0x221   : > { %v2705_v17 = vpack.c.bf16 %v2682_v15, %v2681_v38  ;;  %v2619_v8 = vadd.f32 %v2618_v45, %v2458_v46  ;;  %v2687_v63 = vmax.f32 %v2627_v1, 0.0  ;;  %v2493_v46 = vadd.f32 %v3604_v0, %v5259_v6 }
 0x222   : > { %v3698_v11 = vpop.f32.mrf.mxu0  ;;  %v2501_v45 = vadd.f32 %v3610_v60, %v2340_v4 }
 0x223   : > { %v2630_v2 = vadd.f32 %v3698_v11, %v2469_v5  ;;  %3739 = vmatprep.mubr.bf16.mxu1 %v2705_v17  ;;  %v2685_v10 = vmax.f32 %v2619_v8, 0.0 }
 0x224   : > { %v2621_v62 = vpop.f32.mrf.mxu0  ;;  %3740 = vmatmul.mubr.bf16.gmra.mxu1 %v2706_v39  ;;  %v2498_v39 = vadd.f32 %v3607_v48, %v5002_v36 }
 0x225   : > { %v2688_v31 = vmax.f32 %v2630_v2, 0.0  ;;  %v2622_v54 = vadd.f32 %v2621_v62, %v2461_v55  ;;  %v5118_v2 = vld [vmem:[%s5196_s4] ss:$0 sm:$0xff] }
 0x226   : > { %v3701_v28 = vpop.f32.mrf.mxu0 }
 0x227   : > { %v2708_v57 = vpack.c.bf16 %v2688_v31, %v2687_v63  ;;  %v2686_v22 = vmax.f32 %v2622_v54, 0.0  ;;  %v2643_v18 = vadd.f32 %v3701_v28, %v2482_v25 }
 0x228   : > { %v2634_v41 = vpop.f32.mrf.mxu0 }
 0x229   : > { %v2707_v37 = vpack.c.bf16 %v2686_v22, %v2685_v10  ;;  %v2635_v19 = vadd.f32 %v2634_v41, %v2474_v30  ;;  %v2691_v27 = vmax.f32 %v2643_v18, 0.0 }
 0x22a   : > { %v3702_v51 = vpop.f32.mrf.mxu0 }
 0x22b   : > { %v2646_v59 = vadd.f32 %v3702_v51, %v2485_v24  ;;  %3743 = vmatprep.mubr.bf16.mxu1 %v2707_v37  ;;  %v2689_v40 = vmax.f32 %v2635_v19, 0.0 }
 0x22c   : > { %v2637_v3 = vpop.f32.mrf.mxu0  ;;  %3744 = vmatmul.mubr.bf16.gmra.mxu1 %v2708_v57 }
 0x22d   : > { %v2692_v21 = vmax.f32 %v2646_v59, 0.0  ;;  %v2638_v52 = vadd.f32 %v2637_v3, %v2477_v58 }
 0x22e   : > { %v3705_v53 = vpop.f32.mrf.mxu0 }
 0x22f   : > { %v2710_v50 = vpack.c.bf16 %v2692_v21, %v2691_v27  ;;  %v2690_v38 = vmax.f32 %v2638_v52, 0.0  ;;  %v2659_v29 = vadd.f32 %v3705_v53, %v2498_v39 }
 0x230   : > { %v2650_v15 = vpop.f32.mrf.mxu0 }
 0x231   : > { %v2709_v13 = vpack.c.bf16 %v2690_v38, %v2689_v40  ;;  %v2651_v17 = vadd.f32 %v2650_v15, %v2490_v49  ;;  %v2695_v26 = vmax.f32 %v2659_v29, 0.0 }
 0x232   : > { %v3706_v35 = vpop.f32.mrf.mxu0 }
 0x233   : > { %v2662_v1 = vadd.f32 %v3706_v35, %v2501_v45  ;;  %3747 = vmatprep.mubr.bf16.mxu1 %v2709_v13  ;;  %v2693_v11 = vmax.f32 %v2651_v17, 0.0 }
 0x234   : > { %v2653_v20 = vpop.f32.mrf.mxu0  ;;  %3748 = vmatmul.mubr.bf16.gmra.mxu1 %v2710_v50 }
 0x235   : > { %v2696_v34 = vmax.f32 %v2662_v1, 0.0  ;;  %v2654_v5 = vadd.f32 %v2653_v20, %v2493_v46 }
 0x237   : > { %v2712_v36 = vpack.c.bf16 %v2696_v34, %v2695_v26  ;;  %v2694_v32 = vmax.f32 %v2654_v5, 0.0 }
 0x239   : > { %v2711_v8 = vpack.c.bf16 %v2694_v32, %v2693_v11 }
 0x23b   : > { %3751 = vmatprep.mubr.bf16.mxu1 %v2711_v8 }
 0x23c   : > { %3752 = vmatmul.mubr.bf16.gmra.mxu1 %v2712_v36 }
 0x2c4   : > { %v3725_v43 = vpop.f32.mrf.mxu1 }
 0x2c5   : > { %v2827_v55 = vadd.f32 %v3725_v43, %v5118_v2 }
 0x2c6   : > { %v2818_v23 = vpop.f32.mrf.mxu1 }
 0x2c7   : > { %2947 = vst [vmem:[%s5123_s7 + $0x10] sm:$0xff] %v2827_v55  ;;  %v2819_v62 = vadd.f32 %v5118_v2, %v2818_v23 }
 0x2c8   : > { %v3726_v12 = vpop.f32.mrf.mxu1 }
 0x2c9   : > { %2945 = vst [vmem:[%s5123_s7] sm:$0xff] %v2819_v62  ;;  %v2830_v14 = vadd.f32 %v3726_v12, %v5118_v2 }
 0x2ca   : > { %v2821_v63 = vpop.f32.mrf.mxu1 }
 0x2cb   : > { %2948 = vst [vmem:[%s5123_s7 + $0x18] sm:$0xff] %v2830_v14  ;;  %v2822_v31 = vadd.f32 %v5118_v2, %v2821_v63 }
 0x2cc   : > { %v3729_v54 = vpop.f32.mrf.mxu1 }
 0x2cd   : > { %2946 = vst [vmem:[%s5123_s7 + $0x8] sm:$0xff] %v2822_v31  ;;  %v2843_v16 = vadd.f32 %v3729_v54, %v5118_v2 }
 0x2ce   : > { %v2834_v28 = vpop.f32.mrf.mxu1 }
 0x2cf   : > { %2951 = vst [vmem:[%s5123_s7 + $0x30] sm:$0xff] %v2843_v16  ;;  %v2835_v10 = vadd.f32 %v5118_v2, %v2834_v28 }
 0x2d0   : > { %v3730_v57 = vpop.f32.mrf.mxu1 }
 0x2d1   : > { %2949 = vst [vmem:[%s5123_s7 + $0x20] sm:$0xff] %v2835_v10  ;;  %v2846_v22 = vadd.f32 %v3730_v57, %v5118_v2 }
 0x2d2   : > { %v2837_v7 = vpop.f32.mrf.mxu1 }
 0x2d3   : > { %2952 = vst [vmem:[%s5123_s7 + $0x38] sm:$0xff] %v2846_v22  ;;  %v2838_v25 = vadd.f32 %v5118_v2, %v2837_v7 }
 0x2d4   : > { %v3733_v44 = vpop.f32.mrf.mxu1 }
 0x2d5   : > { %2950 = vst [vmem:[%s5123_s7 + $0x28] sm:$0xff] %v2838_v25  ;;  %v2859_v30 = vadd.f32 %v3733_v44, %v5118_v2 }
 0x2d6   : > { %v2850_v41 = vpop.f32.mrf.mxu1 }
 0x2d7   : > { %2955 = vst [vmem:[%s5123_s7 + $0x50] sm:$0xff] %v2859_v30  ;;  %v2851_v56 = vadd.f32 %v5118_v2, %v2850_v41 }
 0x2d8   : > { %v3734_v9 = vpop.f32.mrf.mxu1 }
 0x2d9   : > { %2953 = vst [vmem:[%s5123_s7 + $0x40] sm:$0xff] %v2851_v56  ;;  %v2862_v37 = vadd.f32 %v3734_v9, %v5118_v2 }
 0x2da   : > { %v2853_v18 = vpop.f32.mrf.mxu1 }
 0x2db   : > { %2956 = vst [vmem:[%s5123_s7 + $0x58] sm:$0xff] %v2862_v37  ;;  %v2854_v24 = vadd.f32 %v5118_v2, %v2853_v18 }
 0x2dc   : > { %v3737_v51 = vpop.f32.mrf.mxu1 }
 0x2dd   : > { %2954 = vst [vmem:[%s5123_s7 + $0x48] sm:$0xff] %v2854_v24  ;;  %v2875_v48 = vadd.f32 %v3737_v51, %v5118_v2 }
 0x2de   : > { %v2866_v19 = vpop.f32.mrf.mxu1 }
 0x2df   : > { %2959 = vst [vmem:[%s5123_s7 + $0x70] sm:$0xff] %v2875_v48  ;;  %v2867_v59 = vadd.f32 %v5118_v2, %v2866_v19 }
 0x2e0   : > { %v3738_v61 = vpop.f32.mrf.mxu1 }
 0x2e1   : > { %2957 = vst [vmem:[%s5123_s7 + $0x60] sm:$0xff] %v2867_v59  ;;  %v2878_v58 = vadd.f32 %v3738_v61, %v5118_v2 }
 0x2e2   : > { %v2869_v33 = vpop.f32.mrf.mxu1 }
 0x2e3   : > { %2960 = vst [vmem:[%s5123_s7 + $0x78] sm:$0xff] %v2878_v58  ;;  %v2870_v60 = vadd.f32 %v5118_v2, %v2869_v33 }
 0x2e4   : > { %v3741_v3 = vpop.f32.mrf.mxu1 }
 0x2e5   : > { %2958 = vst [vmem:[%s5123_s7 + $0x68] sm:$0xff] %v2870_v60  ;;  %v2891_v42 = vadd.f32 %v3741_v3, %v5118_v2 }
 0x2e6   : > { %v2882_v4 = vpop.f32.mrf.mxu1 }
 0x2e7   : > { %2963 = vst [vmem:[%s5123_s7 + $0x90] sm:$0xff] %v2891_v42  ;;  %v2883_v27 = vadd.f32 %v5118_v2, %v2882_v4 }
 0x2e8   : > { %v3742_v21 = vpop.f32.mrf.mxu1 }
 0x2e9   : > { %2961 = vst [vmem:[%s5123_s7 + $0x80] sm:$0xff] %v2883_v27  ;;  %v2894_v52 = vadd.f32 %v3742_v21, %v5118_v2 }
 0x2ea   : > { %v2885_v0 = vpop.f32.mrf.mxu1 }
 0x2eb   : > { %2964 = vst [vmem:[%s5123_s7 + $0x98] sm:$0xff] %v2894_v52  ;;  %v2886_v53 = vadd.f32 %v5118_v2, %v2885_v0 }
 0x2ec   : > { %v3745_v40 = vpop.f32.mrf.mxu1 }
 0x2ed   : > { %2962 = vst [vmem:[%s5123_s7 + $0x88] sm:$0xff] %v2886_v53  ;;  %v2907_v50 = vadd.f32 %v3745_v40, %v5118_v2 }
 0x2ee   : > { %v2898_v38 = vpop.f32.mrf.mxu1 }
 0x2ef   : > { %2967 = vst [vmem:[%s5123_s7 + $0xb0] sm:$0xff] %v2907_v50  ;;  %v2899_v39 = vadd.f32 %v5118_v2, %v2898_v38 }
 0x2f0   : > { %v3746_v15 = vpop.f32.mrf.mxu1 }
 0x2f1   : > { %2965 = vst [vmem:[%s5123_s7 + $0xa0] sm:$0xff] %v2899_v39  ;;  %v2910_v13 = vadd.f32 %v3746_v15, %v5118_v2 }
 0x2f2   : > { %v2901_v29 = vpop.f32.mrf.mxu1 }
 0x2f3   : > { %2968 = vst [vmem:[%s5123_s7 + $0xb8] sm:$0xff] %v2910_v13  ;;  %v2902_v47 = vadd.f32 %v5118_v2, %v2901_v29 }
 0x2f4   : > { %v3749_v49 = vpop.f32.mrf.mxu1 }
 0x2f5   : > { %2966 = vst [vmem:[%s5123_s7 + $0xa8] sm:$0xff] %v2902_v47  ;;  %v2923_v45 = vadd.f32 %v3749_v49, %v5118_v2 }
 0x2f6   : > { %v2914_v35 = vpop.f32.mrf.mxu1 }
 0x2f7   : > { %2971 = vst [vmem:[%s5123_s7 + $0xd0] sm:$0xff] %v2923_v45  ;;  %v2915_v17 = vadd.f32 %v5118_v2, %v2914_v35 }
 0x2f8   : > { %v3750_v1 = vpop.f32.mrf.mxu1 }
 0x2f9   : > { %2969 = vst [vmem:[%s5123_s7 + $0xc0] sm:$0xff] %v2915_v17  ;;  %v2926_v6 = vadd.f32 %v3750_v1, %v5118_v2 }
 0x2fa   : > { %v2917_v46 = vpop.f32.mrf.mxu1 }
 0x2fb   : > { %2972 = vst [vmem:[%s5123_s7 + $0xd8] sm:$0xff] %v2926_v6  ;;  %v2918_v20 = vadd.f32 %v5118_v2, %v2917_v46 }
 0x2fc   : > { %v3753_v26 = vpop.f32.mrf.mxu1 }
 0x2fd   : > { %2970 = vst [vmem:[%s5123_s7 + $0xc8] sm:$0xff] %v2918_v20  ;;  %v2939_v34 = vadd.f32 %v3753_v26, %v5118_v2 }
 0x2fe   : > { %v2930_v5 = vpop.f32.mrf.mxu1 }
 0x2ff   : > { %2975 = vst [vmem:[%s5123_s7 + $0xf0] sm:$0xff] %v2939_v34  ;;  %v2931_v11 = vadd.f32 %v5118_v2, %v2930_v5 }
 0x300   : > { %v3754_v36 = vpop.f32.mrf.mxu1 }
 0x301   : > { %2973 = vst [vmem:[%s5123_s7 + $0xe0] sm:$0xff] %v2931_v11  ;;  %v2942_v32 = vadd.f32 %v3754_v36, %v5118_v2 }
 0x302   : > { %v2933_v8 = vpop.f32.mrf.mxu1 }
 0x303   : > { %2976 = vst [vmem:[%s5123_s7 + $0xf8] sm:$0xff] %v2942_v32  ;;  %v2934_v43 = vadd.f32 %v5118_v2, %v2933_v8 }
 0x305   : > { %2974 = vst [vmem:[%s5123_s7 + $0xe8] sm:$0xff] %v2934_v43 }
 0x306 PF: > { %s15_s18 = sadd.s32 1, %s3891_s18  }
 0x307   : > { %p12_p4 = scmp.ge.s32.totalorder %s15_s18, 4  }
 0x309   :  { %14 = sbr.rel (!%p12_p4) target bundleno = 1 (0x1), region = 71 }

// kernel: network_heads.5
= control target key start
LH: loop header
LB: loop body
LE: loop exit
PB: predicated region body
PF: predicated region fallthrough
CT: control target
= control target key end

     0   :  { %s2889_s24 = smov 0   ;;  %s3390_s0 = inlined_call_operand.vmem [shape: bf16[64,2048], index: 0, kind: input, shape index: {}]   ;;  %s3391_s1 = inlined_call_operand.vmem [shape: bf16[2048,128], index: 1, kind: input, shape index: {}]   ;;  %s3392_s2 = inlined_call_operand.vmem [shape: f32[1,128], index: 2, kind: input, shape index: {}]   ;;  %s3393_s3 = inlined_call_operand.vmem [shape: bf16[128,128], index: 3, kind: input, shape index: {}]   ;;  %s3394_s4 = inlined_call_operand.vmem [shape: f32[1,128], index: 4, kind: input, shape index: {}]   ;;  %s3395_s5 = inlined_call_operand.vmem [shape: bf16[128,128], index: 5, kind: input, shape index: {}]   ;;  %s3396_s6 = inlined_call_operand.vmem [shape: f32[1,128], index: 6, kind: input, shape index: {}]   ;;  %s3397_s7 = inlined_call_operand.vmem [shape: f32[64,128], index: 7, kind: output, shape index: {}]  }
   0x1 LB: > { %s2213_s25 = sadd.s32 4294967295, %s2847_s24   ;;  %p2217_p0 = scmp.ge.s32.totalorder %s2847_s24, 1  ;;  %s2847_s24 = sphi %s2889_s24, %s17_s24  }
   0x2   : > { %p239_p1 = scmp.lt.s32.totalorder %s2847_s24, 3 }
   0x4   : > { %p240_p2 = pnand %p2217_p0, %p239_p1 }
   0x5   : > { %s2218_s14 = sshll.u32 (!%p240_p2), %s2213_s25, 2 }
   0x6   : > { %243 = sbr.rel (%p240_p2) target bundleno = 766 (0x2fe), region = 48  ;;  %p273_p3 = scmp.lt.s32.totalorder (!%p240_p2), %s2218_s14, 7 }
   0xb   : > { %v2697_v0 = vld [vmem:[%s3391_s1 + $0x78] sm:$0xff]   ;;  %v2701_v4 = vld [vmem:[%s3391_s1 + $0x70] sm:$0xff]   ;;  %v2705_v8 = vld [vmem:[%s3391_s1 + $0x68] sm:$0xff]   ;;  %s3399_s14 = smov (!%p273_p3, %s2218_s14), 7 }
   0xc   : > { %v2698_v1 = vld [vmem:[%s3391_s1 + $0xf8] sm:$0xff]   ;;  %2405 = vmatprep.subr.bf16.mxu0 %v2697_v0  ;;  %v2702_v5 = vld [vmem:[%s3391_s1 + $0xf0] sm:$0xff]   ;;  %v2706_v9 = vld [vmem:[%s3391_s1 + $0xe8] sm:$0xff]   ;;  %s2404_s16 = sshll.u32 %s3399_s14, 6  ;;  %s2222_s15 = sshll.u32 %s3399_s14, 3 }
   0xd   : > { %v2699_v2 = vld [vmem:[%s3391_s1 + $0x38] sm:$0xff]   ;;  %2433 = vmatprep.subr.bf16.mxu1 %v2698_v1  ;;  %v2703_v6 = vld [vmem:[%s3391_s1 + $0x30] sm:$0xff]   ;;  %v2707_v10 = vld [vmem:[%s3391_s1 + $0x28] sm:$0xff]   ;;  %s2995_s26 = scalar_lea.vmem %s3390_s0, %s2404_s16  ;;  %s283_s20 = scalar_lea.vmem %s3397_s7, %s2222_s15 }
   0xe   : > { %v2700_v3 = vld [vmem:[%s3391_s1 + $0xb8] sm:$0xff]   ;;  %2406 = vmatpush3.bf16.msra.mxu0 %v2699_v2  ;;  %v2704_v7 = vld [vmem:[%s3391_s1 + $0xb0] sm:$0xff]   ;;  %v2708_v11 = vld [vmem:[%s3391_s1 + $0xa8] sm:$0xff]  }
   0xf   : > { %2434 = vmatpush3.bf16.msra.mxu1 %v2700_v3  ;;  %2407 = vmatprep.subr.bf16.mxu0 %v2701_v4  ;;  %v2709_v12 = vld [vmem:[%s3391_s1 + $0x60] sm:$0xff]   ;;  %v2713_v16 = vld [vmem:[%s3391_s1 + $0x58] sm:$0xff]   ;;  %v2717_v20 = vld [vmem:[%s3391_s1 + $0x50] sm:$0xff]  }
  0x10   : > { %2435 = vmatprep.subr.bf16.mxu1 %v2702_v5  ;;  %v2710_v13 = vld [vmem:[%s3391_s1 + $0xe0] sm:$0xff]   ;;  %v2714_v17 = vld [vmem:[%s3391_s1 + $0xd8] sm:$0xff]   ;;  %v2718_v21 = vld [vmem:[%s3391_s1 + $0xd0] sm:$0xff]  }
  0x11   : > { %v2711_v14 = vld [vmem:[%s3391_s1 + $0x20] sm:$0xff]   ;;  %v2715_v18 = vld [vmem:[%s3391_s1 + $0x18] sm:$0xff]   ;;  %v2719_v22 = vld [vmem:[%s3391_s1 + $0x10] sm:$0xff]  }
  0x12   : > { %2408 = vmatpush3.bf16.msra.mxu0 %v2703_v6  ;;  %v2712_v15 = vld [vmem:[%s3391_s1 + $0xa0] sm:$0xff]   ;;  %v2716_v19 = vld [vmem:[%s3391_s1 + $0x98] sm:$0xff]   ;;  %v2720_v23 = vld [vmem:[%s3391_s1 + $0x90] sm:$0xff]  }
  0x13   : > { %2436 = vmatpush3.bf16.msra.mxu1 %v2704_v7  ;;  %2409 = vmatprep.subr.bf16.mxu0 %v2705_v8  ;;  %v2721_v24 = vld [vmem:[%s3391_s1 + $0x48] sm:$0xff]   ;;  %v2725_v28 = vld [vmem:[%s3391_s1 + $0x40] sm:$0xff]   ;;  %v2729_v40 = vld [vmem:[%s3391_s1 + $0x178] sm:$0xff]  }
  0x14   : > { %2437 = vmatprep.subr.bf16.mxu1 %v2706_v9  ;;  %v2722_v25 = vld [vmem:[%s3391_s1 + $0xc8] sm:$0xff]   ;;  %v2726_v29 = vld [vmem:[%s3391_s1 + $0xc0] sm:$0xff]   ;;  %v2730_v41 = vld [vmem:[%s3391_s1 + $0x1f8] sm:$0xff]  }
  0x15   : > { %v2723_v26 = vld [vmem:[%s3391_s1 + $0x8] sm:$0xff]   ;;  %v2727_v30 = vld [vmem:[%s3391_s1] sm:$0xff]   ;;  %v2731_v42 = vld [vmem:[%s3391_s1 + $0x138] sm:$0xff]  }
  0x16   : > { %2410 = vmatpush3.bf16.msra.mxu0 %v2707_v10  ;;  %v2724_v27 = vld [vmem:[%s3391_s1 + $0x88] sm:$0xff]   ;;  %v2728_v31 = vld [vmem:[%s3391_s1 + $0x80] sm:$0xff]   ;;  %v2732_v43 = vld [vmem:[%s3391_s1 + $0x1b8] sm:$0xff]  }
  0x17   : > { %2438 = vmatpush3.bf16.msra.mxu1 %v2708_v11  ;;  %2411 = vmatprep.subr.bf16.mxu0 %v2709_v12  ;;  %v286_v32 = vld [vmem:[%s2995_s26] sm:$0xff]  ;;  %v287_v34 = vld [vmem:[%s2995_s26 + $0x8] sm:$0xff]  ;;  %v2733_v44 = vld [vmem:[%s3391_s1 + $0x170] sm:$0xff]  }
  0x18   : > { %2439 = vmatprep.subr.bf16.mxu1 %v2710_v13  ;;  %v294_v33 = vld [vmem:[%s2995_s26 + $0x40] sm:$0xff]  ;;  %v295_v37 = vld [vmem:[%s2995_s26 + $0x48] sm:$0xff]  ;;  %v2734_v45 = vld [vmem:[%s3391_s1 + $0x1f0] sm:$0xff]  }
  0x19   : > { %v2224_v35 = vcombine.low %v286_v32, %v294_v33  ;;  %v2225_v36 = vcombine.high %v286_v32, %v294_v33  ;;  %v2226_v38 = vcombine.low %v287_v34, %v295_v37  ;;  %v2227_v39 = vcombine.high %v287_v34, %v295_v37  ;;  %v2735_v46 = vld [vmem:[%s3391_s1 + $0x130] sm:$0xff]   ;;  %v2737_v48 = vld [vmem:[%s3391_s1 + $0x168] sm:$0xff]   ;;  %v2741_v52 = vld [vmem:[%s3391_s1 + $0x160] sm:$0xff]  }
  0x1a   : > { %2412 = vmatpush3.bf16.msra.mxu0 %v2711_v14  ;;  %v2736_v47 = vld [vmem:[%s3391_s1 + $0x1b0] sm:$0xff]   ;;  %v2738_v49 = vld [vmem:[%s3391_s1 + $0x1e8] sm:$0xff]   ;;  %v2742_v53 = vld [vmem:[%s3391_s1 + $0x1e0] sm:$0xff]  }
  0x1b   : > { %2440 = vmatpush3.bf16.msra.mxu1 %v2712_v15  ;;  %2413 = vmatprep.subr.bf16.mxu0 %v2713_v16  ;;  %v2739_v50 = vld [vmem:[%s3391_s1 + $0x128] sm:$0xff]   ;;  %v2743_v54 = vld [vmem:[%s3391_s1 + $0x120] sm:$0xff]   ;;  %v2745_v56 = vld [vmem:[%s3391_s1 + $0x158] sm:$0xff]  }
  0x1c   : > { %2441 = vmatprep.subr.bf16.mxu1 %v2714_v17  ;;  %1541 = vmatprep.mubr.bf16.mxu0 %v2225_v36  ;;  %v2740_v51 = vld [vmem:[%s3391_s1 + $0x1a8] sm:$0xff]   ;;  %v2744_v55 = vld [vmem:[%s3391_s1 + $0x1a0] sm:$0xff]   ;;  %v2746_v57 = vld [vmem:[%s3391_s1 + $0x1d8] sm:$0xff]  }
  0x1d   : > { %1590 = vmatprep.mubr.bf16.mxu1 %v2227_v39  ;;  %v2747_v58 = vld [vmem:[%s3391_s1 + $0x118] sm:$0xff]   ;;  %v302_v60 = vld [vmem:[%s2995_s26 + $0x80] sm:$0xff]  ;;  %v303_v0 = vld [vmem:[%s2995_s26 + $0x88] sm:$0xff] }
  0x1e   : > { %2414 = vmatpush3.bf16.msra.mxu0 %v2715_v18  ;;  %v2748_v59 = vld [vmem:[%s3391_s1 + $0x198] sm:$0xff]   ;;  %v310_v61 = vld [vmem:[%s2995_s26 + $0xc0] sm:$0xff]  ;;  %v311_v1 = vld [vmem:[%s2995_s26 + $0xc8] sm:$0xff] }
  0x1f   : > { %2442 = vmatpush3.bf16.msra.mxu1 %v2716_v19  ;;  %2415 = vmatprep.subr.bf16.mxu0 %v2717_v20  ;;  %v2241_v62 = vcombine.high %v302_v60, %v310_v61  ;;  %v2240_v63 = vcombine.low %v302_v60, %v310_v61  ;;  %v2243_v2 = vcombine.high %v303_v0, %v311_v1  ;;  %v2749_v3 = vld [vmem:[%s3391_s1 + $0x150] sm:$0xff]   ;;  %v2753_v8 = vld [vmem:[%s3391_s1 + $0x148] sm:$0xff]   ;;  %v2757_v12 = vld [vmem:[%s3391_s1 + $0x140] sm:$0xff]  }
  0x20   : > { %2443 = vmatprep.subr.bf16.mxu1 %v2718_v21  ;;  %v2242_v4 = vcombine.low %v303_v0, %v311_v1  ;;  %v2750_v5 = vld [vmem:[%s3391_s1 + $0x1d0] sm:$0xff]   ;;  %v2754_v9 = vld [vmem:[%s3391_s1 + $0x1c8] sm:$0xff]   ;;  %v2758_v13 = vld [vmem:[%s3391_s1 + $0x1c0] sm:$0xff]  }
  0x21   : > { %v2751_v6 = vld [vmem:[%s3391_s1 + $0x110] sm:$0xff]   ;;  %v2755_v10 = vld [vmem:[%s3391_s1 + $0x108] sm:$0xff]   ;;  %v2759_v14 = vld [vmem:[%s3391_s1 + $0x100] sm:$0xff]  }
  0x22   : > { %2416 = vmatpush3.bf16.msra.mxu0 %v2719_v22  ;;  %v2752_v7 = vld [vmem:[%s3391_s1 + $0x190] sm:$0xff]   ;;  %v2756_v11 = vld [vmem:[%s3391_s1 + $0x188] sm:$0xff]   ;;  %v2760_v15 = vld [vmem:[%s3391_s1 + $0x180] sm:$0xff]  }
  0x23   : > { %2444 = vmatpush3.bf16.msra.mxu1 %v2720_v23  ;;  %2417 = vmatprep.subr.bf16.mxu0 %v2721_v24  ;;  %v288_v16 = vld [vmem:[%s2995_s26 + $0x10] sm:$0xff]  ;;  %v289_v18 = vld [vmem:[%s2995_s26 + $0x18] sm:$0xff]  ;;  %v2769_v36 = vld [vmem:[%s3391_s1 + $0x268] sm:$0xff]  }
  0x24   : > { %2445 = vmatprep.subr.bf16.mxu1 %v2722_v25  ;;  %v296_v17 = vld [vmem:[%s2995_s26 + $0x50] sm:$0xff]  ;;  %v297_v19 = vld [vmem:[%s2995_s26 + $0x58] sm:$0xff]  ;;  %v2770_v37 = vld [vmem:[%s3391_s1 + $0x2e8] sm:$0xff]  }
  0x25   : > { %v2228_v20 = vcombine.low %v288_v16, %v296_v17  ;;  %v2229_v21 = vcombine.high %v288_v16, %v296_v17  ;;  %v2230_v22 = vcombine.low %v289_v18, %v297_v19  ;;  %v2231_v23 = vcombine.high %v289_v18, %v297_v19  ;;  %v2761_v24 = vld [vmem:[%s3391_s1 + $0x278] sm:$0xff]   ;;  %v304_v32 = vld [vmem:[%s2995_s26 + $0x90] sm:$0xff]  ;;  %v2789_v60 = vld [vmem:[%s3391_s1 + $0x240] sm:$0xff]  }
  0x26   : > { %2418 = vmatpush3.bf16.msra.mxu0 %v2723_v26  ;;  %v2762_v25 = vld [vmem:[%s3391_s1 + $0x2f8] sm:$0xff]   ;;  %v312_v33 = vld [vmem:[%s2995_s26 + $0xd0] sm:$0xff]  ;;  %v2790_v61 = vld [vmem:[%s3391_s1 + $0x2c0] sm:$0xff]  }
  0x27   : > { %2446 = vmatpush3.bf16.msra.mxu1 %v2724_v27  ;;  %2419 = vmatprep.subr.bf16.mxu0 %v2725_v28  ;;  %v2763_v26 = vld [vmem:[%s3391_s1 + $0x238] sm:$0xff]   ;;  %v2765_v28 = vld [vmem:[%s3391_s1 + $0x270] sm:$0xff]   ;;  %v2245_v34 = vcombine.high %v304_v32, %v312_v33  ;;  %v290_v0 = vld [vmem:[%s2995_s26 + $0x20] sm:$0xff] }
  0x28   : > { %2447 = vmatprep.subr.bf16.mxu1 %v2726_v29  ;;  %v2764_v27 = vld [vmem:[%s3391_s1 + $0x2b8] sm:$0xff]   ;;  %v2766_v29 = vld [vmem:[%s3391_s1 + $0x2f0] sm:$0xff]   ;;  %v298_v1 = vld [vmem:[%s2995_s26 + $0x60] sm:$0xff] }
  0x29   : > { %v313_v39 = vld [vmem:[%s2995_s26 + $0xd8] sm:$0xff]  ;;  %v306_v16 = vld [vmem:[%s2995_s26 + $0xa0] sm:$0xff] }
  0x2a   : > { %2420 = vmatpush3.bf16.msra.mxu0 %v2727_v30  ;;  %v2767_v30 = vld [vmem:[%s3391_s1 + $0x230] sm:$0xff]   ;;  %v314_v17 = vld [vmem:[%s2995_s26 + $0xe0] sm:$0xff] }
  0x2b   : > { %2448 = vmatpush3.bf16.msra.mxu1 %v2728_v31  ;;  %2461 = vmatprep.subr.bf16.mxu0 %v2729_v40  ;;  %v2768_v31 = vld [vmem:[%s3391_s1 + $0x2b0] sm:$0xff]   ;;  %v2249_v18 = vcombine.high %v306_v16, %v314_v17  ;;  %v2248_v19 = vcombine.low %v306_v16, %v314_v17 }
  0x2c   : > { %2489 = vmatprep.subr.bf16.mxu1 %v2730_v41  ;;  %v2771_v41 = vld [vmem:[%s3391_s1 + $0x228] sm:$0xff]  }
  0x2d   : > { %1542 = vmatmul.mubr.bf16.vlgmr.msra.gmra.mxu0 %v2224_v35  ;;  %v2244_v35 = vcombine.low %v304_v32, %v312_v33  ;;  %v2809_v32 = vld [vmem:[%s3391_s1 + $0x358] sm:$0xff]  }
  0x2e   : > { %1591 = vmatmul.mubr.bf16.vlgmr.msra.gmra.mxu1 %v2226_v38  ;;  %2462 = vmatpush3.bf16.msra.mxu0 %v2731_v42  ;;  %v305_v38 = vld [vmem:[%s2995_s26 + $0x98] sm:$0xff] }
  0x2f   : > { %2490 = vmatpush3.bf16.msra.mxu1 %v2732_v43  ;;  %2463 = vmatprep.subr.bf16.mxu0 %v2733_v44  ;;  %v2247_v40 = vcombine.high %v305_v38, %v313_v39  ;;  %v2246_v42 = vcombine.low %v305_v38, %v313_v39  ;;  %v2772_v43 = vld [vmem:[%s3391_s1 + $0x2a8] sm:$0xff]   ;;  %v2773_v44 = vld [vmem:[%s3391_s1 + $0x260] sm:$0xff]   ;;  %v2810_v33 = vld [vmem:[%s3391_s1 + $0x3d8] sm:$0xff]  }
  0x30   : > { %2491 = vmatprep.subr.bf16.mxu1 %v2734_v45  ;;  %1549 = vmatprep.mubr.bf16.mxu0 %v2241_v62  ;;  %v2774_v45 = vld [vmem:[%s3391_s1 + $0x2e0] sm:$0xff]   ;;  %v2815_v38 = vld [vmem:[%s3391_s1 + $0x310] sm:$0xff]  }
  0x31   : > { %1598 = vmatprep.mubr.bf16.mxu1 %v2243_v2  ;;  %v2791_v62 = vld [vmem:[%s3391_s1 + $0x200] sm:$0xff]   ;;  %v2232_v2 = vcombine.low %v290_v0, %v298_v1  ;;  %v2816_v39 = vld [vmem:[%s3391_s1 + $0x390] sm:$0xff]  }
  0x32   : > { %2464 = vmatpush3.bf16.msra.mxu0 %v2735_v46  ;;  %v2775_v46 = vld [vmem:[%s3391_s1 + $0x220] sm:$0xff]  }
  0x33   : > { %2492 = vmatpush3.bf16.msra.mxu1 %v2736_v47  ;;  %2465 = vmatprep.subr.bf16.mxu0 %v2737_v48  ;;  %v2776_v47 = vld [vmem:[%s3391_s1 + $0x2a0] sm:$0xff]   ;;  %v2777_v48 = vld [vmem:[%s3391_s1 + $0x258] sm:$0xff]  }
  0x34   : > { %2493 = vmatprep.subr.bf16.mxu1 %v2738_v49  ;;  %v2778_v49 = vld [vmem:[%s3391_s1 + $0x2d8] sm:$0xff]  }
  0x35   : > { %1550 = vmatmul.mubr.bf16.gmra.mxu0 %v2240_v63  ;;  %v2792_v63 = vld [vmem:[%s3391_s1 + $0x280] sm:$0xff]  }
  0x36   : > { %2466 = vmatpush3.bf16.msra.mxu0 %v2739_v50  ;;  %1599 = vmatmul.mubr.bf16.gmra.mxu1 %v2242_v4  ;;  %v2779_v50 = vld [vmem:[%s3391_s1 + $0x218] sm:$0xff]   ;;  %v291_v4 = vld [vmem:[%s2995_s26 + $0x28] sm:$0xff] }
  0x37   : > { %2494 = vmatpush3.bf16.msra.mxu1 %v2740_v51  ;;  %2467 = vmatprep.subr.bf16.mxu0 %v2741_v52  ;;  %v2780_v51 = vld [vmem:[%s3391_s1 + $0x298] sm:$0xff]   ;;  %v2781_v52 = vld [vmem:[%s3391_s1 + $0x250] sm:$0xff]  }
  0x38   : > { %2495 = vmatprep.subr.bf16.mxu1 %v2742_v53  ;;  %1639 = vmatprep.mubr.bf16.mxu0 %v2229_v21  ;;  %v2782_v53 = vld [vmem:[%s3391_s1 + $0x2d0] sm:$0xff]   ;;  %v2802_v21 = vld [vmem:[%s3391_s1 + $0x3e8] sm:$0xff]  }
  0x39   : > { %1688 = vmatprep.mubr.bf16.mxu1 %v2231_v23  ;;  %v315_v23 = vld [vmem:[%s2995_s26 + $0xe8] sm:$0xff] }
  0x3a   : > { %2468 = vmatpush3.bf16.msra.mxu0 %v2743_v54  ;;  %v2783_v54 = vld [vmem:[%s3391_s1 + $0x210] sm:$0xff]  }
  0x3b   : > { %2496 = vmatpush3.bf16.msra.mxu1 %v2744_v55  ;;  %2469 = vmatprep.subr.bf16.mxu0 %v2745_v56  ;;  %v2784_v55 = vld [vmem:[%s3391_s1 + $0x290] sm:$0xff]   ;;  %v2785_v56 = vld [vmem:[%s3391_s1 + $0x248] sm:$0xff]  }
  0x3c   : > { %2497 = vmatprep.subr.bf16.mxu1 %v2746_v57  ;;  %v2786_v57 = vld [vmem:[%s3391_s1 + $0x2c8] sm:$0xff]  }
  0x3e   : > { %2470 = vmatpush3.bf16.msra.mxu0 %v2747_v58  ;;  %v2787_v58 = vld [vmem:[%s3391_s1 + $0x208] sm:$0xff]  }
  0x3f   : > { %2498 = vmatpush3.bf16.msra.mxu1 %v2748_v59  ;;  %2471 = vmatprep.subr.bf16.mxu0 %v2749_v3  ;;  %v2788_v59 = vld [vmem:[%s3391_s1 + $0x288] sm:$0xff]   ;;  %v2233_v3 = vcombine.high %v290_v0, %v298_v1  ;;  %v2825_v0 = vld [vmem:[%s3393_s3 + $0x38] sm:$0xff]   ;;  %v2826_v1 = vld [vmem:[%s3393_s3 + $0x30] sm:$0xff]  }
  0x40   : > { %2499 = vmatprep.subr.bf16.mxu1 %v2750_v5  ;;  %v299_v5 = vld [vmem:[%s2995_s26 + $0x68] sm:$0xff] }
  0x42   : > { %2472 = vmatpush3.bf16.msra.mxu0 %v2751_v6  ;;  %v2234_v6 = vcombine.low %v291_v4, %v299_v5 }
  0x43   : > { %2500 = vmatpush3.bf16.msra.mxu1 %v2752_v7  ;;  %2473 = vmatprep.subr.bf16.mxu0 %v2753_v8  ;;  %v2235_v7 = vcombine.high %v291_v4, %v299_v5  ;;  %v2793_v8 = vld [vmem:[%s3391_s1 + $0x378] sm:$0xff]   ;;  %v2830_v5 = vld [vmem:[%s3393_s3 + $0x10] sm:$0xff]  }
  0x44   : > { %2501 = vmatprep.subr.bf16.mxu1 %v2754_v9  ;;  %v2794_v9 = vld [vmem:[%s3391_s1 + $0x3f8] sm:$0xff]  }
  0x45   : > { %v2829_v4 = vld [vmem:[%s3393_s3 + $0x18] sm:$0xff]  }
  0x46   : > { %2474 = vmatpush3.bf16.msra.mxu0 %v2755_v10  ;;  %v2795_v10 = vld [vmem:[%s3391_s1 + $0x338] sm:$0xff]  }
  0x47   : > { %2502 = vmatpush3.bf16.msra.mxu1 %v2756_v11  ;;  %2475 = vmatprep.subr.bf16.mxu0 %v2757_v12  ;;  %v2796_v11 = vld [vmem:[%s3391_s1 + $0x3b8] sm:$0xff]   ;;  %v2797_v12 = vld [vmem:[%s3391_s1 + $0x370] sm:$0xff]  }
  0x48   : > { %2503 = vmatprep.subr.bf16.mxu1 %v2758_v13  ;;  %v2798_v13 = vld [vmem:[%s3391_s1 + $0x3f0] sm:$0xff]  }
  0x4a   : > { %2476 = vmatpush3.bf16.msra.mxu0 %v2759_v14  ;;  %v2799_v14 = vld [vmem:[%s3391_s1 + $0x330] sm:$0xff]  }
  0x4b   : > { %2504 = vmatpush3.bf16.msra.mxu1 %v2760_v15  ;;  %2517 = vmatprep.subr.bf16.mxu0 %v2761_v24  ;;  %v2800_v15 = vld [vmem:[%s3391_s1 + $0x3b0] sm:$0xff]  }
  0x4c   : > { %2545 = vmatprep.subr.bf16.mxu1 %v2762_v25  ;;  %v2803_v25 = vld [vmem:[%s3391_s1 + $0x328] sm:$0xff]  }
  0x4d   : > { %1640 = vmatmul.mubr.bf16.vlgmr.msra.gmra.mxu0 %v2228_v20  ;;  %v2801_v20 = vld [vmem:[%s3391_s1 + $0x368] sm:$0xff]  }
  0x4e   : > { %1689 = vmatmul.mubr.bf16.vlgmr.msra.gmra.mxu1 %v2230_v22  ;;  %2518 = vmatpush3.bf16.msra.mxu0 %v2763_v26  ;;  %v307_v22 = vld [vmem:[%s2995_s26 + $0xa8] sm:$0xff] }
  0x4f   : > { %2546 = vmatpush3.bf16.msra.mxu1 %v2764_v27  ;;  %2519 = vmatprep.subr.bf16.mxu0 %v2765_v28  ;;  %v2251_v24 = vcombine.high %v307_v22, %v315_v23  ;;  %v2250_v26 = vcombine.low %v307_v22, %v315_v23  ;;  %v2804_v27 = vld [vmem:[%s3391_s1 + $0x3a8] sm:$0xff]   ;;  %v2805_v28 = vld [vmem:[%s3391_s1 + $0x360] sm:$0xff]  }
  0x50   : > { %2547 = vmatprep.subr.bf16.mxu1 %v2766_v29  ;;  %1647 = vmatprep.mubr.bf16.mxu0 %v2245_v34  ;;  %v2806_v29 = vld [vmem:[%s3391_s1 + $0x3e0] sm:$0xff]   ;;  %v2811_v34 = vld [vmem:[%s3391_s1 + $0x318] sm:$0xff]  }
  0x51   : > { %1696 = vmatprep.mubr.bf16.mxu1 %v2247_v40  ;;  %v2817_v40 = vld [vmem:[%s3391_s1 + $0x348] sm:$0xff]  }
  0x52   : > { %2520 = vmatpush3.bf16.msra.mxu0 %v2767_v30  ;;  %v2807_v30 = vld [vmem:[%s3391_s1 + $0x320] sm:$0xff]  }
  0x53   : > { %2548 = vmatpush3.bf16.msra.mxu1 %v2768_v31  ;;  %2521 = vmatprep.subr.bf16.mxu0 %v2769_v36  ;;  %v2808_v31 = vld [vmem:[%s3391_s1 + $0x3a0] sm:$0xff]   ;;  %v2813_v36 = vld [vmem:[%s3391_s1 + $0x350] sm:$0xff]  }
  0x54   : > { %2549 = vmatprep.subr.bf16.mxu1 %v2770_v37  ;;  %v2814_v37 = vld [vmem:[%s3391_s1 + $0x3d0] sm:$0xff]  }
  0x55   : > { %1648 = vmatmul.mubr.bf16.gmra.mxu0 %v2244_v35  ;;  %v2812_v35 = vld [vmem:[%s3391_s1 + $0x398] sm:$0xff]  }
  0x56   : > { %2522 = vmatpush3.bf16.msra.mxu0 %v2771_v41  ;;  %1697 = vmatmul.mubr.bf16.gmra.mxu1 %v2246_v42  ;;  %v2818_v41 = vld [vmem:[%s3391_s1 + $0x3c8] sm:$0xff]  }
  0x57   : > { %2550 = vmatpush3.bf16.msra.mxu1 %v2772_v43  ;;  %2523 = vmatprep.subr.bf16.mxu0 %v2773_v44  ;;  %v2819_v42 = vld [vmem:[%s3391_s1 + $0x308] sm:$0xff]   ;;  %v2821_v44 = vld [vmem:[%s3391_s1 + $0x340] sm:$0xff]  }
  0x58   : > { %2551 = vmatprep.subr.bf16.mxu1 %v2774_v45  ;;  %1737 = vmatprep.mubr.bf16.mxu0 %v2233_v3  ;;  %v2820_v43 = vld [vmem:[%s3391_s1 + $0x388] sm:$0xff]   ;;  %v2822_v45 = vld [vmem:[%s3391_s1 + $0x3c0] sm:$0xff]  }
  0x59   : > { %1786 = vmatprep.mubr.bf16.mxu1 %v2235_v7  ;;  %v2828_v3 = vld [vmem:[%s3393_s3 + $0x20] sm:$0xff]  }
  0x5a   : > { %2524 = vmatpush3.bf16.msra.mxu0 %v2775_v46  ;;  %v2823_v46 = vld [vmem:[%s3391_s1 + $0x300] sm:$0xff]  }
  0x5b   : > { %2552 = vmatpush3.bf16.msra.mxu1 %v2776_v47  ;;  %2525 = vmatprep.subr.bf16.mxu0 %v2777_v48  ;;  %v2824_v47 = vld [vmem:[%s3391_s1 + $0x380] sm:$0xff]   ;;  %v292_v48 = vld [vmem:[%s2995_s26 + $0x30] sm:$0xff] }
  0x5c   : > { %2553 = vmatprep.subr.bf16.mxu1 %v2778_v49  ;;  %v300_v49 = vld [vmem:[%s2995_s26 + $0x70] sm:$0xff]  ;;  %v2832_v7 = vld [vmem:[%s3393_s3] sm:$0xff]  }
  0x5e   : > { %2526 = vmatpush3.bf16.msra.mxu0 %v2779_v50  ;;  %v293_v50 = vld [vmem:[%s2995_s26 + $0x38] sm:$0xff] }
  0x5f   : > { %2554 = vmatpush3.bf16.msra.mxu1 %v2780_v51  ;;  %2527 = vmatprep.subr.bf16.mxu0 %v2781_v52  ;;  %v2236_v51 = vcombine.low %v292_v48, %v300_v49  ;;  %v2237_v52 = vcombine.high %v292_v48, %v300_v49 }
  0x60   : > { %2555 = vmatprep.subr.bf16.mxu1 %v2782_v53  ;;  %v301_v53 = vld [vmem:[%s2995_s26 + $0x78] sm:$0xff] }
  0x62   : > { %2528 = vmatpush3.bf16.msra.mxu0 %v2783_v54  ;;  %v308_v54 = vld [vmem:[%s2995_s26 + $0xb0] sm:$0xff] }
  0x63   : > { %2556 = vmatpush3.bf16.msra.mxu1 %v2784_v55  ;;  %2529 = vmatprep.subr.bf16.mxu0 %v2785_v56  ;;  %v316_v55 = vld [vmem:[%s2995_s26 + $0xf0] sm:$0xff]  ;;  %v2238_v56 = vcombine.low %v293_v50, %v301_v53 }
  0x64   : > { %2557 = vmatprep.subr.bf16.mxu1 %v2786_v57  ;;  %v2239_v57 = vcombine.high %v293_v50, %v301_v53  ;;  %v2223_v53 = vld [vmem:[%s3392_s2] ss:$0 sm:$0xff] }
  0x66   : > { %2530 = vmatpush3.bf16.msra.mxu0 %v2787_v58  ;;  %v2253_v58 = vcombine.high %v308_v54, %v316_v55 }
  0x67   : > { %2558 = vmatpush3.bf16.msra.mxu1 %v2788_v59  ;;  %2531 = vmatprep.subr.bf16.mxu0 %v2789_v60  ;;  %v309_v59 = vld [vmem:[%s2995_s26 + $0xb8] sm:$0xff] }
  0x68   : > { %2559 = vmatprep.subr.bf16.mxu1 %v2790_v61  ;;  %v317_v60 = vld [vmem:[%s2995_s26 + $0xf8] sm:$0xff] }
  0x69   : > { %v2255_v61 = vcombine.high %v309_v59, %v317_v60 }
  0x6a   : > { %2532 = vmatpush3.bf16.msra.mxu0 %v2791_v62  ;;  %v2252_v62 = vcombine.low %v308_v54, %v316_v55 }
  0x6b   : > { %2560 = vmatpush3.bf16.msra.mxu1 %v2792_v63  ;;  %2573 = vmatprep.subr.bf16.mxu0 %v2793_v8  ;;  %v2254_v63 = vcombine.low %v309_v59, %v317_v60  ;;  %v2833_v8 = vld [vmem:[%s3395_s5 + $0x38] sm:$0xff]  }
  0x6c   : > { %2601 = vmatprep.subr.bf16.mxu1 %v2794_v9  ;;  %v2834_v9 = vld [vmem:[%s3395_s5 + $0x30] sm:$0xff]  }
  0x6d   : > { %1738 = vmatmul.mubr.bf16.vlgmr.msra.gmra.mxu0 %v2232_v2  ;;  %v2827_v2 = vld [vmem:[%s3393_s3 + $0x28] sm:$0xff]  }
  0x6e   : > { %1787 = vmatmul.mubr.bf16.vlgmr.msra.gmra.mxu1 %v2234_v6  ;;  %2574 = vmatpush3.bf16.msra.mxu0 %v2795_v10  ;;  %v2831_v6 = vld [vmem:[%s3393_s3 + $0x8] sm:$0xff]  }
  0x6f   : > { %2602 = vmatpush3.bf16.msra.mxu1 %v2796_v11  ;;  %2575 = vmatprep.subr.bf16.mxu0 %v2797_v12  ;;  %v2835_v10 = vld [vmem:[%s3395_s5 + $0x28] sm:$0xff]   ;;  %v2836_v11 = vld [vmem:[%s3395_s5 + $0x20] sm:$0xff]   ;;  %v2837_v12 = vld [vmem:[%s3395_s5 + $0x18] sm:$0xff]  }
  0x70   : > { %2603 = vmatprep.subr.bf16.mxu1 %v2798_v13  ;;  %1745 = vmatprep.mubr.bf16.mxu0 %v2249_v18 }
  0x71   : > { %1794 = vmatprep.mubr.bf16.mxu1 %v2251_v24 }
  0x72   : > { %2576 = vmatpush3.bf16.msra.mxu0 %v2799_v14 }
  0x73   : > { %2604 = vmatpush3.bf16.msra.mxu1 %v2800_v15  ;;  %2577 = vmatprep.subr.bf16.mxu0 %v2801_v20 }
  0x74   : > { %2605 = vmatprep.subr.bf16.mxu1 %v2802_v21 }
  0x75   : > { %1746 = vmatmul.mubr.bf16.gmra.mxu0 %v2248_v19 }
  0x76   : > { %2578 = vmatpush3.bf16.msra.mxu0 %v2803_v25  ;;  %1795 = vmatmul.mubr.bf16.gmra.mxu1 %v2250_v26 }
  0x77   : > { %2606 = vmatpush3.bf16.msra.mxu1 %v2804_v27  ;;  %2579 = vmatprep.subr.bf16.mxu0 %v2805_v28 }
  0x78   : > { %2607 = vmatprep.subr.bf16.mxu1 %v2806_v29  ;;  %1835 = vmatprep.mubr.bf16.mxu0 %v2237_v52 }
  0x79   : > { %1884 = vmatprep.mubr.bf16.mxu1 %v2239_v57 }
  0x7a   : > { %2580 = vmatpush3.bf16.msra.mxu0 %v2807_v30 }
  0x7b   : > { %2608 = vmatpush3.bf16.msra.mxu1 %v2808_v31  ;;  %2581 = vmatprep.subr.bf16.mxu0 %v2809_v32 }
  0x7c   : > { %2609 = vmatprep.subr.bf16.mxu1 %v2810_v33 }
  0x7e   : > { %2582 = vmatpush3.bf16.msra.mxu0 %v2811_v34 }
  0x7f   : > { %2610 = vmatpush3.bf16.msra.mxu1 %v2812_v35  ;;  %2583 = vmatprep.subr.bf16.mxu0 %v2813_v36 }
  0x80   : > { %2611 = vmatprep.subr.bf16.mxu1 %v2814_v37 }
  0x82   : > { %2584 = vmatpush3.bf16.msra.mxu0 %v2815_v38 }
  0x83   : > { %2612 = vmatpush3.bf16.msra.mxu1 %v2816_v39  ;;  %2585 = vmatprep.subr.bf16.mxu0 %v2817_v40 }
  0x84   : > { %2613 = vmatprep.subr.bf16.mxu1 %v2818_v41 }
  0x86   : > { %2586 = vmatpush3.bf16.msra.mxu0 %v2819_v42 }
  0x87   : > { %2614 = vmatpush3.bf16.msra.mxu1 %v2820_v43  ;;  %2587 = vmatprep.subr.bf16.mxu0 %v2821_v44 }
  0x88   : > { %2615 = vmatprep.subr.bf16.mxu1 %v2822_v45 }
  0x8a   : > { %2588 = vmatpush3.bf16.msra.mxu0 %v2823_v46 }
  0x8b   : > { %2616 = vmatpush3.bf16.msra.mxu1 %v2824_v47  ;;  %2649 = vmatprep.subr.bf16.mxu0 %v2825_v0 }
  0x8c   : > { %2669 = vmatprep.subr.bf16.mxu1 %v2833_v8 }
  0x8d   : > { %1836 = vmatmul.mubr.bf16.vlgmr.msra.gmra.mxu0 %v2236_v51 }
  0x8e   : > { %1885 = vmatmul.mubr.bf16.vlgmr.msra.gmra.mxu1 %v2238_v56  ;;  %1843 = vmatprep.mubr.bf16.mxu0 %v2253_v58 }
  0x8f   : > { %1892 = vmatprep.mubr.bf16.mxu1 %v2255_v61  ;;  %2650 = vmatpush3.bf16.msra.mxu0 %v2825_v0 }
  0x90   : > { %2651 = vmatprep.subr.bf16.mxu0 %v2826_v1  ;;  %2670 = vmatpush3.bf16.msra.mxu1 %v2833_v8 }
  0x91   : > { %2671 = vmatprep.subr.bf16.mxu1 %v2834_v9 }
  0x93   : > { %2652 = vmatpush3.bf16.msra.mxu0 %v2826_v1 }
  0x94   : > { %2653 = vmatprep.subr.bf16.mxu0 %v2827_v2  ;;  %2672 = vmatpush3.bf16.msra.mxu1 %v2834_v9 }
  0x95   : > { %1844 = vmatmul.mubr.bf16.gmra.mxu0 %v2252_v62  ;;  %2673 = vmatprep.subr.bf16.mxu1 %v2835_v10 }
  0x96   : > { %1893 = vmatmul.mubr.bf16.gmra.mxu1 %v2254_v63 }
  0x97   : > { %2654 = vmatpush3.bf16.msra.mxu0 %v2827_v2 }
  0x98   : > { %2655 = vmatprep.subr.bf16.mxu0 %v2828_v3  ;;  %2674 = vmatpush3.bf16.msra.mxu1 %v2835_v10 }
  0x99   : > { %2675 = vmatprep.subr.bf16.mxu1 %v2836_v11 }
  0x9b   : > { %2656 = vmatpush3.bf16.msra.mxu0 %v2828_v3 }
  0x9c   : > { %2657 = vmatprep.subr.bf16.mxu0 %v2829_v4  ;;  %2676 = vmatpush3.bf16.msra.mxu1 %v2836_v11 }
  0x9d   : > { %2677 = vmatprep.subr.bf16.mxu1 %v2837_v12 }
  0x9f   : > { %2658 = vmatpush3.bf16.msra.mxu0 %v2829_v4 }
  0xa0   : > { %2659 = vmatprep.subr.bf16.mxu0 %v2830_v5  ;;  %2678 = vmatpush3.bf16.msra.mxu1 %v2837_v12 }
  0xa3   : > { %2660 = vmatpush3.bf16.msra.mxu0 %v2830_v5 }
  0xa4   : > { %2661 = vmatprep.subr.bf16.mxu0 %v2831_v6 }
  0xa7   : > { %2662 = vmatpush3.bf16.msra.mxu0 %v2831_v6 }
  0xa8   : > { %2663 = vmatprep.subr.bf16.mxu0 %v2832_v7 }
  0xab   : > { %2664 = vmatpush3.bf16.msra.mxu0 %v2832_v7 }
  0xed   : > { %v2421_v13 = vpop.f32.mrf.mxu0 }
  0xee   : > { %v2449_v15 = vpop.f32.mrf.mxu1 }
  0xef   : > { %v2422_v14 = vpop.f32.mrf.mxu0 }
  0xf0   : > { %v2450_v17 = vpop.f32.mrf.mxu1  ;;  %v2423_v52 = vadd.f32 %v2422_v14, %v2421_v13 }
  0xf1   : > { %v2424_v16 = vpop.f32.mrf.mxu0  ;;  %v2451_v57 = vadd.f32 %v2450_v17, %v2449_v15 }
  0xf2   : > { %v2452_v19 = vpop.f32.mrf.mxu1  ;;  %v1544_v56 = vadd.f32 %v2423_v52, %v2223_v53 }
  0xf3   : > { %v2425_v18 = vpop.f32.mrf.mxu0 }
  0xf4   : > { %v2453_v21 = vpop.f32.mrf.mxu1  ;;  %v2426_v58 = vadd.f32 %v2425_v18, %v2424_v16  ;;  %v1593_v63 = vadd.f32 %v2451_v57, %v1544_v56 }
  0xf5   : > { %v2427_v20 = vpop.f32.mrf.mxu0  ;;  %v2454_v2 = vadd.f32 %v2453_v21, %v2452_v19 }
  0xf6   : > { %v2455_v23 = vpop.f32.mrf.mxu1  ;;  %v1547_v0 = vadd.f32 %v2426_v58, %v2223_v53 }
  0xf7   : > { %v2428_v22 = vpop.f32.mrf.mxu0 }
  0xf8   : > { %v2456_v25 = vpop.f32.mrf.mxu1  ;;  %v2429_v61 = vadd.f32 %v2428_v22, %v2427_v20  ;;  %v1596_v10 = vadd.f32 %v2454_v2, %v1547_v0 }
  0xf9   : > { %v2430_v24 = vpop.f32.mrf.mxu0  ;;  %v2457_v7 = vadd.f32 %v2456_v25, %v2455_v23 }
  0xfa   : > { %v2458_v27 = vpop.f32.mrf.mxu1  ;;  %v1552_v6 = vadd.f32 %v2429_v61, %v2223_v53 }
  0xfb   : > { %v2431_v26 = vpop.f32.mrf.mxu0 }
  0xfc   : > { %v2459_v29 = vpop.f32.mrf.mxu1  ;;  %v2432_v8 = vadd.f32 %v2431_v26, %v2430_v24  ;;  %v1601_v16 = vadd.f32 %v2457_v7, %v1552_v6 }
  0xfd   : > { %v2460_v18 = vadd.f32 %v2459_v29, %v2458_v27 }
  0xfe   : > { %v1555_v17 = vadd.f32 %v2432_v8, %v2223_v53 }
 0x10d   : > { %v2477_v28 = vpop.f32.mrf.mxu0 }
 0x10e   : > { %v2505_v31 = vpop.f32.mrf.mxu1 }
 0x10f   : > { %v2478_v30 = vpop.f32.mrf.mxu0 }
 0x110   : > { %v2506_v33 = vpop.f32.mrf.mxu1  ;;  %v2479_v60 = vadd.f32 %v2478_v30, %v2477_v28 }
 0x111   : > { %v2480_v32 = vpop.f32.mrf.mxu0  ;;  %v2507_v4 = vadd.f32 %v2506_v33, %v2505_v31 }
 0x112   : > { %v2508_v35 = vpop.f32.mrf.mxu1  ;;  %v1642_v3 = vadd.f32 %v2479_v60, %v1593_v63 }
 0x113   : > { %v2481_v34 = vpop.f32.mrf.mxu0 }
 0x114   : > { %v2509_v37 = vpop.f32.mrf.mxu1  ;;  %v2482_v5 = vadd.f32 %v2481_v34, %v2480_v32  ;;  %v1691_v14 = vadd.f32 %v2507_v4, %v1642_v3 }
 0x115   : > { %v2483_v36 = vpop.f32.mrf.mxu0  ;;  %v2510_v22 = vadd.f32 %v2509_v37, %v2508_v35 }
 0x116   : > { %v2511_v38 = vpop.f32.mrf.mxu1  ;;  %v1645_v15 = vadd.f32 %v2482_v5, %v1596_v10 }
 0x117   : > { %v2484_v39 = vpop.f32.mrf.mxu0 }
 0x118   : > { %v2512_v40 = vpop.f32.mrf.mxu1  ;;  %v2485_v13 = vadd.f32 %v2484_v39, %v2483_v36  ;;  %v1694_v24 = vadd.f32 %v2510_v22, %v1645_v15  ;;  %v1604_v36 = vadd.f32 %v2460_v18, %v1555_v17  ;;  %v2838_v22 = vld [vmem:[%s3395_s5 + $0x10] sm:$0xff]  }
 0x119   : > { %v2486_v41 = vpop.f32.mrf.mxu0  ;;  %v2513_v32 = vadd.f32 %v2512_v40, %v2511_v38  ;;  %2679 = vmatprep.subr.bf16.mxu1 %v2838_v22 }
 0x11a   : > { %v3362_v42 = vpop.f32.mrf.mxu1  ;;  %v1650_v31 = vadd.f32 %v2485_v13, %v1601_v16  ;;  %2680 = vmatpush3.bf16.msra.mxu1 %v2838_v22 }
 0x11b   : > { %v2487_v43 = vpop.f32.mrf.mxu0 }
 0x11c   : > { %v2515_v45 = vpop.f32.mrf.mxu1  ;;  %v2488_v25 = vadd.f32 %v2487_v43, %v2486_v41  ;;  %v1699_v27 = vadd.f32 %v2513_v32, %v1650_v31  ;;  %v2384_v31 = vld [vmem:[%s3394_s4] ss:$0 sm:$0xff] }
 0x11d   : > { %v2516_v37 = vadd.f32 %v2515_v45, %v3362_v42 }
 0x11e   : > { %v1653_v35 = vadd.f32 %v2488_v25, %v1604_v36 }
 0x120   : > { %v1702_v58 = vadd.f32 %v2516_v37, %v1653_v35 }
 0x12d   : > { %v2533_v44 = vpop.f32.mrf.mxu0 }
 0x12e   : > { %v2561_v46 = vpop.f32.mrf.mxu1 }
 0x12f   : > { %v2534_v47 = vpop.f32.mrf.mxu0 }
 0x130   : > { %v2562_v48 = vpop.f32.mrf.mxu1  ;;  %v2535_v11 = vadd.f32 %v2534_v47, %v2533_v44 }
 0x131   : > { %v2536_v49 = vpop.f32.mrf.mxu0  ;;  %v2563_v19 = vadd.f32 %v2562_v48, %v2561_v46 }
 0x132   : > { %v2564_v50 = vpop.f32.mrf.mxu1  ;;  %v1740_v28 = vadd.f32 %v2535_v11, %v1691_v14 }
 0x133   : > { %v2537_v51 = vpop.f32.mrf.mxu0 }
 0x134   : > { %v2565_v54 = vpop.f32.mrf.mxu1  ;;  %v2538_v21 = vadd.f32 %v2537_v51, %v2536_v49  ;;  %v1789_v39 = vadd.f32 %v2563_v19, %v1740_v28  ;;  %v2839_v28 = vld [vmem:[%s3395_s5 + $0x8] sm:$0xff]   ;;  %v2840_v19 = vld [vmem:[%s3395_s5] sm:$0xff]  }
 0x135   : > { %v2539_v55 = vpop.f32.mrf.mxu0  ;;  %v2566_v46 = vadd.f32 %v2565_v54, %v2564_v50  ;;  %2681 = vmatprep.subr.bf16.mxu1 %v2839_v28 }
 0x136   : > { %v2567_v59 = vpop.f32.mrf.mxu1  ;;  %v1743_v44 = vadd.f32 %v2538_v21, %v1694_v24  ;;  %2682 = vmatpush3.bf16.msra.mxu1 %v2839_v28 }
 0x137   : > { %v2540_v62 = vpop.f32.mrf.mxu0  ;;  %2683 = vmatprep.subr.bf16.mxu1 %v2840_v19 }
 0x138   : > { %v2568_v1 = vpop.f32.mrf.mxu1  ;;  %v2541_v33 = vadd.f32 %v2540_v62, %v2539_v55  ;;  %v1792_v41 = vadd.f32 %v2566_v46, %v1743_v44 }
 0x139   : > { %v2542_v9 = vpop.f32.mrf.mxu0  ;;  %v2569_v40 = vadd.f32 %v2568_v1, %v2567_v59 }
 0x13a   : > { %v2570_v12 = vpop.f32.mrf.mxu1  ;;  %v1748_v38 = vadd.f32 %v2541_v33, %v1699_v27  ;;  %2684 = vmatpush3.bf16.msra.mxu1 %v2840_v19 }
 0x13b   : > { %v2543_v20 = vpop.f32.mrf.mxu0 }
 0x13c   : > { %v2571_v30 = vpop.f32.mrf.mxu1  ;;  %v2544_v43 = vadd.f32 %v2543_v20, %v2542_v9  ;;  %v1797_v0 = vadd.f32 %v2569_v40, %v1748_v38 }
 0x13d   : > { %v2572_v45 = vadd.f32 %v2571_v30, %v2570_v12 }
 0x13e   : > { %v1751_v42 = vadd.f32 %v2544_v43, %v1702_v58 }
 0x140   : > { %v1800_v8 = vadd.f32 %v2572_v45, %v1751_v42 }
 0x14d   : > { %v2589_v23 = vpop.f32.mrf.mxu0 }
 0x14e   : > { %v2617_v26 = vpop.f32.mrf.mxu1 }
 0x14f   : > { %v2590_v34 = vpop.f32.mrf.mxu0 }
 0x150   : > { %v2591_v47 = vadd.f32 %v2590_v34, %v2589_v23  ;;  %v2618_v52 = vpop.f32.mrf.mxu1 }
 0x151   : > { %v2592_v29 = vpop.f32.mrf.mxu0  ;;  %v2619_v53 = vadd.f32 %v2618_v52, %v2617_v26 }
 0x152   : > { %v1838_v48 = vadd.f32 %v2591_v47, %v1789_v39  ;;  %v2620_v49 = vpop.f32.mrf.mxu1 }
 0x153   : > { %v2593_v51 = vpop.f32.mrf.mxu0 }
 0x154   : > { %v2594_v55 = vadd.f32 %v2593_v51, %v2592_v29  ;;  %v2621_v56 = vpop.f32.mrf.mxu1  ;;  %v1887_v60 = vadd.f32 %v2619_v53, %v1838_v48  ;;  %v2393_v29 = vld [vmem:[%s3396_s6] ss:$0 sm:$0xff] }
 0x155   : > { %v2595_v57 = vpop.f32.mrf.mxu0  ;;  %v2622_v62 = vadd.f32 %v2621_v56, %v2620_v49 }
 0x156   : > { %v1841_v61 = vadd.f32 %v2594_v55, %v1792_v41  ;;  %v2623_v63 = vpop.f32.mrf.mxu1  ;;  %v1901_v1 = vmax.f32 %v1887_v60, 0.0 }
 0x157   : > { %v2596_v2 = vpop.f32.mrf.mxu0 }
 0x158   : > { %v1890_v50 = vadd.f32 %v2622_v62, %v1841_v61  ;;  %v2597_v54 = vadd.f32 %v2596_v2, %v2595_v57  ;;  %v2624_v3 = vpop.f32.mrf.mxu1 }
 0x159   : > { %v2598_v59 = vpop.f32.mrf.mxu0  ;;  %v2625_v9 = vadd.f32 %v2624_v3, %v2623_v63 }
 0x15a   : > { %v1902_v4 = vmax.f32 %v1890_v50, 0.0  ;;  %v1846_v5 = vadd.f32 %v2597_v54, %v1797_v0  ;;  %v2626_v6 = vpop.f32.mrf.mxu1 }
 0x15b   : > { %v2599_v7 = vpop.f32.mrf.mxu0 }
 0x15c   : > { %v2600_v10 = vadd.f32 %v2599_v7, %v2598_v59  ;;  %v2627_v11 = vpop.f32.mrf.mxu1  ;;  %v1905_v13 = vpack.c.bf16 %v1902_v4, %v1901_v1  ;;  %v1895_v14 = vadd.f32 %v2625_v9, %v1846_v5 }
 0x15d   : > { %v2628_v16 = vadd.f32 %v2627_v11, %v2626_v6 }
 0x15e   : > { %v1849_v15 = vadd.f32 %v2600_v10, %v1800_v8  ;;  %2665 = vmatprep.mubr.bf16.mxu0 %v1905_v13  ;;  %v1903_v12 = vmax.f32 %v1895_v14, 0.0 }
 0x160   : > { %v1898_v17 = vadd.f32 %v2628_v16, %v1849_v15 }
 0x162   : > { %v1904_v18 = vmax.f32 %v1898_v17, 0.0 }
 0x164   : > { %v1906_v20 = vpack.c.bf16 %v1904_v18, %v1903_v12 }
 0x166   : > { %2666 = vmatmul.mubr.bf16.vlgmr.msra.gmra.mxu0 %v1906_v20 }
 0x226   : > { %v2667_v21 = vpop.f32.mrf.mxu0 }
 0x227   : > { %v2021_v25 = vadd.f32 %v2667_v21, %v2384_v31 }
 0x228   : > { %v2012_v30 = vpop.f32.mrf.mxu0 }
 0x229   : > { %v2013_v23 = vadd.f32 %v2384_v31, %v2012_v30  ;;  %v2029_v44 = vmax.f32 %v2021_v25, 0.0 }
 0x22a   : > { %v2668_v32 = vpop.f32.mrf.mxu0 }
 0x22b   : > { %v2024_v24 = vadd.f32 %v2668_v32, %v2384_v31  ;;  %v2027_v36 = vmax.f32 %v2013_v23, 0.0 }
 0x22c   : > { %v2015_v26 = vpop.f32.mrf.mxu0 }
 0x22d   : > { %v2016_v33 = vadd.f32 %v2384_v31, %v2015_v26  ;;  %v2030_v34 = vmax.f32 %v2024_v24, 0.0 }
 0x22f   : > { %v2028_v39 = vmax.f32 %v2016_v33, 0.0  ;;  %v2032_v52 = vpack.c.bf16 %v2030_v34, %v2029_v44 }
 0x231   : > { %v2031_v47 = vpack.c.bf16 %v2028_v39, %v2027_v36 }
 0x233   : > { %2685 = vmatprep.mubr.bf16.mxu1 %v2031_v47 }
 0x234   : > { %2686 = vmatmul.mubr.bf16.vlgmr.msra.gmra.mxu1 %v2032_v52 }
 0x2f4   : > { %v2687_v27 = vpop.f32.mrf.mxu1 }
 0x2f5   : > { %v2147_v38 = vadd.f32 %v2687_v27, %v2393_v29 }
 0x2f6   : > { %v2138_v35 = vpop.f32.mrf.mxu1 }
 0x2f7   : > { %v2139_v37 = vadd.f32 %v2393_v29, %v2138_v35  ;;  %2155 = vst [vmem:[%s283_s20 + $0x10] sm:$0xff] %v2147_v38 }
 0x2f8   : > { %v2688_v46 = vpop.f32.mrf.mxu1 }
 0x2f9   : > { %2153 = vst [vmem:[%s283_s20] sm:$0xff] %v2139_v37  ;;  %v2150_v40 = vadd.f32 %v2688_v46, %v2393_v29 }
 0x2fa   : > { %v2141_v48 = vpop.f32.mrf.mxu1 }
 0x2fb   : > { %v2142_v49 = vadd.f32 %v2393_v29, %v2141_v48  ;;  %2156 = vst [vmem:[%s283_s20 + $0x18] sm:$0xff] %v2150_v40 }
 0x2fd   : > { %2154 = vst [vmem:[%s283_s20 + $0x8] sm:$0xff] %v2142_v49 }
 0x2fe PF: > { %s17_s24 = sadd.s32 1, %s2847_s24  }
 0x2ff   : > { %p14_p4 = scmp.ge.s32.totalorder %s17_s24, 4  }
 0x301   :  { %16 = sbr.rel (!%p14_p4) target bundleno = 1 (0x1), region = 78 }

</bundles_post_ra>
